<compile_context>
chip_gen: v7x
topology: tpu7x:2x2x1
jax: 0.10.0
libtpu: 0.0.40
codegen_flags: <defaults>
</compile_context>

<pallas_src>
import jax
import jax.numpy as jnp
from jax.experimental import pallas as pl
from jax.experimental.pallas import tpu as pltpu

# ----- small shapes consistent with the module's forward -----
B = 2        # batch_size
S = 8        # sequence length
VOCAB = 64   # synthetic vocab
E = 64       # bert hidden_size  (embedding_dim)
H = 32       # hidden_dim
L = 3        # no_layers
OUT = 4      # output_dim
LN_EPS = 1e-12

N_KERNEL_INPUTS = 16


# ----------------------------- Pallas kernel -----------------------------
def bert_rnn_kernel(ids_ref, wemb_ref, pos_ref, lng_ref, lnb_ref,
                    h0_ref, c0_ref,
                    wih0_ref, whh0_ref, b0_ref,
                    w1_ref, b1_ref,
                    w2_ref, b2_ref,
                    fcw_ref, fcb_ref,
                    out_ref, hn_ref, cn_ref):
    # ---------- "BERT" stub: embedding (one-hot matmul on MXU) + LayerNorm ----------
    # rows are time-major: row t*B + b  <->  token (batch=b, time=t)
    ids = ids_ref[...]                                                  # (S*B, 1) int32
    vocab_iota = jax.lax.broadcasted_iota(jnp.int32, (S * B, VOCAB), 1)
    onehot = (ids == vocab_iota).astype(jnp.float32)                    # (S*B, VOCAB)
    emb = jnp.dot(onehot, wemb_ref[...],
                  preferred_element_type=jnp.float32) + pos_ref[...]    # (S*B, E)
    mu = jnp.mean(emb, axis=-1, keepdims=True)
    ctr = emb - mu
    var = jnp.mean(ctr * ctr, axis=-1, keepdims=True)
    emb = ctr * jax.lax.rsqrt(var + LN_EPS) * lng_ref[...] + lnb_ref[...]

    # ---------- hoisted layer-0 input projection (off the recurrent path) ----------
    x0p = jnp.dot(emb, wih0_ref[...],
                  preferred_element_type=jnp.float32) + b0_ref[...]     # (S*B, 4H)

    whh0 = whh0_ref[...]
    w1 = w1_ref[...]
    b1 = b1_ref[...]
    w2 = w2_ref[...]
    b2 = b2_ref[...]

    h = [h0_ref[l] for l in range(L)]   # each (B, H)
    c = [c0_ref[l] for l in range(L)]

    def cell(gates, c_prev):
        # PyTorch gate order i, f, g, o.  Full-vreg sigmoid/tanh: 2 EUP pushes.
        sig = jax.nn.sigmoid(gates)                 # (B, 4H)
        th = jnp.tanh(gates)                        # (B, 4H)
        i_g = sig[:, 0 * H:1 * H]
        f_g = sig[:, 1 * H:2 * H]
        g_g = th[:, 2 * H:3 * H]
        o_g = sig[:, 3 * H:4 * H]
        c_new = f_g * c_prev + i_g * g_g
        h_new = o_g * jnp.tanh(c_new)
        return h_new, c_new

    # stacked LSTM, fully unrolled (S and L are small & static)
    for t in range(S):
        # layer 0: only the recurrent matmul sits on the serial path
        gates0 = x0p[t * B:(t + 1) * B, :] + jnp.dot(
            h[0], whh0, preferred_element_type=jnp.float32)
        h[0], c[0] = cell(gates0, c[0])
        # layers 1..2: fused [x, h] @ [Wih; Whh] + (bih + bhh)
        gates1 = jnp.dot(jnp.concatenate([h[0], h[1]], axis=-1), w1,
                         preferred_element_type=jnp.float32) + b1
        h[1], c[1] = cell(gates1, c[1])
        gates2 = jnp.dot(jnp.concatenate([h[1], h[2]], axis=-1), w2,
                         preferred_element_type=jnp.float32) + b2
        h[2], c[2] = cell(gates2, c[2])

    # TODO(synk): hn/cn last dim is H=32 (<128 lanes) -> masked stores; packing
    # h||c into one (L, B, 2H) output would widen stores but needs a glue split.
    for l in range(L):
        hn_ref[l] = h[l]
        cn_ref[l] = c[l]

    # dropout(p=0.5) is identity in eval mode; fc + softmax(dim=1);
    # out.view(B, S, OUT)[:, -1] == softmax(fc(h_T of last layer)).
    logits = jnp.dot(h[L - 1], fcw_ref[...],
                     preferred_element_type=jnp.float32) + fcb_ref[...]
    m = jnp.max(logits, axis=-1, keepdims=True)
    e = jnp.exp(logits - m)
    out_ref[...] = e * pl.reciprocal(jnp.sum(e, axis=-1, keepdims=True),
                                     approx=True)


# ----------------------------- wrapper / glue -----------------------------
@jax.jit
def bert_plus_rnn_forward(kparams, x_ids, attention_mask, hidden):
    """Matches BERT_PLUS_RNN.forward: returns (out, (h_n, c_n))."""
    del attention_mask   # TODO(synk): embedding stub ignores the mask
    h0, c0 = hidden
    ids_tm = x_ids.T.reshape(S * B, 1)          # time-major flatten (64 bytes)
    out_shapes = (
        jax.ShapeDtypeStruct((B, OUT), jnp.float32),
        jax.ShapeDtypeStruct((L, B, H), jnp.float32),
        jax.ShapeDtypeStruct((L, B, H), jnp.float32),
    )
    out, hn, cn = pl.pallas_call(
        bert_rnn_kernel,
        out_shape=out_shapes,
        in_specs=[pl.BlockSpec(memory_space=pltpu.MemorySpace.VMEM)] * N_KERNEL_INPUTS,
        out_specs=tuple(pl.BlockSpec(memory_space=pltpu.MemorySpace.VMEM)
                        for _ in range(3)),
    )(ids_tm, kparams['word_emb'], kparams['pos_tm'],
      kparams['ln_gamma'], kparams['ln_beta'],
      h0, c0,
      kparams['wih0'], kparams['whh0'], kparams['b0'],
      kparams['w1'], kparams['b1'],
      kparams['w2'], kparams['b2'],
      kparams['fc_w_t'], kparams['fc_b'])
    return out, (hn, cn)


# ----------------------------- params -----------------------------
def init_params(key):
    keys = jax.random.split(key, 4 * L + 4)
    k = 0
    p = {}
    p['word_emb'] = 0.1 * jax.random.normal(keys[k], (VOCAB, E), jnp.float32); k += 1
    p['pos_emb'] = 0.1 * jax.random.normal(keys[k], (S, E), jnp.float32); k += 1
    p['ln_gamma'] = jnp.ones((1, E), jnp.float32)
    p['ln_beta'] = jnp.zeros((1, E), jnp.float32)

    bound = 1.0 / (H ** 0.5)   # PyTorch LSTM/Linear default: U(-1/sqrt(H), 1/sqrt(H))
    lstm = []
    for l in range(L):
        in_dim = E if l == 0 else H
        wih = jax.random.uniform(keys[k], (in_dim, 4 * H), jnp.float32, -bound, bound); k += 1
        whh = jax.random.uniform(keys[k], (H, 4 * H), jnp.float32, -bound, bound); k += 1
        bih = jax.random.uniform(keys[k], (1, 4 * H), jnp.float32, -bound, bound); k += 1
        bhh = jax.random.uniform(keys[k], (1, 4 * H), jnp.float32, -bound, bound); k += 1
        lstm.append((wih, whh, bih, bhh))
    p['lstm'] = lstm
    p['fc_w_t'] = jax.random.uniform(keys[k], (H, OUT), jnp.float32, -bound, bound); k += 1
    p['fc_b'] = jax.random.uniform(keys[k], (1, OUT), jnp.float32, -bound, bound); k += 1
    return p


def make_kernel_params(p):
    """Host-side weight prep: pre-transposed, fused [Wih;Whh], merged biases."""
    wih0, whh0, bih0, bhh0 = p['lstm'][0]
    wih1, whh1, bih1, bhh1 = p['lstm'][1]
    wih2, whh2, bih2, bhh2 = p['lstm'][2]
    return {
        'word_emb': p['word_emb'],
        'pos_tm': jnp.repeat(p['pos_emb'], B, axis=0),    # row t*B+b -> position t
        'ln_gamma': p['ln_gamma'],
        'ln_beta': p['ln_beta'],
        'wih0': wih0,                                     # (E, 4H)
        'whh0': whh0,                                     # (H, 4H)
        'b0': bih0 + bhh0,                                # (1, 4H)
        'w1': jnp.concatenate([wih1, whh1], axis=0),      # (2H, 4H)
        'b1': bih1 + bhh1,
        'w2': jnp.concatenate([wih2, whh2], axis=0),      # (2H, 4H)
        'b2': bih2 + bhh2,
        'fc_w_t': p['fc_w_t'],                            # (H, OUT)
        'fc_b': p['fc_b'],                                # (1, OUT)
    }


# ----------------------------- pure-JAX reference -----------------------------
def bert_embed_ref(p, x_ids):
    emb = p['word_emb'][x_ids] + p['pos_emb'][None, :, :]
    mu = jnp.mean(emb, axis=-1, keepdims=True)
    var = jnp.var(emb, axis=-1, keepdims=True)
    return (emb - mu) / jnp.sqrt(var + LN_EPS) * p['ln_gamma'] + p['ln_beta']


def reference_forward(p, x_ids, h0, c0):
    emb = bert_embed_ref(p, x_ids)              # (B, S, E)
    h = [h0[l] for l in range(L)]
    c = [c0[l] for l in range(L)]
    for t in range(S):
        x = emb[:, t, :]
        for l in range(L):
            wih, whh, bih, bhh = p['lstm'][l]
            gates = x @ wih + h[l] @ whh + bih + bhh
            i_g = jax.nn.sigmoid(gates[:, :H])
            f_g = jax.nn.sigmoid(gates[:, H:2 * H])
            g_g = jnp.tanh(gates[:, 2 * H:3 * H])
            o_g = jax.nn.sigmoid(gates[:, 3 * H:4 * H])
            c[l] = f_g * c[l] + i_g * g_g
            h[l] = o_g * jnp.tanh(c[l])
            x = h[l]
    logits = h[-1] @ p['fc_w_t'] + p['fc_b']
    return jax.nn.softmax(logits, axis=-1), jnp.stack(h), jnp.stack(c)


if __name__ == "__main__":
    key = jax.random.PRNGKey(0)
    pkey, xkey = jax.random.split(key)
    params = init_params(pkey)
    kparams = make_kernel_params(params)

    x_ids = jax.random.randint(xkey, (B, S), 0, VOCAB, dtype=jnp.int32)
    attention_mask = jnp.ones((B, S), jnp.int32)
    h0 = jnp.zeros((L, B, H), jnp.float32)   # init_hidden
    c0 = jnp.zeros((L, B, H), jnp.float32)

    out, (hn, cn) = bert_plus_rnn_forward(kparams, x_ids, attention_mask, (h0, c0))
    jax.block_until_ready((out, hn, cn))

    # sanity check against a pure-JAX reference of the same math (unfused weights)
    ref_out, ref_hn, ref_cn = reference_forward(params, x_ids, h0, c0)
    assert out.shape == (B, OUT) and hn.shape == (L, B, H) and cn.shape == (L, B, H)
    assert jnp.allclose(out, ref_out, atol=1e-2, rtol=1e-2)
    assert jnp.allclose(hn, ref_hn, atol=1e-2, rtol=1e-2)
    assert jnp.allclose(cn, ref_cn, atol=1e-2, rtol=1e-2)

    print("KERNEL_OK")
</pallas_src>

<mosaic_0001>
module attributes {stable_mosaic.version = 11 : i64} {
  func.func @bert_rnn_kernel(%arg0: memref<16x1xi32, #tpu.memory_space<vmem>>, %arg1: memref<64x64xf32, #tpu.memory_space<vmem>>, %arg2: memref<16x64xf32, #tpu.memory_space<vmem>>, %arg3: memref<1x64xf32, #tpu.memory_space<vmem>>, %arg4: memref<1x64xf32, #tpu.memory_space<vmem>>, %arg5: memref<3x2x32xf32, #tpu.memory_space<vmem>>, %arg6: memref<3x2x32xf32, #tpu.memory_space<vmem>>, %arg7: memref<64x128xf32, #tpu.memory_space<vmem>>, %arg8: memref<32x128xf32, #tpu.memory_space<vmem>>, %arg9: memref<1x128xf32, #tpu.memory_space<vmem>>, %arg10: memref<64x128xf32, #tpu.memory_space<vmem>>, %arg11: memref<1x128xf32, #tpu.memory_space<vmem>>, %arg12: memref<64x128xf32, #tpu.memory_space<vmem>>, %arg13: memref<1x128xf32, #tpu.memory_space<vmem>>, %arg14: memref<32x4xf32, #tpu.memory_space<vmem>>, %arg15: memref<1x4xf32, #tpu.memory_space<vmem>>, %arg16: memref<2x4xf32, #tpu.memory_space<vmem>>, %arg17: memref<3x2x32xf32, #tpu.memory_space<vmem>>, %arg18: memref<3x2x32xf32, #tpu.memory_space<vmem>>) attributes {dimension_semantics = [], scalar_prefetch = 0 : i64, scratch_operands = 0 : i64, tpu.core_type = #tpu.core_type<tc>} {
    %c0 = arith.constant 0 : index
    %c0_0 = arith.constant 0 : index
    %0 = vector.load %arg0[%c0, %c0_0] : memref<16x1xi32, #tpu.memory_space<vmem>>, vector<16x1xi32>
    %1 = tpu.iota {dimensions = array<i32: 1>} : vector<16x64xi32>
    %2 = vector.broadcast %0 : vector<16x1xi32> to vector<16x64xi32>
    %3 = arith.cmpi eq, %2, %1 : vector<16x64xi32>
    %4 = arith.extui %3 : vector<16x64xi1> to vector<16x64xi32>
    %5 = arith.sitofp %4 : vector<16x64xi32> to vector<16x64xf32>
    %c0_1 = arith.constant 0 : index
    %c0_2 = arith.constant 0 : index
    %6 = vector.load %arg1[%c0_1, %c0_2] : memref<64x64xf32, #tpu.memory_space<vmem>>, vector<64x64xf32>
    %cst = arith.constant dense<0.000000e+00> : vector<16x64xf32>
    %7 = tpu.matmul %5, %6, %cst {dimension_numbers = #tpu.dot_dimension_numbers<[1], [0], [0], [1], [0, 0, 1, 1], [], []>} : vector<16x64xf32>, vector<64x64xf32>, vector<16x64xf32> -> vector<16x64xf32>
    %c0_3 = arith.constant 0 : index
    %c0_4 = arith.constant 0 : index
    %8 = vector.load %arg2[%c0_3, %c0_4] : memref<16x64xf32, #tpu.memory_space<vmem>>, vector<16x64xf32>
    %9 = arith.addf %7, %8 : vector<16x64xf32>
    %cst_5 = arith.constant dense<0.000000e+00> : vector<16xf32>
    %10 = vector.multi_reduction <add>, %9, %cst_5 [1] : vector<16x64xf32> to vector<16xf32>
    %11 = vector.shape_cast %10 : vector<16xf32> to vector<16x1xf32>
    %cst_6 = arith.constant 6.400000e+01 : f32
    %12 = vector.broadcast %cst_6 : f32 to vector<16x1xf32>
    %13 = arith.divf %11, %12 : vector<16x1xf32>
    %14 = vector.broadcast %13 : vector<16x1xf32> to vector<16x64xf32>
    %15 = arith.subf %9, %14 : vector<16x64xf32>
    %16 = arith.mulf %15, %15 : vector<16x64xf32>
    %cst_7 = arith.constant dense<0.000000e+00> : vector<16xf32>
    %17 = vector.multi_reduction <add>, %16, %cst_7 [1] : vector<16x64xf32> to vector<16xf32>
    %18 = vector.shape_cast %17 : vector<16xf32> to vector<16x1xf32>
    %cst_8 = arith.constant 6.400000e+01 : f32
    %19 = vector.broadcast %cst_8 : f32 to vector<16x1xf32>
    %20 = arith.divf %18, %19 : vector<16x1xf32>
    %cst_9 = arith.constant 9.99999996E-13 : f32
    %21 = vector.broadcast %cst_9 : f32 to vector<16x1xf32>
    %22 = arith.addf %20, %21 : vector<16x1xf32>
    %23 = math.rsqrt %22 : vector<16x1xf32>
    %24 = vector.broadcast %23 : vector<16x1xf32> to vector<16x64xf32>
    %25 = arith.mulf %15, %24 : vector<16x64xf32>
    %c0_10 = arith.constant 0 : index
    %c0_11 = arith.constant 0 : index
    %26 = vector.load %arg3[%c0_10, %c0_11] : memref<1x64xf32, #tpu.memory_space<vmem>>, vector<1x64xf32>
    %27 = vector.broadcast %26 : vector<1x64xf32> to vector<16x64xf32>
    %28 = arith.mulf %25, %27 : vector<16x64xf32>
    %c0_12 = arith.constant 0 : index
    %c0_13 = arith.constant 0 : index
    %29 = vector.load %arg4[%c0_12, %c0_13] : memref<1x64xf32, #tpu.memory_space<vmem>>, vector<1x64xf32>
    %30 = vector.broadcast %29 : vector<1x64xf32> to vector<16x64xf32>
    %31 = arith.addf %28, %30 : vector<16x64xf32>
    %c0_14 = arith.constant 0 : index
    %c0_15 = arith.constant 0 : index
    %32 = vector.load %arg7[%c0_14, %c0_15] : memref<64x128xf32, #tpu.memory_space<vmem>>, vector<64x128xf32>
    %cst_16 = arith.constant dense<0.000000e+00> : vector<16x128xf32>
    %33 = tpu.matmul %31, %32, %cst_16 {dimension_numbers = #tpu.dot_dimension_numbers<[1], [0], [0], [1], [0, 0, 1, 1], [], []>} : vector<16x64xf32>, vector<64x128xf32>, vector<16x128xf32> -> vector<16x128xf32>
    %c0_17 = arith.constant 0 : index
    %c0_18 = arith.constant 0 : index
    %34 = vector.load %arg9[%c0_17, %c0_18] : memref<1x128xf32, #tpu.memory_space<vmem>>, vector<1x128xf32>
    %35 = vector.broadcast %34 : vector<1x128xf32> to vector<16x128xf32>
    %36 = arith.addf %33, %35 : vector<16x128xf32>
    %c0_19 = arith.constant 0 : index
    %c0_20 = arith.constant 0 : index
    %37 = vector.load %arg8[%c0_19, %c0_20] : memref<32x128xf32, #tpu.memory_space<vmem>>, vector<32x128xf32>
    %c0_21 = arith.constant 0 : index
    %c0_22 = arith.constant 0 : index
    %38 = vector.load %arg10[%c0_21, %c0_22] : memref<64x128xf32, #tpu.memory_space<vmem>>, vector<64x128xf32>
    %c0_23 = arith.constant 0 : index
    %c0_24 = arith.constant 0 : index
    %39 = vector.load %arg11[%c0_23, %c0_24] : memref<1x128xf32, #tpu.memory_space<vmem>>, vector<1x128xf32>
    %c0_25 = arith.constant 0 : index
    %c0_26 = arith.constant 0 : index
    %40 = vector.load %arg12[%c0_25, %c0_26] : memref<64x128xf32, #tpu.memory_space<vmem>>, vector<64x128xf32>
    %c0_27 = arith.constant 0 : index
    %c0_28 = arith.constant 0 : index
    %41 = vector.load %arg13[%c0_27, %c0_28] : memref<1x128xf32, #tpu.memory_space<vmem>>, vector<1x128xf32>
    %c0_29 = arith.constant 0 : index
    %c0_30 = arith.constant 0 : index
    %c0_31 = arith.constant 0 : index
    %42 = vector.load %arg5[%c0_29, %c0_30, %c0_31] : memref<3x2x32xf32, #tpu.memory_space<vmem>>, vector<1x2x32xf32>
    %43 = vector.shape_cast %42 : vector<1x2x32xf32> to vector<2x32xf32>
    %c1 = arith.constant 1 : index
    %c0_32 = arith.constant 0 : index
    %c0_33 = arith.constant 0 : index
    %44 = vector.load %arg5[%c1, %c0_32, %c0_33] : memref<3x2x32xf32, #tpu.memory_space<vmem>>, vector<1x2x32xf32>
    %45 = vector.shape_cast %44 : vector<1x2x32xf32> to vector<2x32xf32>
    %c2 = arith.constant 2 : index
    %c0_34 = arith.constant 0 : index
    %c0_35 = arith.constant 0 : index
    %46 = vector.load %arg5[%c2, %c0_34, %c0_35] : memref<3x2x32xf32, #tpu.memory_space<vmem>>, vector<1x2x32xf32>
    %47 = vector.shape_cast %46 : vector<1x2x32xf32> to vector<2x32xf32>
    %c0_36 = arith.constant 0 : index
    %c0_37 = arith.constant 0 : index
    %c0_38 = arith.constant 0 : index
    %48 = vector.load %arg6[%c0_36, %c0_37, %c0_38] : memref<3x2x32xf32, #tpu.memory_space<vmem>>, vector<1x2x32xf32>
    %49 = vector.shape_cast %48 : vector<1x2x32xf32> to vector<2x32xf32>
    %c1_39 = arith.constant 1 : index
    %c0_40 = arith.constant 0 : index
    %c0_41 = arith.constant 0 : index
    %50 = vector.load %arg6[%c1_39, %c0_40, %c0_41] : memref<3x2x32xf32, #tpu.memory_space<vmem>>, vector<1x2x32xf32>
    %51 = vector.shape_cast %50 : vector<1x2x32xf32> to vector<2x32xf32>
    %c2_42 = arith.constant 2 : index
    %c0_43 = arith.constant 0 : index
    %c0_44 = arith.constant 0 : index
    %52 = vector.load %arg6[%c2_42, %c0_43, %c0_44] : memref<3x2x32xf32, #tpu.memory_space<vmem>>, vector<1x2x32xf32>
    %53 = vector.shape_cast %52 : vector<1x2x32xf32> to vector<2x32xf32>
    %54 = vector.extract_strided_slice %36 {offsets = [0, 0], sizes = [2, 128], strides = [1, 1]} : vector<16x128xf32> to vector<2x128xf32>
    %cst_45 = arith.constant dense<0.000000e+00> : vector<2x128xf32>
    %55 = tpu.matmul %43, %37, %cst_45 {dimension_numbers = #tpu.dot_dimension_numbers<[1], [0], [0], [1], [0, 0, 1, 1], [], []>} : vector<2x32xf32>, vector<32x128xf32>, vector<2x128xf32> -> vector<2x128xf32>
    %56 = arith.addf %54, %55 : vector<2x128xf32>
    %57 = arith.negf %56 : vector<2x128xf32>
    %58 = math.exp %57 : vector<2x128xf32>
    %cst_46 = arith.constant 1.000000e+00 : f32
    %59 = vector.broadcast %cst_46 : f32 to vector<2x128xf32>
    %60 = arith.addf %59, %58 : vector<2x128xf32>
    %61 = arith.divf %59, %60 : vector<2x128xf32>
    %62 = math.tanh %56 : vector<2x128xf32>
    %63 = vector.extract_strided_slice %61 {offsets = [0, 0], sizes = [2, 32], strides = [1, 1]} : vector<2x128xf32> to vector<2x32xf32>
    %64 = vector.extract_strided_slice %61 {offsets = [0, 32], sizes = [2, 32], strides = [1, 1]} : vector<2x128xf32> to vector<2x32xf32>
    %65 = vector.extract_strided_slice %62 {offsets = [0, 64], sizes = [2, 32], strides = [1, 1]} : vector<2x128xf32> to vector<2x32xf32>
    %66 = vector.extract_strided_slice %61 {offsets = [0, 96], sizes = [2, 32], strides = [1, 1]} : vector<2x128xf32> to vector<2x32xf32>
    %67 = arith.mulf %64, %49 : vector<2x32xf32>
    %68 = arith.mulf %63, %65 : vector<2x32xf32>
    %69 = arith.addf %67, %68 : vector<2x32xf32>
    %70 = math.tanh %69 : vector<2x32xf32>
    %71 = arith.mulf %66, %70 : vector<2x32xf32>
    %72 = tpu.concatenate %71, %45 in 1 : vector<2x32xf32>, vector<2x32xf32> -> vector<2x64xf32>
    %cst_47 = arith.constant dense<0.000000e+00> : vector<2x128xf32>
    %73 = tpu.matmul %72, %38, %cst_47 {dimension_numbers = #tpu.dot_dimension_numbers<[1], [0], [0], [1], [0, 0, 1, 1], [], []>} : vector<2x64xf32>, vector<64x128xf32>, vector<2x128xf32> -> vector<2x128xf32>
    %74 = vector.broadcast %39 : vector<1x128xf32> to vector<2x128xf32>
    %75 = arith.addf %73, %74 : vector<2x128xf32>
    %76 = arith.negf %75 : vector<2x128xf32>
    %77 = math.exp %76 : vector<2x128xf32>
    %cst_48 = arith.constant 1.000000e+00 : f32
    %78 = vector.broadcast %cst_48 : f32 to vector<2x128xf32>
    %79 = arith.addf %78, %77 : vector<2x128xf32>
    %80 = arith.divf %78, %79 : vector<2x128xf32>
    %81 = math.tanh %75 : vector<2x128xf32>
    %82 = vector.extract_strided_slice %80 {offsets = [0, 0], sizes = [2, 32], strides = [1, 1]} : vector<2x128xf32> to vector<2x32xf32>
    %83 = vector.extract_strided_slice %80 {offsets = [0, 32], sizes = [2, 32], strides = [1, 1]} : vector<2x128xf32> to vector<2x32xf32>
    %84 = vector.extract_strided_slice %81 {offsets = [0, 64], sizes = [2, 32], strides = [1, 1]} : vector<2x128xf32> to vector<2x32xf32>
    %85 = vector.extract_strided_slice %80 {offsets = [0, 96], sizes = [2, 32], strides = [1, 1]} : vector<2x128xf32> to vector<2x32xf32>
    %86 = arith.mulf %83, %51 : vector<2x32xf32>
    %87 = arith.mulf %82, %84 : vector<2x32xf32>
    %88 = arith.addf %86, %87 : vector<2x32xf32>
    %89 = math.tanh %88 : vector<2x32xf32>
    %90 = arith.mulf %85, %89 : vector<2x32xf32>
    %91 = tpu.concatenate %90, %47 in 1 : vector<2x32xf32>, vector<2x32xf32> -> vector<2x64xf32>
    %cst_49 = arith.constant dense<0.000000e+00> : vector<2x128xf32>
    %92 = tpu.matmul %91, %40, %cst_49 {dimension_numbers = #tpu.dot_dimension_numbers<[1], [0], [0], [1], [0, 0, 1, 1], [], []>} : vector<2x64xf32>, vector<64x128xf32>, vector<2x128xf32> -> vector<2x128xf32>
    %93 = vector.broadcast %41 : vector<1x128xf32> to vector<2x128xf32>
    %94 = arith.addf %92, %93 : vector<2x128xf32>
    %95 = arith.negf %94 : vector<2x128xf32>
    %96 = math.exp %95 : vector<2x128xf32>
    %cst_50 = arith.constant 1.000000e+00 : f32
    %97 = vector.broadcast %cst_50 : f32 to vector<2x128xf32>
    %98 = arith.addf %97, %96 : vector<2x128xf32>
    %99 = arith.divf %97, %98 : vector<2x128xf32>
    %100 = math.tanh %94 : vector<2x128xf32>
    %101 = vector.extract_strided_slice %99 {offsets = [0, 0], sizes = [2, 32], strides = [1, 1]} : vector<2x128xf32> to vector<2x32xf32>
    %102 = vector.extract_strided_slice %99 {offsets = [0, 32], sizes = [2, 32], strides = [1, 1]} : vector<2x128xf32> to vector<2x32xf32>
    %103 = vector.extract_strided_slice %100 {offsets = [0, 64], sizes = [2, 32], strides = [1, 1]} : vector<2x128xf32> to vector<2x32xf32>
    %104 = vector.extract_strided_slice %99 {offsets = [0, 96], sizes = [2, 32], strides = [1, 1]} : vector<2x128xf32> to vector<2x32xf32>
    %105 = arith.mulf %102, %53 : vector<2x32xf32>
    %106 = arith.mulf %101, %103 : vector<2x32xf32>
    %107 = arith.addf %105, %106 : vector<2x32xf32>
    %108 = math.tanh %107 : vector<2x32xf32>
    %109 = arith.mulf %104, %108 : vector<2x32xf32>
    %110 = vector.extract_strided_slice %36 {offsets = [2, 0], sizes = [2, 128], strides = [1, 1]} : vector<16x128xf32> to vector<2x128xf32>
    %cst_51 = arith.constant dense<0.000000e+00> : vector<2x128xf32>
    %111 = tpu.matmul %71, %37, %cst_51 {dimension_numbers = #tpu.dot_dimension_numbers<[1], [0], [0], [1], [0, 0, 1, 1], [], []>} : vector<2x32xf32>, vector<32x128xf32>, vector<2x128xf32> -> vector<2x128xf32>
    %112 = arith.addf %110, %111 : vector<2x128xf32>
    %113 = arith.negf %112 : vector<2x128xf32>
    %114 = math.exp %113 : vector<2x128xf32>
    %cst_52 = arith.constant 1.000000e+00 : f32
    %115 = vector.broadcast %cst_52 : f32 to vector<2x128xf32>
    %116 = arith.addf %115, %114 : vector<2x128xf32>
    %117 = arith.divf %115, %116 : vector<2x128xf32>
    %118 = math.tanh %112 : vector<2x128xf32>
    %119 = vector.extract_strided_slice %117 {offsets = [0, 0], sizes = [2, 32], strides = [1, 1]} : vector<2x128xf32> to vector<2x32xf32>
    %120 = vector.extract_strided_slice %117 {offsets = [0, 32], sizes = [2, 32], strides = [1, 1]} : vector<2x128xf32> to vector<2x32xf32>
    %121 = vector.extract_strided_slice %118 {offsets = [0, 64], sizes = [2, 32], strides = [1, 1]} : vector<2x128xf32> to vector<2x32xf32>
    %122 = vector.extract_strided_slice %117 {offsets = [0, 96], sizes = [2, 32], strides = [1, 1]} : vector<2x128xf32> to vector<2x32xf32>
    %123 = arith.mulf %120, %69 : vector<2x32xf32>
    %124 = arith.mulf %119, %121 : vector<2x32xf32>
    %125 = arith.addf %123, %124 : vector<2x32xf32>
    %126 = math.tanh %125 : vector<2x32xf32>
    %127 = arith.mulf %122, %126 : vector<2x32xf32>
    %128 = tpu.concatenate %127, %90 in 1 : vector<2x32xf32>, vector<2x32xf32> -> vector<2x64xf32>
    %cst_53 = arith.constant dense<0.000000e+00> : vector<2x128xf32>
    %129 = tpu.matmul %128, %38, %cst_53 {dimension_numbers = #tpu.dot_dimension_numbers<[1], [0], [0], [1], [0, 0, 1, 1], [], []>} : vector<2x64xf32>, vector<64x128xf32>, vector<2x128xf32> -> vector<2x128xf32>
    %130 = vector.broadcast %39 : vector<1x128xf32> to vector<2x128xf32>
    %131 = arith.addf %129, %130 : vector<2x128xf32>
    %132 = arith.negf %131 : vector<2x128xf32>
    %133 = math.exp %132 : vector<2x128xf32>
    %cst_54 = arith.constant 1.000000e+00 : f32
    %134 = vector.broadcast %cst_54 : f32 to vector<2x128xf32>
    %135 = arith.addf %134, %133 : vector<2x128xf32>
    %136 = arith.divf %134, %135 : vector<2x128xf32>
    %137 = math.tanh %131 : vector<2x128xf32>
    %138 = vector.extract_strided_slice %136 {offsets = [0, 0], sizes = [2, 32], strides = [1, 1]} : vector<2x128xf32> to vector<2x32xf32>
    %139 = vector.extract_strided_slice %136 {offsets = [0, 32], sizes = [2, 32], strides = [1, 1]} : vector<2x128xf32> to vector<2x32xf32>
    %140 = vector.extract_strided_slice %137 {offsets = [0, 64], sizes = [2, 32], strides = [1, 1]} : vector<2x128xf32> to vector<2x32xf32>
    %141 = vector.extract_strided_slice %136 {offsets = [0, 96], sizes = [2, 32], strides = [1, 1]} : vector<2x128xf32> to vector<2x32xf32>
    %142 = arith.mulf %139, %88 : vector<2x32xf32>
    %143 = arith.mulf %138, %140 : vector<2x32xf32>
    %144 = arith.addf %142, %143 : vector<2x32xf32>
    %145 = math.tanh %144 : vector<2x32xf32>
    %146 = arith.mulf %141, %145 : vector<2x32xf32>
    %147 = tpu.concatenate %146, %109 in 1 : vector<2x32xf32>, vector<2x32xf32> -> vector<2x64xf32>
    %cst_55 = arith.constant dense<0.000000e+00> : vector<2x128xf32>
    %148 = tpu.matmul %147, %40, %cst_55 {dimension_numbers = #tpu.dot_dimension_numbers<[1], [0], [0], [1], [0, 0, 1, 1], [], []>} : vector<2x64xf32>, vector<64x128xf32>, vector<2x128xf32> -> vector<2x128xf32>
    %149 = vector.broadcast %41 : vector<1x128xf32> to vector<2x128xf32>
    %150 = arith.addf %148, %149 : vector<2x128xf32>
    %151 = arith.negf %150 : vector<2x128xf32>
    %152 = math.exp %151 : vector<2x128xf32>
    %cst_56 = arith.constant 1.000000e+00 : f32
    %153 = vector.broadcast %cst_56 : f32 to vector<2x128xf32>
    %154 = arith.addf %153, %152 : vector<2x128xf32>
    %155 = arith.divf %153, %154 : vector<2x128xf32>
    %156 = math.tanh %150 : vector<2x128xf32>
    %157 = vector.extract_strided_slice %155 {offsets = [0, 0], sizes = [2, 32], strides = [1, 1]} : vector<2x128xf32> to vector<2x32xf32>
    %158 = vector.extract_strided_slice %155 {offsets = [0, 32], sizes = [2, 32], strides = [1, 1]} : vector<2x128xf32> to vector<2x32xf32>
    %159 = vector.extract_strided_slice %156 {offsets = [0, 64], sizes = [2, 32], strides = [1, 1]} : vector<2x128xf32> to vector<2x32xf32>
    %160 = vector.extract_strided_slice %155 {offsets = [0, 96], sizes = [2, 32], strides = [1, 1]} : vector<2x128xf32> to vector<2x32xf32>
    %161 = arith.mulf %158, %107 : vector<2x32xf32>
    %162 = arith.mulf %157, %159 : vector<2x32xf32>
    %163 = arith.addf %161, %162 : vector<2x32xf32>
    %164 = math.tanh %163 : vector<2x32xf32>
    %165 = arith.mulf %160, %164 : vector<2x32xf32>
    %166 = vector.extract_strided_slice %36 {offsets = [4, 0], sizes = [2, 128], strides = [1, 1]} : vector<16x128xf32> to vector<2x128xf32>
    %cst_57 = arith.constant dense<0.000000e+00> : vector<2x128xf32>
    %167 = tpu.matmul %127, %37, %cst_57 {dimension_numbers = #tpu.dot_dimension_numbers<[1], [0], [0], [1], [0, 0, 1, 1], [], []>} : vector<2x32xf32>, vector<32x128xf32>, vector<2x128xf32> -> vector<2x128xf32>
    %168 = arith.addf %166, %167 : vector<2x128xf32>
    %169 = arith.negf %168 : vector<2x128xf32>
    %170 = math.exp %169 : vector<2x128xf32>
    %cst_58 = arith.constant 1.000000e+00 : f32
    %171 = vector.broadcast %cst_58 : f32 to vector<2x128xf32>
    %172 = arith.addf %171, %170 : vector<2x128xf32>
    %173 = arith.divf %171, %172 : vector<2x128xf32>
    %174 = math.tanh %168 : vector<2x128xf32>
    %175 = vector.extract_strided_slice %173 {offsets = [0, 0], sizes = [2, 32], strides = [1, 1]} : vector<2x128xf32> to vector<2x32xf32>
    %176 = vector.extract_strided_slice %173 {offsets = [0, 32], sizes = [2, 32], strides = [1, 1]} : vector<2x128xf32> to vector<2x32xf32>
    %177 = vector.extract_strided_slice %174 {offsets = [0, 64], sizes = [2, 32], strides = [1, 1]} : vector<2x128xf32> to vector<2x32xf32>
    %178 = vector.extract_strided_slice %173 {offsets = [0, 96], sizes = [2, 32], strides = [1, 1]} : vector<2x128xf32> to vector<2x32xf32>
    %179 = arith.mulf %176, %125 : vector<2x32xf32>
    %180 = arith.mulf %175, %177 : vector<2x32xf32>
    %181 = arith.addf %179, %180 : vector<2x32xf32>
    %182 = math.tanh %181 : vector<2x32xf32>
    %183 = arith.mulf %178, %182 : vector<2x32xf32>
    %184 = tpu.concatenate %183, %146 in 1 : vector<2x32xf32>, vector<2x32xf32> -> vector<2x64xf32>
    %cst_59 = arith.constant dense<0.000000e+00> : vector<2x128xf32>
    %185 = tpu.matmul %184, %38, %cst_59 {dimension_numbers = #tpu.dot_dimension_numbers<[1], [0], [0], [1], [0, 0, 1, 1], [], []>} : vector<2x64xf32>, vector<64x128xf32>, vector<2x128xf32> -> vector<2x128xf32>
    %186 = vector.broadcast %39 : vector<1x128xf32> to vector<2x128xf32>
    %187 = arith.addf %185, %186 : vector<2x128xf32>
    %188 = arith.negf %187 : vector<2x128xf32>
    %189 = math.exp %188 : vector<2x128xf32>
    %cst_60 = arith.constant 1.000000e+00 : f32
    %190 = vector.broadcast %cst_60 : f32 to vector<2x128xf32>
    %191 = arith.addf %190, %189 : vector<2x128xf32>
    %192 = arith.divf %190, %191 : vector<2x128xf32>
    %193 = math.tanh %187 : vector<2x128xf32>
    %194 = vector.extract_strided_slice %192 {offsets = [0, 0], sizes = [2, 32], strides = [1, 1]} : vector<2x128xf32> to vector<2x32xf32>
    %195 = vector.extract_strided_slice %192 {offsets = [0, 32], sizes = [2, 32], strides = [1, 1]} : vector<2x128xf32> to vector<2x32xf32>
    %196 = vector.extract_strided_slice %193 {offsets = [0, 64], sizes = [2, 32], strides = [1, 1]} : vector<2x128xf32> to vector<2x32xf32>
    %197 = vector.extract_strided_slice %192 {offsets = [0, 96], sizes = [2, 32], strides = [1, 1]} : vector<2x128xf32> to vector<2x32xf32>
    %198 = arith.mulf %195, %144 : vector<2x32xf32>
    %199 = arith.mulf %194, %196 : vector<2x32xf32>
    %200 = arith.addf %198, %199 : vector<2x32xf32>
    %201 = math.tanh %200 : vector<2x32xf32>
    %202 = arith.mulf %197, %201 : vector<2x32xf32>
    %203 = tpu.concatenate %202, %165 in 1 : vector<2x32xf32>, vector<2x32xf32> -> vector<2x64xf32>
    %cst_61 = arith.constant dense<0.000000e+00> : vector<2x128xf32>
    %204 = tpu.matmul %203, %40, %cst_61 {dimension_numbers = #tpu.dot_dimension_numbers<[1], [0], [0], [1], [0, 0, 1, 1], [], []>} : vector<2x64xf32>, vector<64x128xf32>, vector<2x128xf32> -> vector<2x128xf32>
    %205 = vector.broadcast %41 : vector<1x128xf32> to vector<2x128xf32>
    %206 = arith.addf %204, %205 : vector<2x128xf32>
    %207 = arith.negf %206 : vector<2x128xf32>
    %208 = math.exp %207 : vector<2x128xf32>
    %cst_62 = arith.constant 1.000000e+00 : f32
    %209 = vector.broadcast %cst_62 : f32 to vector<2x128xf32>
    %210 = arith.addf %209, %208 : vector<2x128xf32>
    %211 = arith.divf %209, %210 : vector<2x128xf32>
    %212 = math.tanh %206 : vector<2x128xf32>
    %213 = vector.extract_strided_slice %211 {offsets = [0, 0], sizes = [2, 32], strides = [1, 1]} : vector<2x128xf32> to vector<2x32xf32>
    %214 = vector.extract_strided_slice %211 {offsets = [0, 32], sizes = [2, 32], strides = [1, 1]} : vector<2x128xf32> to vector<2x32xf32>
    %215 = vector.extract_strided_slice %212 {offsets = [0, 64], sizes = [2, 32], strides = [1, 1]} : vector<2x128xf32> to vector<2x32xf32>
    %216 = vector.extract_strided_slice %211 {offsets = [0, 96], sizes = [2, 32], strides = [1, 1]} : vector<2x128xf32> to vector<2x32xf32>
    %217 = arith.mulf %214, %163 : vector<2x32xf32>
    %218 = arith.mulf %213, %215 : vector<2x32xf32>
    %219 = arith.addf %217, %218 : vector<2x32xf32>
    %220 = math.tanh %219 : vector<2x32xf32>
    %221 = arith.mulf %216, %220 : vector<2x32xf32>
    %222 = vector.extract_strided_slice %36 {offsets = [6, 0], sizes = [2, 128], strides = [1, 1]} : vector<16x128xf32> to vector<2x128xf32>
    %cst_63 = arith.constant dense<0.000000e+00> : vector<2x128xf32>
    %223 = tpu.matmul %183, %37, %cst_63 {dimension_numbers = #tpu.dot_dimension_numbers<[1], [0], [0], [1], [0, 0, 1, 1], [], []>} : vector<2x32xf32>, vector<32x128xf32>, vector<2x128xf32> -> vector<2x128xf32>
    %224 = arith.addf %222, %223 : vector<2x128xf32>
    %225 = arith.negf %224 : vector<2x128xf32>
    %226 = math.exp %225 : vector<2x128xf32>
    %cst_64 = arith.constant 1.000000e+00 : f32
    %227 = vector.broadcast %cst_64 : f32 to vector<2x128xf32>
    %228 = arith.addf %227, %226 : vector<2x128xf32>
    %229 = arith.divf %227, %228 : vector<2x128xf32>
    %230 = math.tanh %224 : vector<2x128xf32>
    %231 = vector.extract_strided_slice %229 {offsets = [0, 0], sizes = [2, 32], strides = [1, 1]} : vector<2x128xf32> to vector<2x32xf32>
    %232 = vector.extract_strided_slice %229 {offsets = [0, 32], sizes = [2, 32], strides = [1, 1]} : vector<2x128xf32> to vector<2x32xf32>
    %233 = vector.extract_strided_slice %230 {offsets = [0, 64], sizes = [2, 32], strides = [1, 1]} : vector<2x128xf32> to vector<2x32xf32>
    %234 = vector.extract_strided_slice %229 {offsets = [0, 96], sizes = [2, 32], strides = [1, 1]} : vector<2x128xf32> to vector<2x32xf32>
    %235 = arith.mulf %232, %181 : vector<2x32xf32>
    %236 = arith.mulf %231, %233 : vector<2x32xf32>
    %237 = arith.addf %235, %236 : vector<2x32xf32>
    %238 = math.tanh %237 : vector<2x32xf32>
    %239 = arith.mulf %234, %238 : vector<2x32xf32>
    %240 = tpu.concatenate %239, %202 in 1 : vector<2x32xf32>, vector<2x32xf32> -> vector<2x64xf32>
    %cst_65 = arith.constant dense<0.000000e+00> : vector<2x128xf32>
    %241 = tpu.matmul %240, %38, %cst_65 {dimension_numbers = #tpu.dot_dimension_numbers<[1], [0], [0], [1], [0, 0, 1, 1], [], []>} : vector<2x64xf32>, vector<64x128xf32>, vector<2x128xf32> -> vector<2x128xf32>
    %242 = vector.broadcast %39 : vector<1x128xf32> to vector<2x128xf32>
    %243 = arith.addf %241, %242 : vector<2x128xf32>
    %244 = arith.negf %243 : vector<2x128xf32>
    %245 = math.exp %244 : vector<2x128xf32>
    %cst_66 = arith.constant 1.000000e+00 : f32
    %246 = vector.broadcast %cst_66 : f32 to vector<2x128xf32>
    %247 = arith.addf %246, %245 : vector<2x128xf32>
    %248 = arith.divf %246, %247 : vector<2x128xf32>
    %249 = math.tanh %243 : vector<2x128xf32>
    %250 = vector.extract_strided_slice %248 {offsets = [0, 0], sizes = [2, 32], strides = [1, 1]} : vector<2x128xf32> to vector<2x32xf32>
    %251 = vector.extract_strided_slice %248 {offsets = [0, 32], sizes = [2, 32], strides = [1, 1]} : vector<2x128xf32> to vector<2x32xf32>
    %252 = vector.extract_strided_slice %249 {offsets = [0, 64], sizes = [2, 32], strides = [1, 1]} : vector<2x128xf32> to vector<2x32xf32>
    %253 = vector.extract_strided_slice %248 {offsets = [0, 96], sizes = [2, 32], strides = [1, 1]} : vector<2x128xf32> to vector<2x32xf32>
    %254 = arith.mulf %251, %200 : vector<2x32xf32>
    %255 = arith.mulf %250, %252 : vector<2x32xf32>
    %256 = arith.addf %254, %255 : vector<2x32xf32>
    %257 = math.tanh %256 : vector<2x32xf32>
    %258 = arith.mulf %253, %257 : vector<2x32xf32>
    %259 = tpu.concatenate %258, %221 in 1 : vector<2x32xf32>, vector<2x32xf32> -> vector<2x64xf32>
    %cst_67 = arith.constant dense<0.000000e+00> : vector<2x128xf32>
    %260 = tpu.matmul %259, %40, %cst_67 {dimension_numbers = #tpu.dot_dimension_numbers<[1], [0], [0], [1], [0, 0, 1, 1], [], []>} : vector<2x64xf32>, vector<64x128xf32>, vector<2x128xf32> -> vector<2x128xf32>
    %261 = vector.broadcast %41 : vector<1x128xf32> to vector<2x128xf32>
    %262 = arith.addf %260, %261 : vector<2x128xf32>
    %263 = arith.negf %262 : vector<2x128xf32>
    %264 = math.exp %263 : vector<2x128xf32>
    %cst_68 = arith.constant 1.000000e+00 : f32
    %265 = vector.broadcast %cst_68 : f32 to vector<2x128xf32>
    %266 = arith.addf %265, %264 : vector<2x128xf32>
    %267 = arith.divf %265, %266 : vector<2x128xf32>
    %268 = math.tanh %262 : vector<2x128xf32>
    %269 = vector.extract_strided_slice %267 {offsets = [0, 0], sizes = [2, 32], strides = [1, 1]} : vector<2x128xf32> to vector<2x32xf32>
    %270 = vector.extract_strided_slice %267 {offsets = [0, 32], sizes = [2, 32], strides = [1, 1]} : vector<2x128xf32> to vector<2x32xf32>
    %271 = vector.extract_strided_slice %268 {offsets = [0, 64], sizes = [2, 32], strides = [1, 1]} : vector<2x128xf32> to vector<2x32xf32>
    %272 = vector.extract_strided_slice %267 {offsets = [0, 96], sizes = [2, 32], strides = [1, 1]} : vector<2x128xf32> to vector<2x32xf32>
    %273 = arith.mulf %270, %219 : vector<2x32xf32>
    %274 = arith.mulf %269, %271 : vector<2x32xf32>
    %275 = arith.addf %273, %274 : vector<2x32xf32>
    %276 = math.tanh %275 : vector<2x32xf32>
    %277 = arith.mulf %272, %276 : vector<2x32xf32>
    %278 = vector.extract_strided_slice %36 {offsets = [8, 0], sizes = [2, 128], strides = [1, 1]} : vector<16x128xf32> to vector<2x128xf32>
    %cst_69 = arith.constant dense<0.000000e+00> : vector<2x128xf32>
    %279 = tpu.matmul %239, %37, %cst_69 {dimension_numbers = #tpu.dot_dimension_numbers<[1], [0], [0], [1], [0, 0, 1, 1], [], []>} : vector<2x32xf32>, vector<32x128xf32>, vector<2x128xf32> -> vector<2x128xf32>
    %280 = arith.addf %278, %279 : vector<2x128xf32>
    %281 = arith.negf %280 : vector<2x128xf32>
    %282 = math.exp %281 : vector<2x128xf32>
    %cst_70 = arith.constant 1.000000e+00 : f32
    %283 = vector.broadcast %cst_70 : f32 to vector<2x128xf32>
    %284 = arith.addf %283, %282 : vector<2x128xf32>
    %285 = arith.divf %283, %284 : vector<2x128xf32>
    %286 = math.tanh %280 : vector<2x128xf32>
    %287 = vector.extract_strided_slice %285 {offsets = [0, 0], sizes = [2, 32], strides = [1, 1]} : vector<2x128xf32> to vector<2x32xf32>
    %288 = vector.extract_strided_slice %285 {offsets = [0, 32], sizes = [2, 32], strides = [1, 1]} : vector<2x128xf32> to vector<2x32xf32>
    %289 = vector.extract_strided_slice %286 {offsets = [0, 64], sizes = [2, 32], strides = [1, 1]} : vector<2x128xf32> to vector<2x32xf32>
    %290 = vector.extract_strided_slice %285 {offsets = [0, 96], sizes = [2, 32], strides = [1, 1]} : vector<2x128xf32> to vector<2x32xf32>
    %291 = arith.mulf %288, %237 : vector<2x32xf32>
    %292 = arith.mulf %287, %289 : vector<2x32xf32>
    %293 = arith.addf %291, %292 : vector<2x32xf32>
    %294 = math.tanh %293 : vector<2x32xf32>
    %295 = arith.mulf %290, %294 : vector<2x32xf32>
    %296 = tpu.concatenate %295, %258 in 1 : vector<2x32xf32>, vector<2x32xf32> -> vector<2x64xf32>
    %cst_71 = arith.constant dense<0.000000e+00> : vector<2x128xf32>
    %297 = tpu.matmul %296, %38, %cst_71 {dimension_numbers = #tpu.dot_dimension_numbers<[1], [0], [0], [1], [0, 0, 1, 1], [], []>} : vector<2x64xf32>, vector<64x128xf32>, vector<2x128xf32> -> vector<2x128xf32>
    %298 = vector.broadcast %39 : vector<1x128xf32> to vector<2x128xf32>
    %299 = arith.addf %297, %298 : vector<2x128xf32>
    %300 = arith.negf %299 : vector<2x128xf32>
    %301 = math.exp %300 : vector<2x128xf32>
    %cst_72 = arith.constant 1.000000e+00 : f32
    %302 = vector.broadcast %cst_72 : f32 to vector<2x128xf32>
    %303 = arith.addf %302, %301 : vector<2x128xf32>
    %304 = arith.divf %302, %303 : vector<2x128xf32>
    %305 = math.tanh %299 : vector<2x128xf32>
    %306 = vector.extract_strided_slice %304 {offsets = [0, 0], sizes = [2, 32], strides = [1, 1]} : vector<2x128xf32> to vector<2x32xf32>
    %307 = vector.extract_strided_slice %304 {offsets = [0, 32], sizes = [2, 32], strides = [1, 1]} : vector<2x128xf32> to vector<2x32xf32>
    %308 = vector.extract_strided_slice %305 {offsets = [0, 64], sizes = [2, 32], strides = [1, 1]} : vector<2x128xf32> to vector<2x32xf32>
    %309 = vector.extract_strided_slice %304 {offsets = [0, 96], sizes = [2, 32], strides = [1, 1]} : vector<2x128xf32> to vector<2x32xf32>
    %310 = arith.mulf %307, %256 : vector<2x32xf32>
    %311 = arith.mulf %306, %308 : vector<2x32xf32>
    %312 = arith.addf %310, %311 : vector<2x32xf32>
    %313 = math.tanh %312 : vector<2x32xf32>
    %314 = arith.mulf %309, %313 : vector<2x32xf32>
    %315 = tpu.concatenate %314, %277 in 1 : vector<2x32xf32>, vector<2x32xf32> -> vector<2x64xf32>
    %cst_73 = arith.constant dense<0.000000e+00> : vector<2x128xf32>
    %316 = tpu.matmul %315, %40, %cst_73 {dimension_numbers = #tpu.dot_dimension_numbers<[1], [0], [0], [1], [0, 0, 1, 1], [], []>} : vector<2x64xf32>, vector<64x128xf32>, vector<2x128xf32> -> vector<2x128xf32>
    %317 = vector.broadcast %41 : vector<1x128xf32> to vector<2x128xf32>
    %318 = arith.addf %316, %317 : vector<2x128xf32>
    %319 = arith.negf %318 : vector<2x128xf32>
    %320 = math.exp %319 : vector<2x128xf32>
    %cst_74 = arith.constant 1.000000e+00 : f32
    %321 = vector.broadcast %cst_74 : f32 to vector<2x128xf32>
    %322 = arith.addf %321, %320 : vector<2x128xf32>
    %323 = arith.divf %321, %322 : vector<2x128xf32>
    %324 = math.tanh %318 : vector<2x128xf32>
    %325 = vector.extract_strided_slice %323 {offsets = [0, 0], sizes = [2, 32], strides = [1, 1]} : vector<2x128xf32> to vector<2x32xf32>
    %326 = vector.extract_strided_slice %323 {offsets = [0, 32], sizes = [2, 32], strides = [1, 1]} : vector<2x128xf32> to vector<2x32xf32>
    %327 = vector.extract_strided_slice %324 {offsets = [0, 64], sizes = [2, 32], strides = [1, 1]} : vector<2x128xf32> to vector<2x32xf32>
    %328 = vector.extract_strided_slice %323 {offsets = [0, 96], sizes = [2, 32], strides = [1, 1]} : vector<2x128xf32> to vector<2x32xf32>
    %329 = arith.mulf %326, %275 : vector<2x32xf32>
    %330 = arith.mulf %325, %327 : vector<2x32xf32>
    %331 = arith.addf %329, %330 : vector<2x32xf32>
    %332 = math.tanh %331 : vector<2x32xf32>
    %333 = arith.mulf %328, %332 : vector<2x32xf32>
    %334 = vector.extract_strided_slice %36 {offsets = [10, 0], sizes = [2, 128], strides = [1, 1]} : vector<16x128xf32> to vector<2x128xf32>
    %cst_75 = arith.constant dense<0.000000e+00> : vector<2x128xf32>
    %335 = tpu.matmul %295, %37, %cst_75 {dimension_numbers = #tpu.dot_dimension_numbers<[1], [0], [0], [1], [0, 0, 1, 1], [], []>} : vector<2x32xf32>, vector<32x128xf32>, vector<2x128xf32> -> vector<2x128xf32>
    %336 = arith.addf %334, %335 : vector<2x128xf32>
    %337 = arith.negf %336 : vector<2x128xf32>
    %338 = math.exp %337 : vector<2x128xf32>
    %cst_76 = arith.constant 1.000000e+00 : f32
    %339 = vector.broadcast %cst_76 : f32 to vector<2x128xf32>
    %340 = arith.addf %339, %338 : vector<2x128xf32>
    %341 = arith.divf %339, %340 : vector<2x128xf32>
    %342 = math.tanh %336 : vector<2x128xf32>
    %343 = vector.extract_strided_slice %341 {offsets = [0, 0], sizes = [2, 32], strides = [1, 1]} : vector<2x128xf32> to vector<2x32xf32>
    %344 = vector.extract_strided_slice %341 {offsets = [0, 32], sizes = [2, 32], strides = [1, 1]} : vector<2x128xf32> to vector<2x32xf32>
    %345 = vector.extract_strided_slice %342 {offsets = [0, 64], sizes = [2, 32], strides = [1, 1]} : vector<2x128xf32> to vector<2x32xf32>
    %346 = vector.extract_strided_slice %341 {offsets = [0, 96], sizes = [2, 32], strides = [1, 1]} : vector<2x128xf32> to vector<2x32xf32>
    %347 = arith.mulf %344, %293 : vector<2x32xf32>
    %348 = arith.mulf %343, %345 : vector<2x32xf32>
    %349 = arith.addf %347, %348 : vector<2x32xf32>
    %350 = math.tanh %349 : vector<2x32xf32>
    %351 = arith.mulf %346, %350 : vector<2x32xf32>
    %352 = tpu.concatenate %351, %314 in 1 : vector<2x32xf32>, vector<2x32xf32> -> vector<2x64xf32>
    %cst_77 = arith.constant dense<0.000000e+00> : vector<2x128xf32>
    %353 = tpu.matmul %352, %38, %cst_77 {dimension_numbers = #tpu.dot_dimension_numbers<[1], [0], [0], [1], [0, 0, 1, 1], [], []>} : vector<2x64xf32>, vector<64x128xf32>, vector<2x128xf32> -> vector<2x128xf32>
    %354 = vector.broadcast %39 : vector<1x128xf32> to vector<2x128xf32>
    %355 = arith.addf %353, %354 : vector<2x128xf32>
    %356 = arith.negf %355 : vector<2x128xf32>
    %357 = math.exp %356 : vector<2x128xf32>
    %cst_78 = arith.constant 1.000000e+00 : f32
    %358 = vector.broadcast %cst_78 : f32 to vector<2x128xf32>
    %359 = arith.addf %358, %357 : vector<2x128xf32>
    %360 = arith.divf %358, %359 : vector<2x128xf32>
    %361 = math.tanh %355 : vector<2x128xf32>
    %362 = vector.extract_strided_slice %360 {offsets = [0, 0], sizes = [2, 32], strides = [1, 1]} : vector<2x128xf32> to vector<2x32xf32>
    %363 = vector.extract_strided_slice %360 {offsets = [0, 32], sizes = [2, 32], strides = [1, 1]} : vector<2x128xf32> to vector<2x32xf32>
    %364 = vector.extract_strided_slice %361 {offsets = [0, 64], sizes = [2, 32], strides = [1, 1]} : vector<2x128xf32> to vector<2x32xf32>
    %365 = vector.extract_strided_slice %360 {offsets = [0, 96], sizes = [2, 32], strides = [1, 1]} : vector<2x128xf32> to vector<2x32xf32>
    %366 = arith.mulf %363, %312 : vector<2x32xf32>
    %367 = arith.mulf %362, %364 : vector<2x32xf32>
    %368 = arith.addf %366, %367 : vector<2x32xf32>
    %369 = math.tanh %368 : vector<2x32xf32>
    %370 = arith.mulf %365, %369 : vector<2x32xf32>
    %371 = tpu.concatenate %370, %333 in 1 : vector<2x32xf32>, vector<2x32xf32> -> vector<2x64xf32>
    %cst_79 = arith.constant dense<0.000000e+00> : vector<2x128xf32>
    %372 = tpu.matmul %371, %40, %cst_79 {dimension_numbers = #tpu.dot_dimension_numbers<[1], [0], [0], [1], [0, 0, 1, 1], [], []>} : vector<2x64xf32>, vector<64x128xf32>, vector<2x128xf32> -> vector<2x128xf32>
    %373 = vector.broadcast %41 : vector<1x128xf32> to vector<2x128xf32>
    %374 = arith.addf %372, %373 : vector<2x128xf32>
    %375 = arith.negf %374 : vector<2x128xf32>
    %376 = math.exp %375 : vector<2x128xf32>
    %cst_80 = arith.constant 1.000000e+00 : f32
    %377 = vector.broadcast %cst_80 : f32 to vector<2x128xf32>
    %378 = arith.addf %377, %376 : vector<2x128xf32>
    %379 = arith.divf %377, %378 : vector<2x128xf32>
    %380 = math.tanh %374 : vector<2x128xf32>
    %381 = vector.extract_strided_slice %379 {offsets = [0, 0], sizes = [2, 32], strides = [1, 1]} : vector<2x128xf32> to vector<2x32xf32>
    %382 = vector.extract_strided_slice %379 {offsets = [0, 32], sizes = [2, 32], strides = [1, 1]} : vector<2x128xf32> to vector<2x32xf32>
    %383 = vector.extract_strided_slice %380 {offsets = [0, 64], sizes = [2, 32], strides = [1, 1]} : vector<2x128xf32> to vector<2x32xf32>
    %384 = vector.extract_strided_slice %379 {offsets = [0, 96], sizes = [2, 32], strides = [1, 1]} : vector<2x128xf32> to vector<2x32xf32>
    %385 = arith.mulf %382, %331 : vector<2x32xf32>
    %386 = arith.mulf %381, %383 : vector<2x32xf32>
    %387 = arith.addf %385, %386 : vector<2x32xf32>
    %388 = math.tanh %387 : vector<2x32xf32>
    %389 = arith.mulf %384, %388 : vector<2x32xf32>
    %390 = vector.extract_strided_slice %36 {offsets = [12, 0], sizes = [2, 128], strides = [1, 1]} : vector<16x128xf32> to vector<2x128xf32>
    %cst_81 = arith.constant dense<0.000000e+00> : vector<2x128xf32>
    %391 = tpu.matmul %351, %37, %cst_81 {dimension_numbers = #tpu.dot_dimension_numbers<[1], [0], [0], [1], [0, 0, 1, 1], [], []>} : vector<2x32xf32>, vector<32x128xf32>, vector<2x128xf32> -> vector<2x128xf32>
    %392 = arith.addf %390, %391 : vector<2x128xf32>
    %393 = arith.negf %392 : vector<2x128xf32>
    %394 = math.exp %393 : vector<2x128xf32>
    %cst_82 = arith.constant 1.000000e+00 : f32
    %395 = vector.broadcast %cst_82 : f32 to vector<2x128xf32>
    %396 = arith.addf %395, %394 : vector<2x128xf32>
    %397 = arith.divf %395, %396 : vector<2x128xf32>
    %398 = math.tanh %392 : vector<2x128xf32>
    %399 = vector.extract_strided_slice %397 {offsets = [0, 0], sizes = [2, 32], strides = [1, 1]} : vector<2x128xf32> to vector<2x32xf32>
    %400 = vector.extract_strided_slice %397 {offsets = [0, 32], sizes = [2, 32], strides = [1, 1]} : vector<2x128xf32> to vector<2x32xf32>
    %401 = vector.extract_strided_slice %398 {offsets = [0, 64], sizes = [2, 32], strides = [1, 1]} : vector<2x128xf32> to vector<2x32xf32>
    %402 = vector.extract_strided_slice %397 {offsets = [0, 96], sizes = [2, 32], strides = [1, 1]} : vector<2x128xf32> to vector<2x32xf32>
    %403 = arith.mulf %400, %349 : vector<2x32xf32>
    %404 = arith.mulf %399, %401 : vector<2x32xf32>
    %405 = arith.addf %403, %404 : vector<2x32xf32>
    %406 = math.tanh %405 : vector<2x32xf32>
    %407 = arith.mulf %402, %406 : vector<2x32xf32>
    %408 = tpu.concatenate %407, %370 in 1 : vector<2x32xf32>, vector<2x32xf32> -> vector<2x64xf32>
    %cst_83 = arith.constant dense<0.000000e+00> : vector<2x128xf32>
    %409 = tpu.matmul %408, %38, %cst_83 {dimension_numbers = #tpu.dot_dimension_numbers<[1], [0], [0], [1], [0, 0, 1, 1], [], []>} : vector<2x64xf32>, vector<64x128xf32>, vector<2x128xf32> -> vector<2x128xf32>
    %410 = vector.broadcast %39 : vector<1x128xf32> to vector<2x128xf32>
    %411 = arith.addf %409, %410 : vector<2x128xf32>
    %412 = arith.negf %411 : vector<2x128xf32>
    %413 = math.exp %412 : vector<2x128xf32>
    %cst_84 = arith.constant 1.000000e+00 : f32
    %414 = vector.broadcast %cst_84 : f32 to vector<2x128xf32>
    %415 = arith.addf %414, %413 : vector<2x128xf32>
    %416 = arith.divf %414, %415 : vector<2x128xf32>
    %417 = math.tanh %411 : vector<2x128xf32>
    %418 = vector.extract_strided_slice %416 {offsets = [0, 0], sizes = [2, 32], strides = [1, 1]} : vector<2x128xf32> to vector<2x32xf32>
    %419 = vector.extract_strided_slice %416 {offsets = [0, 32], sizes = [2, 32], strides = [1, 1]} : vector<2x128xf32> to vector<2x32xf32>
    %420 = vector.extract_strided_slice %417 {offsets = [0, 64], sizes = [2, 32], strides = [1, 1]} : vector<2x128xf32> to vector<2x32xf32>
    %421 = vector.extract_strided_slice %416 {offsets = [0, 96], sizes = [2, 32], strides = [1, 1]} : vector<2x128xf32> to vector<2x32xf32>
    %422 = arith.mulf %419, %368 : vector<2x32xf32>
    %423 = arith.mulf %418, %420 : vector<2x32xf32>
    %424 = arith.addf %422, %423 : vector<2x32xf32>
    %425 = math.tanh %424 : vector<2x32xf32>
    %426 = arith.mulf %421, %425 : vector<2x32xf32>
    %427 = tpu.concatenate %426, %389 in 1 : vector<2x32xf32>, vector<2x32xf32> -> vector<2x64xf32>
    %cst_85 = arith.constant dense<0.000000e+00> : vector<2x128xf32>
    %428 = tpu.matmul %427, %40, %cst_85 {dimension_numbers = #tpu.dot_dimension_numbers<[1], [0], [0], [1], [0, 0, 1, 1], [], []>} : vector<2x64xf32>, vector<64x128xf32>, vector<2x128xf32> -> vector<2x128xf32>
    %429 = vector.broadcast %41 : vector<1x128xf32> to vector<2x128xf32>
    %430 = arith.addf %428, %429 : vector<2x128xf32>
    %431 = arith.negf %430 : vector<2x128xf32>
    %432 = math.exp %431 : vector<2x128xf32>
    %cst_86 = arith.constant 1.000000e+00 : f32
    %433 = vector.broadcast %cst_86 : f32 to vector<2x128xf32>
    %434 = arith.addf %433, %432 : vector<2x128xf32>
    %435 = arith.divf %433, %434 : vector<2x128xf32>
    %436 = math.tanh %430 : vector<2x128xf32>
    %437 = vector.extract_strided_slice %435 {offsets = [0, 0], sizes = [2, 32], strides = [1, 1]} : vector<2x128xf32> to vector<2x32xf32>
    %438 = vector.extract_strided_slice %435 {offsets = [0, 32], sizes = [2, 32], strides = [1, 1]} : vector<2x128xf32> to vector<2x32xf32>
    %439 = vector.extract_strided_slice %436 {offsets = [0, 64], sizes = [2, 32], strides = [1, 1]} : vector<2x128xf32> to vector<2x32xf32>
    %440 = vector.extract_strided_slice %435 {offsets = [0, 96], sizes = [2, 32], strides = [1, 1]} : vector<2x128xf32> to vector<2x32xf32>
    %441 = arith.mulf %438, %387 : vector<2x32xf32>
    %442 = arith.mulf %437, %439 : vector<2x32xf32>
    %443 = arith.addf %441, %442 : vector<2x32xf32>
    %444 = math.tanh %443 : vector<2x32xf32>
    %445 = arith.mulf %440, %444 : vector<2x32xf32>
    %446 = vector.extract_strided_slice %36 {offsets = [14, 0], sizes = [2, 128], strides = [1, 1]} : vector<16x128xf32> to vector<2x128xf32>
    %cst_87 = arith.constant dense<0.000000e+00> : vector<2x128xf32>
    %447 = tpu.matmul %407, %37, %cst_87 {dimension_numbers = #tpu.dot_dimension_numbers<[1], [0], [0], [1], [0, 0, 1, 1], [], []>} : vector<2x32xf32>, vector<32x128xf32>, vector<2x128xf32> -> vector<2x128xf32>
    %448 = arith.addf %446, %447 : vector<2x128xf32>
    %449 = arith.negf %448 : vector<2x128xf32>
    %450 = math.exp %449 : vector<2x128xf32>
    %cst_88 = arith.constant 1.000000e+00 : f32
    %451 = vector.broadcast %cst_88 : f32 to vector<2x128xf32>
    %452 = arith.addf %451, %450 : vector<2x128xf32>
    %453 = arith.divf %451, %452 : vector<2x128xf32>
    %454 = math.tanh %448 : vector<2x128xf32>
    %455 = vector.extract_strided_slice %453 {offsets = [0, 0], sizes = [2, 32], strides = [1, 1]} : vector<2x128xf32> to vector<2x32xf32>
    %456 = vector.extract_strided_slice %453 {offsets = [0, 32], sizes = [2, 32], strides = [1, 1]} : vector<2x128xf32> to vector<2x32xf32>
    %457 = vector.extract_strided_slice %454 {offsets = [0, 64], sizes = [2, 32], strides = [1, 1]} : vector<2x128xf32> to vector<2x32xf32>
    %458 = vector.extract_strided_slice %453 {offsets = [0, 96], sizes = [2, 32], strides = [1, 1]} : vector<2x128xf32> to vector<2x32xf32>
    %459 = arith.mulf %456, %405 : vector<2x32xf32>
    %460 = arith.mulf %455, %457 : vector<2x32xf32>
    %461 = arith.addf %459, %460 : vector<2x32xf32>
    %462 = math.tanh %461 : vector<2x32xf32>
    %463 = arith.mulf %458, %462 : vector<2x32xf32>
    %464 = tpu.concatenate %463, %426 in 1 : vector<2x32xf32>, vector<2x32xf32> -> vector<2x64xf32>
    %cst_89 = arith.constant dense<0.000000e+00> : vector<2x128xf32>
    %465 = tpu.matmul %464, %38, %cst_89 {dimension_numbers = #tpu.dot_dimension_numbers<[1], [0], [0], [1], [0, 0, 1, 1], [], []>} : vector<2x64xf32>, vector<64x128xf32>, vector<2x128xf32> -> vector<2x128xf32>
    %466 = vector.broadcast %39 : vector<1x128xf32> to vector<2x128xf32>
    %467 = arith.addf %465, %466 : vector<2x128xf32>
    %468 = arith.negf %467 : vector<2x128xf32>
    %469 = math.exp %468 : vector<2x128xf32>
    %cst_90 = arith.constant 1.000000e+00 : f32
    %470 = vector.broadcast %cst_90 : f32 to vector<2x128xf32>
    %471 = arith.addf %470, %469 : vector<2x128xf32>
    %472 = arith.divf %470, %471 : vector<2x128xf32>
    %473 = math.tanh %467 : vector<2x128xf32>
    %474 = vector.extract_strided_slice %472 {offsets = [0, 0], sizes = [2, 32], strides = [1, 1]} : vector<2x128xf32> to vector<2x32xf32>
    %475 = vector.extract_strided_slice %472 {offsets = [0, 32], sizes = [2, 32], strides = [1, 1]} : vector<2x128xf32> to vector<2x32xf32>
    %476 = vector.extract_strided_slice %473 {offsets = [0, 64], sizes = [2, 32], strides = [1, 1]} : vector<2x128xf32> to vector<2x32xf32>
    %477 = vector.extract_strided_slice %472 {offsets = [0, 96], sizes = [2, 32], strides = [1, 1]} : vector<2x128xf32> to vector<2x32xf32>
    %478 = arith.mulf %475, %424 : vector<2x32xf32>
    %479 = arith.mulf %474, %476 : vector<2x32xf32>
    %480 = arith.addf %478, %479 : vector<2x32xf32>
    %481 = math.tanh %480 : vector<2x32xf32>
    %482 = arith.mulf %477, %481 : vector<2x32xf32>
    %483 = tpu.concatenate %482, %445 in 1 : vector<2x32xf32>, vector<2x32xf32> -> vector<2x64xf32>
    %cst_91 = arith.constant dense<0.000000e+00> : vector<2x128xf32>
    %484 = tpu.matmul %483, %40, %cst_91 {dimension_numbers = #tpu.dot_dimension_numbers<[1], [0], [0], [1], [0, 0, 1, 1], [], []>} : vector<2x64xf32>, vector<64x128xf32>, vector<2x128xf32> -> vector<2x128xf32>
    %485 = vector.broadcast %41 : vector<1x128xf32> to vector<2x128xf32>
    %486 = arith.addf %484, %485 : vector<2x128xf32>
    %487 = arith.negf %486 : vector<2x128xf32>
    %488 = math.exp %487 : vector<2x128xf32>
    %cst_92 = arith.constant 1.000000e+00 : f32
    %489 = vector.broadcast %cst_92 : f32 to vector<2x128xf32>
    %490 = arith.addf %489, %488 : vector<2x128xf32>
    %491 = arith.divf %489, %490 : vector<2x128xf32>
    %492 = math.tanh %486 : vector<2x128xf32>
    %493 = vector.extract_strided_slice %491 {offsets = [0, 0], sizes = [2, 32], strides = [1, 1]} : vector<2x128xf32> to vector<2x32xf32>
    %494 = vector.extract_strided_slice %491 {offsets = [0, 32], sizes = [2, 32], strides = [1, 1]} : vector<2x128xf32> to vector<2x32xf32>
    %495 = vector.extract_strided_slice %492 {offsets = [0, 64], sizes = [2, 32], strides = [1, 1]} : vector<2x128xf32> to vector<2x32xf32>
    %496 = vector.extract_strided_slice %491 {offsets = [0, 96], sizes = [2, 32], strides = [1, 1]} : vector<2x128xf32> to vector<2x32xf32>
    %497 = arith.mulf %494, %443 : vector<2x32xf32>
    %498 = arith.mulf %493, %495 : vector<2x32xf32>
    %499 = arith.addf %497, %498 : vector<2x32xf32>
    %500 = math.tanh %499 : vector<2x32xf32>
    %501 = arith.mulf %496, %500 : vector<2x32xf32>
    %c0_93 = arith.constant 0 : index
    %c0_94 = arith.constant 0 : index
    %c0_95 = arith.constant 0 : index
    %502 = vector.load %arg17[%c0_93, %c0_94, %c0_95] : memref<3x2x32xf32, #tpu.memory_space<vmem>>, vector<1x2x32xf32>
    %503 = vector.shape_cast %502 : vector<1x2x32xf32> to vector<2x32xf32>
    %504 = vector.shape_cast %463 : vector<2x32xf32> to vector<1x2x32xf32>
    tpu.vector_store %arg17[%c0_93, %c0_94, %c0_95], %504 {strides = array<i32>} : memref<3x2x32xf32, #tpu.memory_space<vmem>>, vector<1x2x32xf32>,
    %c0_96 = arith.constant 0 : index
    %c0_97 = arith.constant 0 : index
    %c0_98 = arith.constant 0 : index
    %505 = vector.load %arg18[%c0_96, %c0_97, %c0_98] : memref<3x2x32xf32, #tpu.memory_space<vmem>>, vector<1x2x32xf32>
    %506 = vector.shape_cast %505 : vector<1x2x32xf32> to vector<2x32xf32>
    %507 = vector.shape_cast %461 : vector<2x32xf32> to vector<1x2x32xf32>
    tpu.vector_store %arg18[%c0_96, %c0_97, %c0_98], %507 {strides = array<i32>} : memref<3x2x32xf32, #tpu.memory_space<vmem>>, vector<1x2x32xf32>,
    %c1_99 = arith.constant 1 : index
    %c0_100 = arith.constant 0 : index
    %c0_101 = arith.constant 0 : index
    %508 = vector.load %arg17[%c1_99, %c0_100, %c0_101] : memref<3x2x32xf32, #tpu.memory_space<vmem>>, vector<1x2x32xf32>
    %509 = vector.shape_cast %508 : vector<1x2x32xf32> to vector<2x32xf32>
    %510 = vector.shape_cast %482 : vector<2x32xf32> to vector<1x2x32xf32>
    tpu.vector_store %arg17[%c1_99, %c0_100, %c0_101], %510 {strides = array<i32>} : memref<3x2x32xf32, #tpu.memory_space<vmem>>, vector<1x2x32xf32>,
    %c1_102 = arith.constant 1 : index
    %c0_103 = arith.constant 0 : index
    %c0_104 = arith.constant 0 : index
    %511 = vector.load %arg18[%c1_102, %c0_103, %c0_104] : memref<3x2x32xf32, #tpu.memory_space<vmem>>, vector<1x2x32xf32>
    %512 = vector.shape_cast %511 : vector<1x2x32xf32> to vector<2x32xf32>
    %513 = vector.shape_cast %480 : vector<2x32xf32> to vector<1x2x32xf32>
    tpu.vector_store %arg18[%c1_102, %c0_103, %c0_104], %513 {strides = array<i32>} : memref<3x2x32xf32, #tpu.memory_space<vmem>>, vector<1x2x32xf32>,
    %c2_105 = arith.constant 2 : index
    %c0_106 = arith.constant 0 : index
    %c0_107 = arith.constant 0 : index
    %514 = vector.load %arg17[%c2_105, %c0_106, %c0_107] : memref<3x2x32xf32, #tpu.memory_space<vmem>>, vector<1x2x32xf32>
    %515 = vector.shape_cast %514 : vector<1x2x32xf32> to vector<2x32xf32>
    %516 = vector.shape_cast %501 : vector<2x32xf32> to vector<1x2x32xf32>
    tpu.vector_store %arg17[%c2_105, %c0_106, %c0_107], %516 {strides = array<i32>} : memref<3x2x32xf32, #tpu.memory_space<vmem>>, vector<1x2x32xf32>,
    %c2_108 = arith.constant 2 : index
    %c0_109 = arith.constant 0 : index
    %c0_110 = arith.constant 0 : index
    %517 = vector.load %arg18[%c2_108, %c0_109, %c0_110] : memref<3x2x32xf32, #tpu.memory_space<vmem>>, vector<1x2x32xf32>
    %518 = vector.shape_cast %517 : vector<1x2x32xf32> to vector<2x32xf32>
    %519 = vector.shape_cast %499 : vector<2x32xf32> to vector<1x2x32xf32>
    tpu.vector_store %arg18[%c2_108, %c0_109, %c0_110], %519 {strides = array<i32>} : memref<3x2x32xf32, #tpu.memory_space<vmem>>, vector<1x2x32xf32>,
    %c0_111 = arith.constant 0 : index
    %c0_112 = arith.constant 0 : index
    %520 = vector.load %arg14[%c0_111, %c0_112] : memref<32x4xf32, #tpu.memory_space<vmem>>, vector<32x4xf32>
    %cst_113 = arith.constant dense<0.000000e+00> : vector<2x4xf32>
    %521 = tpu.matmul %501, %520, %cst_113 {dimension_numbers = #tpu.dot_dimension_numbers<[1], [0], [0], [1], [0, 0, 1, 1], [], []>} : vector<2x32xf32>, vector<32x4xf32>, vector<2x4xf32> -> vector<2x4xf32>
    %c0_114 = arith.constant 0 : index
    %c0_115 = arith.constant 0 : index
    %522 = vector.load %arg15[%c0_114, %c0_115] : memref<1x4xf32, #tpu.memory_space<vmem>>, vector<1x4xf32>
    %523 = vector.broadcast %522 : vector<1x4xf32> to vector<2x4xf32>
    %524 = arith.addf %521, %523 : vector<2x4xf32>
    %cst_116 = arith.constant dense<0xFF800000> : vector<2xf32>
    %525 = vector.multi_reduction <maximumf>, %524, %cst_116 [1] : vector<2x4xf32> to vector<2xf32>
    %526 = vector.shape_cast %525 : vector<2xf32> to vector<2x1xf32>
    %527 = vector.broadcast %526 : vector<2x1xf32> to vector<2x4xf32>
    %528 = arith.subf %524, %527 : vector<2x4xf32>
    %529 = math.exp %528 : vector<2x4xf32>
    %cst_117 = arith.constant dense<0.000000e+00> : vector<2xf32>
    %530 = vector.multi_reduction <add>, %529, %cst_117 [1] : vector<2x4xf32> to vector<2xf32>
    %531 = vector.shape_cast %530 : vector<2xf32> to vector<2x1xf32>
    %532 = tpu.reciprocal %531 {approx = true} : vector<2x1xf32> -> vector<2x1xf32>
    %533 = vector.broadcast %532 : vector<2x1xf32> to vector<2x4xf32>
    %534 = arith.mulf %529, %533 : vector<2x4xf32>
    %c0_118 = arith.constant 0 : index
    %c0_119 = arith.constant 0 : index
    %535 = vector.load %arg16[%c0_118, %c0_119] : memref<2x4xf32, #tpu.memory_space<vmem>>, vector<2x4xf32>
    tpu.vector_store %arg16[%c0_118, %c0_119], %534 {strides = array<i32>} : memref<2x4xf32, #tpu.memory_space<vmem>>, vector<2x4xf32>,
    return
  }
}

</mosaic_0001>

<bundles_post_ra>
// kernel: bert_plus_rnn_forward.1
= control target key start
LH: loop header
LB: loop body
LE: loop exit
PB: predicated region body
PF: predicated region fallthrough
CT: control target
= control target key end

     0   :  { %s5570_s0 = inlined_call_operand.vmem [shape: s32[16,1], index: 0, kind: input, shape index: {}]   ;;  %s5571_s1 = inlined_call_operand.vmem [shape: f32[64,64], index: 1, kind: input, shape index: {}]   ;;  %s5572_s2 = inlined_call_operand.vmem [shape: f32[16,64], index: 2, kind: input, shape index: {}]   ;;  %s5573_s3 = inlined_call_operand.hbm [shape: f32[1,64], index: 3, kind: input, shape index: {}]   ;;  %s5574_s4 = inlined_call_operand.hbm [shape: f32[1,64], index: 4, kind: input, shape index: {}]   ;;  %s5575_s5 = inlined_call_operand.vmem [shape: f32[3,2,32], index: 5, kind: input, shape index: {}]   ;;  %s5576_s6 = inlined_call_operand.vmem [shape: f32[3,2,32], index: 6, kind: input, shape index: {}]   ;;  %s5577_s7 = inlined_call_operand.hbm [shape: f32[64,128], index: 7, kind: input, shape index: {}]   ;;  %s5578_s8 = inlined_call_operand.vmem [shape: f32[32,128], index: 8, kind: input, shape index: {}]   ;;  %s5579_s9 = inlined_call_operand.hbm [shape: f32[1,128], index: 9, kind: input, shape index: {}]   ;;  %s5580_s10 = inlined_call_operand.hbm [shape: f32[64,128], index: 10, kind: input, shape index: {}]   ;;  %s5581_s11 = inlined_call_operand.hbm [shape: f32[1,128], index: 11, kind: input, shape index: {}]   ;;  %s5582_s12 = inlined_call_operand.hbm [shape: f32[64,128], index: 12, kind: input, shape index: {}]   ;;  %s5583_s13 = inlined_call_operand.hbm [shape: f32[1,128], index: 13, kind: input, shape index: {}]   ;;  %s5584_s14 = inlined_call_operand.vmem [shape: f32[32,4], index: 14, kind: input, shape index: {}]   ;;  %s5585_s15 = inlined_call_operand.hbm [shape: f32[1,4], index: 15, kind: input, shape index: {}]   ;;  %s5586_s16 = inlined_call_operand.hbm [shape: f32[2,4], index: 16, kind: output, shape index: {0}]   ;;  %s5587_s17 = inlined_call_operand.hbm [shape: f32[3,2,32], index: 17, kind: output, shape index: {1}]   ;;  %s5588_s18 = inlined_call_operand.hbm [shape: f32[3,2,32], index: 18, kind: output, shape index: {2}]  }
   0x1   :  { %5592 = sst [smem:[#allocation28_spill]] %s5570_s0 }
   0x2   :  { %5593 = sst [smem:[#allocation29_spill]] %s5571_s1 }
   0x3   :  { %5594 = sst [smem:[#allocation30_spill]] %s5572_s2 }
   0x4   :  { %24 = vsyncpa [#allocation3], 0 }
   0x5   :  { %25 = vsyncpa [#allocation6], 0 }
   0x6   :  { %26 = vsyncpa [#allocation9], 0 }
   0x7   :  { %27 = vsyncpa [#allocation12], 0 }
   0x8   :  { %28 = vsyncpa [#allocation15], 0 }
   0x9   :  { %29 = vsyncpa [#allocation4], 0 }
   0xa   :  { %30 = vsyncpa [#allocation19], 0  ;;  %s4676_s27 = smov [#allocation5]   ;;  %s4677_s29 = smov [#allocation8]  }
   0xb   :  { %s53_s28 = sshll.u32 %s4676_s27, 4  ;;  %s81_s30 = sshll.u32 %s4677_s29, 4  ;;  %s54_s28 = int_to_ptr.vmem [resolvable:$true] %s53_s28  ;;  %s82_s30 = int_to_ptr.vmem [resolvable:$true] %s81_s30 }
   0xc   :  { %s4398_s1 = scalar_lea.hbm %s5574_s4, 16 }
   0xd   :  { %p4399_p0 = scmp.ne.s32.totalorder %s5574_s4, %s4398_s1  ;;  %p4402_p1 = scmp.lt.u32.totalorder %s4398_s1, %s5574_s4 }
   0xf   :  { %p4404_p2 = pnand %p4402_p1, %p4399_p0 }
  0x11   :  { %4407 = shalt.err (!%p4404_p2)
}
  0x12   :  { %s4408_s23 = scalar_lea.vmem %s54_s28, 16  ;;  %s4412_s24 = scalar_lea.vmem %s54_s28, 32 }
  0x13   :  { %p4409_p3 = scmp.ne.s32.totalorder %s54_s28, %s4408_s23  ;;  %p4413_p4 = scmp.lt.s32.totalorder %s54_s28, %s54_s28 }
  0x14   :  { %p4414_p5 = scmp.lt.s32.totalorder %s4412_s24, %s4408_s23 }
  0x16   :  { %p4415_p6 = por %p4414_p5, %p4413_p4 }
  0x18   :  { %p4416_p7 = pnand %p4415_p6, %p4409_p3 }
  0x1a   :  { %4419 = shalt.err (!%p4416_p7)
}
  0x1b   :  { %56 = dma.hbm_to_vmem [thread:$0]  %s5574_s4, 16, %s54_s28, [#allocation6]  }
  0x1c   :  { %s4420_s0 = scalar_lea.hbm %s5579_s9, 16 }
  0x1d   :  { %p4421_p8 = scmp.ne.s32.totalorder %s5579_s9, %s4420_s0  ;;  %p4424_p9 = scmp.lt.u32.totalorder %s4420_s0, %s5579_s9 }
  0x1f   :  { %p4426_p10 = pnand %p4424_p9, %p4421_p8 }
  0x21   :  { %4429 = shalt.err (!%p4426_p10)
}
  0x22   :  { %s4430_s22 = scalar_lea.vmem %s82_s30, 16  ;;  %s4434_s2 = scalar_lea.vmem %s82_s30, 32 }
  0x23   :  { %p4431_p11 = scmp.ne.s32.totalorder %s82_s30, %s4430_s22  ;;  %p4435_p12 = scmp.lt.s32.totalorder %s82_s30, %s82_s30 }
  0x24   :  { %p4436_p13 = scmp.lt.s32.totalorder %s4434_s2, %s4430_s22 }
  0x26   :  { %p4437_p0 = por %p4436_p13, %p4435_p12 }
  0x28   :  { %p4438_p1 = pnand %p4437_p0, %p4431_p11 }
  0x2a   :  { %4441 = shalt.err (!%p4438_p1)
}
  0x2b   :  { %84 = dma.hbm_to_vmem [thread:$0]  %s5579_s9, 16, %s82_s30, [#allocation9]  }
  0x2c   :  { %s4678_s23 = smov [#allocation11]   ;;  %s4679_s25 = smov [#allocation14]  }
  0x2d   :  { %s103_s24 = sshll.u32 %s4678_s23, 4  ;;  %s125_s26 = sshll.u32 %s4679_s25, 4  ;;  %s104_s24 = int_to_ptr.vmem [resolvable:$true] %s103_s24  ;;  %s126_s26 = int_to_ptr.vmem [resolvable:$true] %s125_s26 }
  0x2e   :  { %s4442_s0 = scalar_lea.hbm %s5581_s11, 16 }
  0x2f   :  { %p4443_p2 = scmp.ne.s32.totalorder %s5581_s11, %s4442_s0  ;;  %p4446_p3 = scmp.lt.u32.totalorder %s4442_s0, %s5581_s11 }
  0x31   :  { %p4448_p4 = pnand %p4446_p3, %p4443_p2 }
  0x33   :  { %4451 = shalt.err (!%p4448_p4)
}
  0x34   :  { %s4452_s9 = scalar_lea.vmem %s104_s24, 16  ;;  %s4456_s30 = scalar_lea.vmem %s104_s24, 32 }
  0x35   :  { %p4453_p5 = scmp.ne.s32.totalorder %s104_s24, %s4452_s9  ;;  %p4457_p6 = scmp.lt.s32.totalorder %s104_s24, %s104_s24 }
  0x36   :  { %p4458_p7 = scmp.lt.s32.totalorder %s4456_s30, %s4452_s9 }
  0x38   :  { %p4459_p8 = por %p4458_p7, %p4457_p6 }
  0x3a   :  { %p4460_p9 = pnand %p4459_p8, %p4453_p5 }
  0x3c   :  { %4463 = shalt.err (!%p4460_p9)
}
  0x3d   :  { %106 = dma.hbm_to_vmem [thread:$0]  %s5581_s11, 16, %s104_s24, [#allocation12]  }
  0x3e   :  { %s4464_s23 = scalar_lea.hbm %s5583_s13, 16 }
  0x3f   :  { %p4465_p10 = scmp.ne.s32.totalorder %s5583_s13, %s4464_s23  ;;  %p4468_p11 = scmp.lt.u32.totalorder %s4464_s23, %s5583_s13 }
  0x41   :  { %p4470_p12 = pnand %p4468_p11, %p4465_p10 }
  0x43   :  { %4473 = shalt.err (!%p4470_p12)
}
  0x44   :  { %s4474_s19 = scalar_lea.vmem %s126_s26, 16  ;;  %s4478_s1 = scalar_lea.vmem %s126_s26, 32 }
  0x45   :  { %p4475_p13 = scmp.ne.s32.totalorder %s126_s26, %s4474_s19  ;;  %p4479_p0 = scmp.lt.s32.totalorder %s126_s26, %s126_s26 }
  0x46   :  { %p4480_p1 = scmp.lt.s32.totalorder %s4478_s1, %s4474_s19 }
  0x48   :  { %p4481_p2 = por %p4480_p1, %p4479_p0 }
  0x4a   :  { %p4482_p3 = pnand %p4481_p2, %p4475_p13 }
  0x4c   :  { %4485 = shalt.err (!%p4482_p3)
}
  0x4d   :  { %128 = dma.hbm_to_vmem [thread:$0]  %s5583_s13, 16, %s126_s26, [#allocation15]  }
  0x4e   :  { %s4680_s20 = smov [#allocation2]   ;;  %s4681_s9 = smov [#allocation7]  }
  0x4f   :  { %s43_s21 = sshll.u32 %s4680_s20, 4  ;;  %s66_s30 = sshll.u32 %s4681_s9, 4  ;;  %s44_s21 = int_to_ptr.vmem [resolvable:$true] %s43_s21  ;;  %s4841_s30 = int_to_ptr.vmem [resolvable:$true] %s66_s30 }
  0x50   :  { %s4486_s4 = scalar_lea.hbm %s5573_s3, 16 }
  0x51   :  { %p4487_p4 = scmp.ne.s32.totalorder %s5573_s3, %s4486_s4  ;;  %p4490_p5 = scmp.lt.u32.totalorder %s4486_s4, %s5573_s3 }
  0x53   :  { %p4492_p6 = pnand %p4490_p5, %p4487_p4 }
  0x55   :  { %4495 = shalt.err (!%p4492_p6)
}
  0x56   :  { %s4496_s13 = scalar_lea.vmem %s44_s21, 16  ;;  %s4500_s26 = scalar_lea.vmem %s44_s21, 32 }
  0x57   :  { %p4497_p7 = scmp.ne.s32.totalorder %s44_s21, %s4496_s13  ;;  %p4501_p8 = scmp.lt.s32.totalorder %s44_s21, %s44_s21 }
  0x58   :  { %p4502_p9 = scmp.lt.s32.totalorder %s4500_s26, %s4496_s13 }
  0x5a   :  { %p4503_p10 = por %p4502_p9, %p4501_p8 }
  0x5c   :  { %p4504_p11 = pnand %p4503_p10, %p4497_p7 }
  0x5e   :  { %4507 = shalt.err (!%p4504_p11)
}
  0x5f   :  { %46 = dma.hbm_to_vmem [thread:$0]  %s5573_s3, 16, %s44_s21, [#allocation3]  }
  0x60   :  { %s4508_s11 = scalar_lea.hbm %s5577_s7, 1024 }
  0x61   :  { %p4509_p12 = scmp.ne.s32.totalorder %s5577_s7, %s4508_s11  ;;  %p4512_p13 = scmp.lt.u32.totalorder %s4508_s11, %s5577_s7 }
  0x63   :  { %p4514_p0 = pnand %p4512_p13, %p4509_p12 }
  0x65   :  { %4517 = shalt.err (!%p4514_p0)
}
  0x66   :  { %s4518_s2 = scalar_lea.vmem %s4841_s30, 1024  ;;  %p4523_p2 = scmp.lt.s32.totalorder %s4841_s30, %s4841_s30 }
  0x67   :  { %p4519_p1 = scmp.ne.s32.totalorder %s4841_s30, %s4518_s2  ;;  %p4524_p3 = scmp.lt.s32.totalorder %s4518_s2, %s4518_s2 }
  0x69   :  { %p4525_p4 = por %p4524_p3, %p4523_p2 }
  0x6b   :  { %p4526_p5 = pnand %p4525_p4, %p4519_p1 }
  0x6d   :  { %4529 = shalt.err (!%p4526_p5)
}
  0x6e   :  { %s4682_s3 = smov 128   ;;  %s4683_s21 = smov 8  }
  0x6f   :  { %72 = dma.hbm_to_vmem [thread:$0]  %s5577_s7, 1024, %s4841_s30, [#allocation6], %s4682_s3, %s4682_s3, %s4683_s21  }
  0x70   :  { %s4684_s23 = smov [#allocation10]   ;;  %s4685_s27 = smov [#allocation13]  }
  0x71   :  { %s90_s25 = sshll.u32 %s4684_s23, 4  ;;  %s112_s13 = sshll.u32 %s4685_s27, 4  ;;  %s91_s25 = int_to_ptr.vmem [resolvable:$true] %s90_s25  ;;  %s4875_s13 = int_to_ptr.vmem [resolvable:$true] %s112_s13 }
  0x72   :  { %s4530_s0 = scalar_lea.hbm %s5580_s10, 1024 }
  0x73   :  { %p4531_p6 = scmp.ne.s32.totalorder %s5580_s10, %s4530_s0  ;;  %p4534_p7 = scmp.lt.u32.totalorder %s4530_s0, %s5580_s10 }
  0x75   :  { %p4536_p8 = pnand %p4534_p7, %p4531_p6 }
  0x77   :  { %4539 = shalt.err (!%p4536_p8)
}
  0x78   :  { %s4540_s7 = scalar_lea.vmem %s91_s25, 1024  ;;  %p4545_p10 = scmp.lt.s32.totalorder %s91_s25, %s91_s25 }
  0x79   :  { %p4541_p9 = scmp.ne.s32.totalorder %s91_s25, %s4540_s7  ;;  %p4546_p11 = scmp.lt.s32.totalorder %s4540_s7, %s4540_s7 }
  0x7b   :  { %p4547_p12 = por %p4546_p11, %p4545_p10 }
  0x7d   :  { %p4548_p13 = pnand %p4547_p12, %p4541_p9 }
  0x7f   :  { %4551 = shalt.err (!%p4548_p13)
}
  0x80   :  { %96 = dma.hbm_to_vmem [thread:$0]  %s5580_s10, 1024, %s91_s25, [#allocation9], %s4682_s3, %s4682_s3, %s4683_s21  }
  0x81   :  { %s4552_s2 = scalar_lea.hbm %s5582_s12, 1024 }
  0x82   :  { %p4553_p0 = scmp.ne.s32.totalorder %s5582_s12, %s4552_s2  ;;  %p4556_p1 = scmp.lt.u32.totalorder %s4552_s2, %s5582_s12 }
  0x84   :  { %p4558_p2 = pnand %p4556_p1, %p4553_p0 }
  0x86   :  { %4561 = shalt.err (!%p4558_p2)
}
  0x87   :  { %s4562_s26 = scalar_lea.vmem %s4875_s13, 1024  ;;  %p4567_p4 = scmp.lt.s32.totalorder %s4875_s13, %s4875_s13 }
  0x88   :  { %p4563_p3 = scmp.ne.s32.totalorder %s4875_s13, %s4562_s26  ;;  %p4568_p5 = scmp.lt.s32.totalorder %s4562_s26, %s4562_s26 }
  0x8a   :  { %p4569_p6 = por %p4568_p5, %p4567_p4 }
  0x8c   :  { %p4570_p7 = pnand %p4569_p6, %p4563_p3 }
  0x8e   :  { %4573 = shalt.err (!%p4570_p7)
}
  0x8f   :  { %118 = dma.hbm_to_vmem [thread:$0]  %s5582_s12, 1024, %s4875_s13, [#allocation12], %s4682_s3, %s4682_s3, %s4683_s21  }
  0x90   :  { %s4686_s29 = smov [#allocation16]   ;;  %s4574_s11 = scalar_lea.hbm %s5585_s15, 16 }
  0x91   :  { %s137_s0 = sshll.u32 %s4686_s29, 4  ;;  %p4575_p8 = scmp.ne.s32.totalorder %s5585_s15, %s4574_s11  ;;  %s138_s0 = int_to_ptr.vmem [resolvable:$true] %s137_s0 }
  0x92   :  { %p4578_p9 = scmp.lt.u32.totalorder %s4574_s11, %s5585_s15 }
  0x94   :  { %p4580_p10 = pnand %p4578_p9, %p4575_p8 }
  0x96   :  { %4583 = shalt.err (!%p4580_p10)
}
  0x97   :  { %s4584_s9 = scalar_lea.vmem %s138_s0, 16  ;;  %s4588_s12 = scalar_lea.vmem %s138_s0, 32 }
  0x98   :  { %p4585_p11 = scmp.ne.s32.totalorder %s138_s0, %s4584_s9  ;;  %p4589_p12 = scmp.lt.s32.totalorder %s138_s0, %s138_s0 }
  0x99   :  { %p4590_p13 = scmp.lt.s32.totalorder %s4588_s12, %s4584_s9 }
  0x9b   :  { %p4591_p0 = por %p4590_p13, %p4589_p12 }
  0x9d   :  { %p4592_p1 = pnand %p4591_p0, %p4585_p11 }
  0x9f   :  { %4595 = shalt.err (!%p4592_p1)
}
  0xa0   :  { %140 = dma.hbm_to_vmem [thread:$0]  %s5585_s15, 16, %s138_s0, [#allocation15]  }
  0xa1   :  { %4662 = dma.done.wait [#allocation3], 16  }
  0xa2   :  { %4663 = vsyncadd [#allocation3], 4294967280 }
  0xa3   :  { %4664 = dma.done.wait [#allocation6], 1040  }
  0xa4   :  { %4665 = vsyncadd [#allocation6], 4294966256 }
  0xa5   :  { %4666 = dma.done.wait [#allocation9], 1040  }
  0xa6   :  { %4667 = vsyncadd [#allocation9], 4294966256 }
  0xa7   :  { %4668 = dma.done.wait [#allocation12], 1040  }
  0xa8   :  { %4669 = vsyncadd [#allocation12], 4294966256 }
  0xa9   :  { %4670 = dma.done.wait [#allocation15], 32  }
  0xaa   :  { %4671 = vsyncadd [#allocation15], 4294967264  ;;  %v4687_v0 = vmov 0   ;;  %s5595_s2 = sld [smem:[#allocation28_spill]]  ;;  %s5596_s23 = sld [smem:[#allocation29_spill]]  ;;  %v170_v15 = vlaneseq  ;;  %vm194_vm0 = vcmask 523264  }
  0xab   :  { %4195 = vset.pattern.permute.xlu0 %v4687_v0  ;;  %v4688_v18 = vmov 0.0   ;;  %s5597_s13 = sld [smem:[#allocation30_spill]]  ;;  %v321_v40 = vld [vmem:[#allocation7] sm:$0xff]  ;;  %v322_v41 = vld [vmem:[#allocation7 + $0x8] sm:$0xff]  ;;  %v323_v43 = vld [vmem:[#allocation7 + $0x10] sm:$0xff]  ;;  %v4689_v48 = vmov 0.0|0.0  }
  0xac   :  { %v171_v16 = vand.u32 127, %v170_v15  ;;  %v3911_v42 = vpack.c.bf16 %v322_v41, %v321_v40  ;;  %v324_v44 = vld [vmem:[#allocation7 + $0x18] sm:$0xff]  ;;  %v325_v45 = vld [vmem:[#allocation7 + $0x20] sm:$0xff]  ;;  %v326_v47 = vld [vmem:[#allocation7 + $0x28] sm:$0xff]  ;;  %vm449_vm3 = vcmask 261120   ;;  %vm4690_vm4 = vmmov 0  }
  0xad   :  { %v3915_v46 = vpack.c.bf16 %v324_v44, %v323_v43  ;;  %v417_v49 = vld [vmem:[%s5578_s8] sm:$0xff]  ;;  %v418_v50 = vld [vmem:[%s5578_s8 + $0x8] sm:$0xff]  ;;  %v3919_v52 = vpack.c.bf16 %v326_v47, %v325_v45  ;;  %v327_v53 = vld [vmem:[#allocation7 + $0x30] sm:$0xff]  ;;  %s4692_s11 = smov 32   ;;  %vm3006_vm5 = vcmask 261126   ;;  %vm3014_vm6 = vcmask 254976  }
  0xae   :  { %3912 = vmatprep.subr.bf16.mxu1 %v3911_v42  ;;  %v4975_v51 = vpack.c.bf16 %v418_v50, %v417_v49  ;;  %v328_v54 = vld [vmem:[#allocation7 + $0x38] sm:$0xff]  ;;  %v419_v56 = vld [vmem:[%s5578_s8 + $0x10] sm:$0xff]  ;;  %vm3117_vm7 = vcmask 25600   ;;  %s4694_s15 = smov [#allocation18]  }
  0xaf   :  { %3914 = vmatpush3.bf16.msra.mxu1 %v3911_v42  ;;  %v3923_v55 = vpack.c.bf16 %v328_v54, %v327_v53  ;;  %v420_v57 = vld [vmem:[%s5578_s8 + $0x18] sm:$0xff]  ;;  %v439_v59 = vld [vmem:[%s5575_s5] sm:$0x3]  ;;  %s4691_s8 = smov 64   ;;  %v426_v40 = vld [vmem:[#allocation10 + $0x28] sm:$0xff]  ;;  %s3145_s27 = sshll.u32 %s4694_s15, 4  ;;  %s3146_s27 = int_to_ptr.vmem [resolvable:$true] %s3145_s27 }
  0xb0   :  { %v168_v1 = vld [vmem:[%s5595_s2] sm:$0xff]  ;;  %v185_v3 = vld [vmem:[%s5596_s23 + $0x8] sm:$0xff]  ;;  %v186_v4 = vld [vmem:[%s5596_s23 + $0x10] sm:$0xff]  ;;  %3916 = vmatprep.subr.bf16.mxu1 %v3915_v46  ;;  %v4985_v58 = vpack.c.bf16 %v420_v57, %v419_v56  ;;  %s4596_s26 = scalar_lea.vmem %s3146_s27, 96  ;;  %p4601_p3 = scmp.lt.s32.totalorder %s3146_s27, %s3146_s27 }
  0xb1   :  { %v184_v2 = vld [vmem:[%s5596_s23] sm:$0xff]  ;;  %173 = vperm.xlu0 %4195, %v168_v1   ;;  %v187_v5 = vld [vmem:[%s5596_s23 + $0x18] sm:$0xff]  ;;  %v169_v6 = vld [vmem:[%s5595_s2 + $0x8] sm:$0xff]  ;;  %p4597_p2 = scmp.ne.s32.totalorder %s3146_s27, %s4596_s26  ;;  %p4602_p4 = scmp.lt.s32.totalorder %s4596_s26, %s4596_s26 }
  0xb2   :  { %v3895_v7 = vpack.c.bf16 %v185_v3, %v184_v2  ;;  %v3899_v8 = vpack.c.bf16 %v187_v5, %v186_v4  ;;  %v188_v9 = vld [vmem:[%s5596_s23 + $0x20] sm:$0xff]  ;;  %v189_v10 = vld [vmem:[%s5596_s23 + $0x28] sm:$0xff]  ;;  %v190_v12 = vld [vmem:[%s5596_s23 + $0x30] sm:$0xff] }
  0xb3   :  { %v3903_v11 = vpack.c.bf16 %v189_v10, %v188_v9  ;;  %v191_v13 = vld [vmem:[%s5596_s23 + $0x38] sm:$0xff]  ;;  %v192_v22 = vld [vmem:[%s5597_s13] sm:$0xff]  ;;  %v193_v24 = vld [vmem:[%s5597_s13 + $0x8] sm:$0xff]  ;;  %3918 = vmatpush3.bf16.msra.mxu1 %v3915_v46  ;;  %p4603_p5 = por %p4602_p4, %p4601_p3 }
  0xb4   :  { %3896 = vmatprep.subr.bf16.mxu0 %v3895_v7  ;;  %v3907_v14 = vpack.c.bf16 %v191_v13, %v190_v12  ;;  %3920 = vmatprep.subr.bf16.mxu1 %v3919_v52  ;;  %v3184_v3 = vld [vmem:[#allocation2] ss:$0 sm:$0xff]  ;;  %v3185_v5 = vld [vmem:[#allocation5] ss:$0 sm:$0xff]  ;;  %v427_v42 = vld [vmem:[#allocation10 + $0x30] sm:$0xff] }
  0xb5   :  { %176 = vperm.xlu0 %4195, %v169_v6   ;;  %3898 = vmatpush3.bf16.msra.mxu0 %v3895_v7  ;;  %v428_v43 = vld [vmem:[#allocation10 + $0x38] sm:$0xff]  ;;  %v5049_v54 = vld [vmem:[#allocation11] ss:$0 sm:$0xff]  ;;  %p4604_p6 = pnand %p4603_p5, %p4597_p2 }
  0xb6   :  { %3900 = vmatprep.subr.bf16.mxu0 %v3899_v8  ;;  %v5028_v45 = vpack.c.bf16 %v428_v43, %v427_v42  ;;  %v3189_v46 = vld [vmem:[%s5575_s5 + $0x2] sm:$0x3] }
  0xb7   :  { %3922 = vmatpush3.bf16.msra.mxu1 %v3919_v52 }
  0xb8   :  { %3924 = vmatprep.subr.bf16.mxu1 %v3923_v55 }
  0xb9   :  { %3902 = vmatpush3.bf16.msra.mxu0 %v3899_v8 }
  0xba   :  { %3904 = vmatprep.subr.bf16.mxu0 %v3903_v11 }
  0xbb   :  { %3926 = vmatpush3.bf16.msra.mxu1 %v3923_v55 }
  0xbc   :  { %3933 = vmatprep.subr.bf16.mxu1 %v4689_v48 }
  0xbd   :  { %3906 = vmatpush3.bf16.msra.mxu0 %v3903_v11 }
  0xbe   :  { %3908 = vmatprep.subr.bf16.mxu0 %v3907_v14 }
  0xc1   :  { %3910 = vmatpush3.bf16.msra.mxu0 %v3907_v14  ;;  %v3186_v14 = vld [vmem:[#allocation8] ss:$0 sm:$0xff] }
  0xc2   :  { %3927 = vmatprep.subr.bf16.mxu0 %v4689_v48 }
 0x130   :  { %v174_v17 = vpop.permute.xlu0 %173 }
 0x131   :  { %vm178_vm1 = vcmp.eq.s32.totalorder %v174_v17, %v171_v16 }
 0x132   :  { %v3180_v19 = vsel %vm178_vm1, 1.0, %v4688_v18 }
 0x133   :  { %3470 = vmatprep.mubr.msk.f32.mxu0 %vm194_vm0, %v3180_v19 }
 0x134   :  { %v177_v20 = vpop.permute.xlu0 %176 }
 0x135   :  { %vm179_vm2 = vcmp.eq.s32.totalorder %v177_v20, %v171_v16 }
 0x136   :  { %v3181_v21 = vsel %vm179_vm2, 1.0, %v4688_v18 }
 0x137   :  { %3471 = vmatmul.mubr.msk.f32.vlgmr.msra.gmra.mrb[0].mxu0 %vm194_vm0, %v3181_v21 }
 0x138   :  { %3929 = vmatpush3.bf16.msra.mxu0 %v4975_v51  ;;  %3500 = vmatprep.mubr.msk.f32.mxu0 %vm4690_vm4, %v4688_v18 }
 0x139   :  { %3930 = vmatprep.subr.bf16.mxu0 %v4689_v48 }
 0x13c   :  { %3932 = vmatpush3.bf16.msra.mxu0 %v4985_v58 }
 0x13d   :  { %3945 = vmatprep.subr.bf16.mxu0 %v4689_v48 }
 0x13f   :  { %3501 = vmatmul.mubr.msk.f32.vlgmr.msra.gmra.mrb[2].mxu0 %vm449_vm3, %v439_v59 }
 0x140   :  { %3538 = vmatprep.mubr.msk.f32.mxu0 %vm4690_vm4, %v4688_v18 }
 0x20a   :  { %v3472_v23 = vpop.f32.mrb[0].mxu0 }
 0x20b   :  { %v267_v25 = vpop.f32.mrb[1].mxu0  ;;  %v273_v27 = vadd.f32 %v3472_v23, %v193_v24 }
 0x20c   :  { %v268_v26 = vadd.f32 %v267_v25, %v192_v22  ;;  %v444_v22 = vld [vmem:[%s5576_s6] sm:$0x3] }
 0x20d   :  { %v279_v29 = vsel %vm194_vm0, %v273_v27, 0.0 }
 0x20e   :  { %v276_v28 = vsel %vm194_vm0, %v268_v26, 0.0 }
 0x20f   :  { %277 = vadd.xlane.f32.xlu1 %v276_v28 }
 0x212   :  { %v519_v12 = vpop.f32.mrb[2].mxu0 }
 0x213   :  { %280 = vadd.xlane.f32.xlu1 %v279_v29  ;;  %v3502_v13 = vpop.f32.mrb[3].mxu0 }
 0x29c   :  { %v278_v30 = vpop.xlane.xlu1 %277 }
 0x29d   :  { %v283_v31 = vmul.f32 0.015625, %v278_v30 }
 0x29f   :  { %v285_v32 = vsub.f32 %v268_v26, %v283_v31 }
 0x2a0   :  { %v281_v33 = vpop.xlane.xlu1 %280 }
 0x2a1   :  { %v284_v34 = vmul.f32 0.015625, %v281_v33  ;;  %v287_v35 = vmul.f32 %v285_v32, %v285_v32  ;;  %v421_v33 = vld [vmem:[#allocation10] sm:$0xff] }
 0x2a3   :  { %v286_v36 = vsub.f32 %v273_v27, %v284_v34  ;;  %v289_v37 = vsel %vm194_vm0, %v287_v35, 0.0  ;;  %v422_v34 = vld [vmem:[#allocation10 + $0x8] sm:$0xff]  ;;  %v423_v35 = vld [vmem:[#allocation10 + $0x10] sm:$0xff] }
 0x2a4   :  { %290 = vadd.xlane.f32.xlu0 %v289_v37  ;;  %v424_v37 = vld [vmem:[#allocation10 + $0x18] sm:$0xff] }
 0x2a5   :  { %v288_v38 = vmul.f32 %v286_v36, %v286_v36 }
 0x2a7   :  { %v292_v39 = vsel %vm194_vm0, %v288_v38, 0.0  ;;  %v5019_v38 = vpack.c.bf16 %v424_v37, %v423_v35  ;;  %v3190_v37 = vld [vmem:[%s5575_s5 + $0x4] sm:$0x3] }
 0x2a8   :  { %293 = vadd.xlane.f32.xlu1 %v292_v39  ;;  %v425_v39 = vld [vmem:[#allocation10 + $0x20] sm:$0xff] }
 0x2a9   :  { %v5023_v41 = vpack.c.bf16 %v426_v40, %v425_v39  ;;  %v436_v39 = vld [vmem:[#allocation13 + $0x30] sm:$0xff]  ;;  %v437_v40 = vld [vmem:[#allocation13 + $0x38] sm:$0xff] }
 0x2aa   :  { %v5089_v42 = vpack.c.bf16 %v437_v40, %v436_v39 }
 0x331   :  { %v291_v60 = vpop.xlane.xlu0 %290 }
 0x332   :  { %v295_v61 = vmul.f32 0.015625, %v291_v60 }
 0x334   :  { %v297_v62 = vadd.f32 1e-12, %v295_v61 }
 0x335   :  { %v294_v63 = vpop.xlane.xlu1 %293 }
 0x336   :  { %4196 = vrsqrt.f32 %v297_v62  ;;  %v296_v0 = vmul.f32 0.015625, %v294_v63 }
 0x338   :  { %v298_v1 = vadd.f32 1e-12, %v296_v0 }
 0x33a   :  { %4198 = vrsqrt.f32 %v298_v1  ;;  %v3191_v1 = vld [vmem:[%s5576_s6 + $0x2] sm:$0x3] }
 0x340   :  { %v4197_v2 = vpop.eup %4196 }
 0x341   :  { %v301_v4 = vmul.f32 %v4197_v2, %v285_v32 }
 0x343   :  { %v310_v6 = vmul.f32 %v3184_v3, %v301_v4 }
 0x344   :  { %v4199_v7 = vpop.eup %4198 }
 0x345   :  { %v302_v8 = vmul.f32 %v4199_v7, %v286_v36  ;;  %v319_v9 = vadd.f32 %v3185_v5, %v310_v6  ;;  %v5016_v36 = vpack.c.bf16 %v422_v34, %v421_v33  ;;  %v435_v33 = vld [vmem:[#allocation13 + $0x28] sm:$0xff] }
 0x347   :  { %v311_v10 = vmul.f32 %v3184_v3, %v302_v8  ;;  %3489 = vmatprep.mubr.msk.f32.mxu1 %vm194_vm0, %v319_v9 }
 0x349   :  { %v320_v11 = vadd.f32 %v3185_v5, %v311_v10 }
 0x34b   :  { %3490 = vmatmul.mubr.msk.f32.vlgmr.msra.gmra.mrb[0].mxu1 %vm194_vm0, %v320_v11 }
 0x34c   :  { %3519 = vmatprep.mubr.msk.f32.mxu1 %vm4690_vm4, %v4688_v18  ;;  %3935 = vmatpush3.bf16.msra.mxu1 %v5016_v36 }
 0x34d   :  { %3936 = vmatprep.subr.bf16.mxu1 %v4689_v48 }
 0x350   :  { %3938 = vmatpush3.bf16.msra.mxu1 %v5019_v38 }
 0x351   :  { %3939 = vmatprep.subr.bf16.mxu1 %v4689_v48 }
 0x354   :  { %3941 = vmatpush3.bf16.msra.mxu1 %v5023_v41 }
 0x355   :  { %3942 = vmatprep.subr.bf16.mxu1 %v4689_v48 }
 0x358   :  { %3944 = vmatpush3.bf16.msra.mxu1 %v5028_v45 }
 0x359   :  { %3957 = vmatprep.subr.bf16.mxu1 %v4689_v48 }
 0x41e   :  { %v3491_v15 = vpop.f32.mrb[0].mxu1 }
 0x41f   :  { %v5002_v16 = vadd.f32 %v3491_v15, %v3186_v14  ;;  %v408_v17 = vpop.f32.mrb[1].mxu1 }
 0x420   :  { %v5004_v19 = vadd.f32 %v3186_v14, %v408_v17 }
 0x422   :  { %v523_v20 = vadd.f32 %v519_v12, %v5004_v19 }
 0x424   :  { %4200 = vtanh.f32 %v523_v20  ;;  %v3194_v23 = vmul.f32 -1.442695, %v523_v20 }
 0x426   :  { %4202 = vpow2.f32 %v3194_v23 }
 0x42e   :  { %v4201_v21 = vpop.eup %4200 }
 0x42f   :  { %537 = vrot.lane.b32.xlu1 %v4201_v21, %s4691_s8 }
 0x430   :  { %v4203_v24 = vpop.eup %4202 }
 0x431   :  { %v527_v25 = vadd.f32 1.0, %v4203_v24 }
 0x433   :  { %532 = vrot.lane.b32.xlu1 %v444_v22, %s4692_s11  ;;  %4204 = vrcp.f32 %v527_v25 }
 0x43d   :  { %v4205_v26 = vpop.eup %4204 }
 0x4a1   :  { %v538_v27 = vpop.permute.xlu1 %537 }
 0x4a2   :  { %v540_v28 = vmul.f32 %v4205_v26, %v538_v27  ;;  %v431_v27 = vld [vmem:[#allocation13 + $0x8] sm:$0xff] }
 0x4a4   :  { %542 = vrot.lane.b32.xlu1 %v540_v28, %s4692_s11  ;;  %v432_v28 = vld [vmem:[#allocation13 + $0x10] sm:$0xff] }
 0x4a5   :  { %v533_v29 = vpop.permute.xlu1 %532 }
 0x4a6   :  { %v535_v30 = vmul.f32 %v4205_v26, %v533_v29 }
 0x516   :  { %v543_v31 = vpop.permute.xlu1 %542 }
 0x517   :  { %v5013_v32 = vadd.f32 %v543_v31, %v535_v30  ;;  %v433_v30 = vld [vmem:[#allocation13 + $0x18] sm:$0xff] }
 0x518   :  { %v5072_v31 = vpack.c.bf16 %v433_v30, %v432_v28 }
 0x519   :  { %4206 = vtanh.f32 %v5013_v32  ;;  %v868_v21 = vrot.slane %v5013_v32, 6  ;;  %v434_v32 = vld [vmem:[#allocation13 + $0x20] sm:$0xff] }
 0x51a   :  { %v5079_v35 = vpack.c.bf16 %v435_v33, %v434_v32 }
 0x523   :  { %v4207_v44 = vpop.eup %4206 }
 0x524   :  { %548 = vrot.lane.b32.xlu1 %v4207_v44, %s4691_s8 }
 0x528   :  { %557 = vrot.lane.b32.xlu1 %v3189_v46, %s4692_s11 }
 0x596   :  { %v549_v47 = vpop.permute.xlu1 %548 }
 0x597   :  { %v551_v49 = vmul.f32 %v4205_v26, %v549_v47  ;;  %v430_v26 = vld [vmem:[#allocation13] sm:$0xff] }
 0x598   :  { %v5069_v29 = vpack.c.bf16 %v431_v27, %v430_v26 }
 0x599   :  { %553 = vrot.lane.b32.xlu0 %v551_v49, %s4692_s11 }
 0x59a   :  { %v558_v50 = vpop.permute.xlu1 %557  ;;  %3947 = vmatpush3.bf16.msra.mxu0 %v5069_v29 }
 0x59b   :  { %3948 = vmatprep.subr.bf16.mxu0 %v4689_v48 }
 0x59e   :  { %3950 = vmatpush3.bf16.msra.mxu0 %v5072_v31 }
 0x59f   :  { %3951 = vmatprep.subr.bf16.mxu0 %v4689_v48 }
 0x5a2   :  { %3953 = vmatpush3.bf16.msra.mxu0 %v5079_v35 }
 0x5a3   :  { %3954 = vmatprep.subr.bf16.mxu0 %v4689_v48 }
 0x5a6   :  { %3956 = vmatpush3.bf16.msra.mxu0 %v5089_v42 }
 0x5a7   :  { %3963 = vmatprep.subr.bf16.mxu0 %v4689_v48 }
 0x60b   :  { %v554_v52 = vpop.permute.xlu0 %553 }
 0x60c   :  { %v560_v53 = vsel %vm449_vm3, %v554_v52, %v558_v50 }
 0x60d   :  { %3520 = vmatmul.mubr.msk.f32.vlgmr.msra.gmra.mrb[2].mxu1 %vm194_vm0, %v560_v53 }
 0x60e   :  { %3959 = vmatpush3.bf16.msra.mxu1 %v4975_v51  ;;  %3549 = vmatprep.mubr.msk.f32.mxu1 %vm4690_vm4, %v4688_v18 }
 0x60f   :  { %3960 = vmatprep.subr.bf16.mxu1 %v4689_v48 }
 0x612   :  { %3962 = vmatpush3.bf16.msra.mxu1 %v4985_v58 }
 0x613   :  { %3975 = vmatprep.subr.bf16.mxu1 %v4689_v48 }
 0x615   :  { %3550 = vmatmul.mubr.msk.f32.vlgmr.msra.gmra.mrb[4].mxu1 %vm449_vm3, %v554_v52 }
 0x616   :  { %3587 = vmatprep.mubr.msk.f32.mxu1 %vm4690_vm4, %v4688_v18  ;;  %3977 = vmatpush3.bf16.msra.mxu1 %v5069_v29 }
 0x617   :  { %3978 = vmatprep.subr.bf16.mxu1 %v4689_v48 }
 0x61a   :  { %3980 = vmatpush3.bf16.msra.mxu1 %v5072_v31 }
 0x61b   :  { %3981 = vmatprep.subr.bf16.mxu1 %v4689_v48 }
 0x61e   :  { %3983 = vmatpush3.bf16.msra.mxu1 %v5079_v35 }
 0x61f   :  { %3984 = vmatprep.subr.bf16.mxu1 %v4689_v48 }
 0x622   :  { %3986 = vmatpush3.bf16.msra.mxu1 %v5089_v42 }
 0x623   :  { %3993 = vmatprep.subr.bf16.mxu1 %v4689_v48 }
 0x6e0   :  { %v636_v55 = vpop.f32.mrb[2].mxu1 }
 0x6e1   :  { %v637_v56 = vadd.f32 %v5049_v54, %v636_v55  ;;  %v3521_v57 = vpop.f32.mrb[3].mxu1 }
 0x6e3   :  { %4208 = vtanh.f32 %v637_v56  ;;  %v3197_v2 = vmul.f32 -1.442695, %v637_v56 }
 0x6e8   :  { %v852_v59 = vpop.f32.mrb[4].mxu1 }
 0x6e9   :  { %v857_v60 = vrot.slane %v852_v59, 6  ;;  %v3551_v61 = vpop.f32.mrb[5].mxu1 }
 0x6eb   :  { %v859_v62 = vadd.f32 %v857_v60, %v5004_v19 }
 0x6ed   :  { %v4209_v63 = vpop.eup %4208  ;;  %4210 = vtanh.f32 %v859_v62  ;;  %v3202_v3 = vmul.f32 -1.442695, %v859_v62  ;;  %v5133_v62 = vld [vmem:[#allocation14] ss:$0 sm:$0xff] }
 0x6ee   :  { %653 = vrot.lane.b32.xlu1 %v4209_v63, %s4691_s8  ;;  %4212 = vpow2.f32 %v3197_v2 }
 0x6ef   :  { %4214 = vpow2.f32 %v3202_v3 }
 0x6f7   :  { %v4211_v0 = vpop.eup %4210 }
 0x6f8   :  { %872 = vrot.lane.b32.xlu1 %v4211_v0, %s4691_s8  ;;  %v4213_v4 = vpop.eup %4212 }
 0x6f9   :  { %v643_v5 = vadd.f32 1.0, %v4213_v4  ;;  %v4215_v6 = vpop.eup %4214 }
 0x6fa   :  { %v863_v7 = vadd.f32 1.0, %v4215_v6 }
 0x6fb   :  { %4216 = vrcp.f32 %v643_v5 }
 0x6fc   :  { %648 = vrot.lane.b32.xlu1 %v3191_v1, %s4692_s11  ;;  %4218 = vrcp.f32 %v863_v7 }
 0x705   :  { %v4217_v8 = vpop.eup %4216 }
 0x706   :  { %v4219_v11 = vpop.eup %4218 }
 0x707   :  { %v870_v22 = vmul.f32 %v4219_v11, %v868_v21 }
 0x760   :  { %v654_v9 = vpop.permute.xlu1 %653 }
 0x761   :  { %v656_v10 = vmul.f32 %v4217_v8, %v654_v9 }
 0x763   :  { %658 = vrot.lane.b32.xlu1 %v656_v10, %s4692_s11 }
 0x76a   :  { %v873_v12 = vpop.permute.xlu1 %872 }
 0x76b   :  { %v875_v13 = vmul.f32 %v4219_v11, %v873_v12 }
 0x76d   :  { %877 = vrot.lane.b32.xlu0 %v875_v13, %s4692_s11 }
 0x76e   :  { %v649_v14 = vpop.permute.xlu1 %648 }
 0x76f   :  { %v651_v15 = vmul.f32 %v4217_v8, %v649_v14 }
 0x7d5   :  { %v659_v17 = vpop.permute.xlu1 %658 }
 0x7d6   :  { %v5061_v20 = vadd.f32 %v659_v17, %v651_v15 }
 0x7d8   :  { %4220 = vtanh.f32 %v5061_v20 }
 0x7df   :  { %v878_v23 = vpop.permute.xlu0 %877 }
 0x7e0   :  { %v5065_v24 = vadd.f32 %v878_v23, %v870_v22 }
 0x7e2   :  { %v4221_v25 = vpop.eup %4220  ;;  %4222 = vtanh.f32 %v5065_v24 }
 0x7e3   :  { %664 = vrot.lane.b32.xlu1 %v4221_v25, %s4691_s8 }
 0x7ec   :  { %v4223_v34 = vpop.eup %4222 }
 0x7ed   :  { %883 = vrot.lane.b32.xlu0 %v4223_v34, %s4691_s8 }
 0x7f1   :  { %673 = vrot.lane.b32.xlu0 %v3190_v37, %s4692_s11 }
 0x855   :  { %v665_v43 = vpop.permute.xlu1 %664 }
 0x856   :  { %v667_v44 = vmul.f32 %v4217_v8, %v665_v43 }
 0x858   :  { %v891_v46 = vrot.slane %v667_v44, 6  ;;  %669 = vrot.lane.b32.xlu1 %v667_v44, %s4692_s11 }
 0x85a   :  { %892 = vrot.lane.b32.xlu0 %v891_v46, %s4691_s8 }
 0x85f   :  { %v884_v47 = vpop.permute.xlu0 %883 }
 0x860   :  { %v886_v49 = vmul.f32 %v4219_v11, %v884_v47  ;;  %v3192_v11 = vld [vmem:[%s5576_s6 + $0x4] sm:$0x3] }
 0x862   :  { %888 = vrot.lane.b32.xlu1 %v886_v49, %s4692_s11  ;;  %v1100_v50 = vrot.slane %v886_v49, 2 }
 0x863   :  { %v674_v52 = vpop.permute.xlu0 %673 }
 0x866   :  { %1101 = vrot.lane.b32.xlu1 %v1100_v50, %s4692_s11 }
 0x8ca   :  { %v670_v53 = vpop.permute.xlu1 %669 }
 0x8cb   :  { %v676_v55 = vsel %vm449_vm3, %v670_v53, %v674_v52 }
 0x8cc   :  { %3539 = vmatmul.mubr.msk.f32.vlgmr.msra.gmra.mrb[4].mxu0 %vm194_vm0, %v676_v55  ;;  %v893_v57 = vpop.permute.xlu0 %892  ;;  %v1187_v55 = vrot.slane %v5065_v24, 6 }
 0x8cd   :  { %3965 = vmatpush3.bf16.msra.mxu0 %v5016_v36  ;;  %3568 = vmatprep.mubr.msk.f32.mxu0 %vm4690_vm4, %v4688_v18 }
 0x8ce   :  { %3966 = vmatprep.subr.bf16.mxu0 %v4689_v48 }
 0x8d1   :  { %3968 = vmatpush3.bf16.msra.mxu0 %v5019_v38 }
 0x8d2   :  { %3969 = vmatprep.subr.bf16.mxu0 %v4689_v48 }
 0x8d4   :  { %v889_v56 = vpop.permute.xlu1 %888 }
 0x8d5   :  { %3971 = vmatpush3.bf16.msra.mxu0 %v5023_v41  ;;  %v895_v59 = vsel %vm449_vm3, %v889_v56, %v893_v57 }
 0x8d6   :  { %3972 = vmatprep.subr.bf16.mxu0 %v4689_v48  ;;  %v897_v60 = vrot.slane %v895_v59, 2 }
 0x8d8   :  { %v1102_v61 = vpop.permute.xlu1 %1101 }
 0x8d9   :  { %3974 = vmatpush3.bf16.msra.mxu0 %v5028_v45 }
 0x8da   :  { %3987 = vmatprep.subr.bf16.mxu0 %v4689_v48 }
 0x8dc   :  { %3569 = vmatmul.mubr.msk.f32.vlgmr.msra.gmra.mrb[6].mxu0 %vm194_vm0, %v897_v60 }
 0x8dd   :  { %3989 = vmatpush3.bf16.msra.mxu0 %v4975_v51  ;;  %3598 = vmatprep.mubr.msk.f32.mxu0 %vm4690_vm4, %v4688_v18 }
 0x8de   :  { %3990 = vmatprep.subr.bf16.mxu0 %v4689_v48 }
 0x8e1   :  { %3992 = vmatpush3.bf16.msra.mxu0 %v4985_v58 }
 0x8e2   :  { %4005 = vmatprep.subr.bf16.mxu0 %v4689_v48 }
 0x8e4   :  { %3599 = vmatmul.mubr.msk.f32.vlgmr.msra.gmra.mrb[8].mxu0 %vm449_vm3, %v1102_v61 }
 0x8e5   :  { %4007 = vmatpush3.bf16.msra.mxu0 %v5069_v29  ;;  %3636 = vmatprep.mubr.msk.f32.mxu0 %vm4690_vm4, %v4688_v18 }
 0x8e6   :  { %4008 = vmatprep.subr.bf16.mxu0 %v4689_v48 }
 0x8e9   :  { %4010 = vmatpush3.bf16.msra.mxu0 %v5072_v31 }
 0x8ea   :  { %4011 = vmatprep.subr.bf16.mxu0 %v4689_v48 }
 0x8ed   :  { %4013 = vmatpush3.bf16.msra.mxu0 %v5079_v35 }
 0x8ee   :  { %4014 = vmatprep.subr.bf16.mxu0 %v4689_v48 }
 0x8f1   :  { %4016 = vmatpush3.bf16.msra.mxu0 %v5089_v42 }
 0x8f2   :  { %4023 = vmatprep.subr.bf16.mxu0 %v4689_v48 }
 0x99f   :  { %v752_v63 = vpop.f32.mrb[4].mxu0 }
 0x9a0   :  { %v753_v0 = vadd.f32 %v5133_v62, %v752_v63  ;;  %v3540_v1 = vpop.f32.mrb[5].mxu0 }
 0x9a2   :  { %4224 = vtanh.f32 %v753_v0  ;;  %v3200_v13 = vmul.f32 -1.442695, %v753_v0 }
 0x9ac   :  { %v4225_v2 = vpop.eup %4224 }
 0x9ad   :  { %769 = vrot.lane.b32.xlu0 %v4225_v2, %s4691_s8 }
 0x9af   :  { %v966_v3 = vpop.f32.mrb[6].mxu0 }
 0x9b0   :  { %v967_v4 = vadd.f32 %v5049_v54, %v966_v3  ;;  %v3570_v5 = vpop.f32.mrb[7].mxu0 }
 0x9b2   :  { %4226 = vtanh.f32 %v967_v4  ;;  %v3204_v15 = vmul.f32 -1.442695, %v967_v4 }
 0x9b7   :  { %v1171_v6 = vpop.f32.mrb[8].mxu0 }
 0x9b8   :  { %v1176_v7 = vrot.slane %v1171_v6, 4  ;;  %v3600_v8 = vpop.f32.mrb[9].mxu0 }
 0x9ba   :  { %v1178_v9 = vadd.f32 %v1176_v7, %v5004_v19 }
 0x9bc   :  { %v4227_v10 = vpop.eup %4226  ;;  %4228 = vtanh.f32 %v1178_v9  ;;  %v3208_v21 = vmul.f32 -1.442695, %v1178_v9 }
 0x9bd   :  { %979 = vrot.lane.b32.xlu1 %v4227_v10, %s4691_s8  ;;  %4230 = vpow2.f32 %v3200_v13 }
 0x9be   :  { %4232 = vpow2.f32 %v3204_v15 }
 0x9c1   :  { %764 = vrot.lane.b32.xlu1 %v3192_v11, %s4692_s11 }
 0x9c6   :  { %v4229_v12 = vpop.eup %4228 }
 0x9c7   :  { %1191 = vrot.lane.b32.xlu0 %v4229_v12, %s4691_s8  ;;  %v4231_v14 = vpop.eup %4230 }
 0x9c8   :  { %v759_v17 = vadd.f32 1.0, %v4231_v14  ;;  %v4233_v22 = vpop.eup %4232 }
 0x9c9   :  { %v973_v27 = vadd.f32 1.0, %v4233_v22 }
 0x9ca   :  { %4234 = vrcp.f32 %v759_v17 }
 0x9cb   :  { %4236 = vpow2.f32 %v3208_v21 }
 0x9cc   :  { %4238 = vrcp.f32 %v973_v27 }
 0x9d4   :  { %v4235_v23 = vpop.eup %4234 }
 0x9d5   :  { %v4237_v28 = vpop.eup %4236 }
 0x9d6   :  { %v1182_v30 = vadd.f32 1.0, %v4237_v28  ;;  %v4239_v32 = vpop.eup %4238 }
 0x9d7   :  { %v977_v50 = vmul.f32 %v4239_v32, %v5061_v20 }
 0x9d8   :  { %4240 = vrcp.f32 %v1182_v30 }
 0x9e2   :  { %v4241_v37 = vpop.eup %4240 }
 0x9e3   :  { %v1189_v56 = vmul.f32 %v4241_v37, %v1187_v55 }
 0xa1f   :  { %v770_v25 = vpop.permute.xlu0 %769 }
 0xa20   :  { %v772_v26 = vmul.f32 %v4235_v23, %v770_v25 }
 0xa22   :  { %774 = vrot.lane.b32.xlu0 %v772_v26, %s4692_s11 }
 0xa2f   :  { %v980_v33 = vpop.permute.xlu1 %979 }
 0xa30   :  { %v982_v34 = vmul.f32 %v4239_v32, %v980_v33 }
 0xa32   :  { %984 = vrot.lane.b32.xlu1 %v982_v34, %s4692_s11 }
 0xa33   :  { %v765_v43 = vpop.permute.xlu1 %764 }
 0xa34   :  { %v767_v44 = vmul.f32 %v4235_v23, %v765_v43 }
 0xa39   :  { %v1192_v39 = vpop.permute.xlu0 %1191 }
 0xa3a   :  { %v1194_v40 = vmul.f32 %v4241_v37, %v1192_v39 }
 0xa3c   :  { %1196 = vrot.lane.b32.xlu0 %v1194_v40, %s4692_s11 }
 0xa94   :  { %v775_v46 = vpop.permute.xlu0 %774 }
 0xa95   :  { %v5148_v47 = vadd.f32 %v775_v46, %v767_v44 }
 0xa97   :  { %4242 = vtanh.f32 %v5148_v47 }
 0xaa1   :  { %v4243_v49 = vpop.eup %4242 }
 0xaa2   :  { %780 = vrot.lane.b32.xlu1 %v4243_v49, %s4691_s8 }
 0xaa4   :  { %v985_v52 = vpop.permute.xlu1 %984 }
 0xaa5   :  { %v5153_v53 = vadd.f32 %v985_v52, %v977_v50 }
 0xaa7   :  { %4244 = vtanh.f32 %v5153_v53 }
 0xaae   :  { %v1197_v57 = vpop.permute.xlu0 %1196 }
 0xaaf   :  { %v5157_v59 = vadd.f32 %v1197_v57, %v1189_v56 }
 0xab1   :  { %v4245_v60 = vpop.eup %4244  ;;  %4246 = vtanh.f32 %v5157_v59 }
 0xab2   :  { %990 = vrot.lane.b32.xlu0 %v4245_v60, %s4691_s8 }
 0xabb   :  { %v4247_v61 = vpop.eup %4246 }
 0xabc   :  { %1202 = vrot.lane.b32.xlu1 %v4247_v61, %s4691_s8 }
 0xb14   :  { %v781_v20 = vpop.permute.xlu1 %780 }
 0xb15   :  { %v783_v63 = vmul.f32 %v4235_v23, %v781_v20 }
 0xb17   :  { %999 = vrot.lane.b32.xlu1 %v783_v63, %s4691_s8 }
 0xb24   :  { %v991_v0 = vpop.permute.xlu0 %990 }
 0xb25   :  { %v993_v1 = vmul.f32 %v4239_v32, %v991_v0 }
 0xb27   :  { %v1210_v2 = vrot.slane %v993_v1, 4  ;;  %995 = vrot.lane.b32.xlu0 %v993_v1, %s4692_s11 }
 0xb29   :  { %1211 = vrot.lane.b32.xlu1 %v1210_v2, %s4691_s8 }
 0xb2e   :  { %v1203_v24 = vpop.permute.xlu1 %1202 }
 0xb2f   :  { %v1205_v3 = vmul.f32 %v4241_v37, %v1203_v24 }
 0xb31   :  { %1207 = vrot.lane.b32.xlu0 %v1205_v3, %s4692_s11  ;;  %v1419_v4 = vrot.slane %v1205_v3, 4 }
 0xb35   :  { %1420 = vrot.lane.b32.xlu0 %v1419_v4, %s4692_s11 }
 0xb89   :  { %v1000_v5 = vpop.permute.xlu1 %999 }
 0xb99   :  { %v996_v6 = vpop.permute.xlu0 %995 }
 0xb9a   :  { %v1002_v7 = vsel %vm449_vm3, %v996_v6, %v1000_v5  ;;  %v1506_v5 = vrot.slane %v5157_v59, 6 }
 0xb9b   :  { %3588 = vmatmul.mubr.msk.f32.vlgmr.msra.gmra.mrb[6].mxu1 %vm194_vm0, %v1002_v7  ;;  %v1212_v9 = vpop.permute.xlu1 %1211 }
 0xb9c   :  { %3995 = vmatpush3.bf16.msra.mxu1 %v5016_v36  ;;  %3617 = vmatprep.mubr.msk.f32.mxu1 %vm4690_vm4, %v4688_v18 }
 0xb9d   :  { %3996 = vmatprep.subr.bf16.mxu1 %v4689_v48 }
 0xba0   :  { %3998 = vmatpush3.bf16.msra.mxu1 %v5019_v38 }
 0xba1   :  { %3999 = vmatprep.subr.bf16.mxu1 %v4689_v48 }
 0xba3   :  { %v1208_v8 = vpop.permute.xlu0 %1207 }
 0xba4   :  { %4001 = vmatpush3.bf16.msra.mxu1 %v5023_v41  ;;  %v1214_v10 = vsel %vm449_vm3, %v1208_v8, %v1212_v9 }
 0xba5   :  { %4002 = vmatprep.subr.bf16.mxu1 %v4689_v48  ;;  %v1216_v11 = vrot.slane %v1214_v10, 4 }
 0xba7   :  { %v1421_v12 = vpop.permute.xlu0 %1420 }
 0xba8   :  { %4004 = vmatpush3.bf16.msra.mxu1 %v5028_v45 }
 0xba9   :  { %4017 = vmatprep.subr.bf16.mxu1 %v4689_v48 }
 0xbab   :  { %3618 = vmatmul.mubr.msk.f32.vlgmr.msra.gmra.mrb[8].mxu1 %vm194_vm0, %v1216_v11 }
 0xbac   :  { %4019 = vmatpush3.bf16.msra.mxu1 %v4975_v51  ;;  %3647 = vmatprep.mubr.msk.f32.mxu1 %vm4690_vm4, %v4688_v18 }
 0xbad   :  { %4020 = vmatprep.subr.bf16.mxu1 %v4689_v48 }
 0xbb0   :  { %4022 = vmatpush3.bf16.msra.mxu1 %v4985_v58 }
 0xbb1   :  { %4035 = vmatprep.subr.bf16.mxu1 %v4689_v48 }
 0xbb3   :  { %3648 = vmatmul.mubr.msk.f32.vlgmr.msra.gmra.mrb[10].mxu1 %vm449_vm3, %v1421_v12 }
 0xbb4   :  { %4037 = vmatpush3.bf16.msra.mxu1 %v5069_v29  ;;  %3685 = vmatprep.mubr.msk.f32.mxu1 %vm4690_vm4, %v4688_v18 }
 0xbb5   :  { %4038 = vmatprep.subr.bf16.mxu1 %v4689_v48 }
 0xbb8   :  { %4040 = vmatpush3.bf16.msra.mxu1 %v5072_v31 }
 0xbb9   :  { %4041 = vmatprep.subr.bf16.mxu1 %v4689_v48 }
 0xbbc   :  { %4043 = vmatpush3.bf16.msra.mxu1 %v5079_v35 }
 0xbbd   :  { %4044 = vmatprep.subr.bf16.mxu1 %v4689_v48 }
 0xbc0   :  { %4046 = vmatpush3.bf16.msra.mxu1 %v5089_v42 }
 0xbc1   :  { %4053 = vmatprep.subr.bf16.mxu1 %v4689_v48 }
 0xc6e   :  { %v1072_v13 = vpop.f32.mrb[6].mxu1 }
 0xc6f   :  { %v1073_v14 = vadd.f32 %v5133_v62, %v1072_v13  ;;  %v3589_v15 = vpop.f32.mrb[7].mxu1 }
 0xc71   :  { %4248 = vtanh.f32 %v1073_v14  ;;  %v3206_v33 = vmul.f32 -1.442695, %v1073_v14 }
 0xc7b   :  { %v4249_v17 = vpop.eup %4248 }
 0xc7c   :  { %1085 = vrot.lane.b32.xlu1 %v4249_v17, %s4691_s8 }
 0xc7e   :  { %v1285_v21 = vpop.f32.mrb[8].mxu1 }
 0xc7f   :  { %v1286_v22 = vadd.f32 %v5049_v54, %v1285_v21  ;;  %v3619_v23 = vpop.f32.mrb[9].mxu1 }
 0xc81   :  { %4250 = vtanh.f32 %v1286_v22  ;;  %v3210_v37 = vmul.f32 -1.442695, %v1286_v22 }
 0xc86   :  { %v1490_v25 = vpop.f32.mrb[10].mxu1 }
 0xc87   :  { %v1495_v26 = vrot.slane %v1490_v25, 2  ;;  %v3649_v27 = vpop.f32.mrb[11].mxu1 }
 0xc89   :  { %v1497_v28 = vadd.f32 %v1495_v26, %v5004_v19 }
 0xc8b   :  { %v4251_v30 = vpop.eup %4250  ;;  %4252 = vtanh.f32 %v1497_v28  ;;  %v3214_v40 = vmul.f32 -1.442695, %v1497_v28 }
 0xc8c   :  { %1298 = vrot.lane.b32.xlu0 %v4251_v30, %s4691_s8  ;;  %4254 = vpow2.f32 %v3206_v33 }
 0xc8d   :  { %4256 = vpow2.f32 %v3210_v37 }
 0xc95   :  { %v4253_v32 = vpop.eup %4252 }
 0xc96   :  { %1510 = vrot.lane.b32.xlu1 %v4253_v32, %s4691_s8  ;;  %v4255_v34 = vpop.eup %4254 }
 0xc97   :  { %v1079_v39 = vadd.f32 1.0, %v4255_v34  ;;  %v4257_v43 = vpop.eup %4256 }
 0xc98   :  { %v1292_v49 = vadd.f32 1.0, %v4257_v43 }
 0xc99   :  { %4258 = vrcp.f32 %v1079_v39 }
 0xc9a   :  { %4260 = vpow2.f32 %v3214_v40 }
 0xc9b   :  { %4262 = vrcp.f32 %v1292_v49 }
 0xca3   :  { %v4259_v44 = vpop.eup %4258 }
 0xca4   :  { %v4261_v50 = vpop.eup %4260  ;;  %v1083_v63 = vmul.f32 %v4259_v44, %v5148_v47 }
 0xca5   :  { %v1501_v52 = vadd.f32 1.0, %v4261_v50  ;;  %v4263_v55 = vpop.eup %4262 }
 0xca6   :  { %v1296_v24 = vmul.f32 %v4263_v55, %v5153_v53 }
 0xca7   :  { %4264 = vrcp.f32 %v1501_v52 }
 0xcb1   :  { %v4265_v60 = vpop.eup %4264 }
 0xcb2   :  { %v1508_v6 = vmul.f32 %v4265_v60, %v1506_v5 }
 0xcee   :  { %v1086_v46 = vpop.permute.xlu1 %1085 }
 0xcef   :  { %v1088_v19 = vmul.f32 %v4259_v44, %v1086_v46 }
 0xcf1   :  { %1090 = vrot.lane.b32.xlu0 %v1088_v19, %s4692_s11 }
 0xcfe   :  { %v1299_v56 = vpop.permute.xlu0 %1298 }
 0xcff   :  { %v1301_v57 = vmul.f32 %v4263_v55, %v1299_v56 }
 0xd01   :  { %1303 = vrot.lane.b32.xlu1 %v1301_v57, %s4692_s11 }
 0xd08   :  { %v1511_v61 = vpop.permute.xlu1 %1510 }
 0xd09   :  { %v1513_v20 = vmul.f32 %v4265_v60, %v1511_v61 }
 0xd0b   :  { %1515 = vrot.lane.b32.xlu0 %v1513_v20, %s4692_s11 }
 0xd63   :  { %v1091_v0 = vpop.permute.xlu0 %1090 }
 0xd64   :  { %v5208_v1 = vadd.f32 %v1091_v0, %v1083_v63 }
 0xd66   :  { %4266 = vtanh.f32 %v5208_v1 }
 0xd70   :  { %v4267_v2 = vpop.eup %4266 }
 0xd71   :  { %1096 = vrot.lane.b32.xlu1 %v4267_v2, %s4691_s8 }
 0xd73   :  { %v1304_v3 = vpop.permute.xlu1 %1303 }
 0xd74   :  { %v5213_v4 = vadd.f32 %v1304_v3, %v1296_v24 }
 0xd76   :  { %4268 = vtanh.f32 %v5213_v4 }
 0xd7d   :  { %v1516_v7 = vpop.permute.xlu0 %1515 }
 0xd7e   :  { %v5217_v47 = vadd.f32 %v1516_v7, %v1508_v6 }
 0xd80   :  { %v4269_v8 = vpop.eup %4268  ;;  %4270 = vtanh.f32 %v5217_v47 }
 0xd81   :  { %1309 = vrot.lane.b32.xlu0 %v4269_v8, %s4691_s8 }
 0xd8a   :  { %v4271_v9 = vpop.eup %4270 }
 0xd8b   :  { %1521 = vrot.lane.b32.xlu1 %v4271_v9, %s4691_s8 }
 0xde3   :  { %v1097_v53 = vpop.permute.xlu1 %1096 }
 0xde4   :  { %v1099_v10 = vmul.f32 %v4259_v44, %v1097_v53 }
 0xde6   :  { %1318 = vrot.lane.b32.xlu1 %v1099_v10, %s4691_s8 }
 0xdf3   :  { %v1310_v11 = vpop.permute.xlu0 %1309 }
 0xdf4   :  { %v1312_v12 = vmul.f32 %v4263_v55, %v1310_v11 }
 0xdf6   :  { %v1529_v13 = vrot.slane %v1312_v12, 2  ;;  %1314 = vrot.lane.b32.xlu0 %v1312_v12, %s4692_s11 }
 0xdf8   :  { %1530 = vrot.lane.b32.xlu1 %v1529_v13, %s4691_s8 }
 0xdfd   :  { %v1522_v59 = vpop.permute.xlu1 %1521 }
 0xdfe   :  { %v1524_v14 = vmul.f32 %v4265_v60, %v1522_v59 }
 0xe00   :  { %1526 = vrot.lane.b32.xlu0 %v1524_v14, %s4692_s11  ;;  %v1738_v15 = vrot.slane %v1524_v14, 6 }
 0xe04   :  { %1739 = vrot.lane.b32.xlu0 %v1738_v15, %s4692_s11  ;;  %v1822_v15 = vrot.slane %v5217_v47, 6 }
 0xe58   :  { %v1319_v17 = vpop.permute.xlu1 %1318 }
 0xe68   :  { %v1315_v21 = vpop.permute.xlu0 %1314 }
 0xe69   :  { %v1321_v22 = vsel %vm449_vm3, %v1315_v21, %v1319_v17 }
 0xe6a   :  { %3637 = vmatmul.mubr.msk.f32.vlgmr.msra.gmra.mrb[10].mxu0 %vm194_vm0, %v1321_v22  ;;  %v1531_v25 = vpop.permute.xlu1 %1530 }
 0xe6b   :  { %4025 = vmatpush3.bf16.msra.mxu0 %v5016_v36  ;;  %3666 = vmatprep.mubr.msk.f32.mxu0 %vm4690_vm4, %v4688_v18 }
 0xe6c   :  { %4026 = vmatprep.subr.bf16.mxu0 %v4689_v48 }
 0xe6f   :  { %4028 = vmatpush3.bf16.msra.mxu0 %v5019_v38 }
 0xe70   :  { %4029 = vmatprep.subr.bf16.mxu0 %v4689_v48 }
 0xe72   :  { %v1527_v23 = vpop.permute.xlu0 %1526 }
 0xe73   :  { %4031 = vmatpush3.bf16.msra.mxu0 %v5023_v41  ;;  %v1533_v26 = vsel %vm449_vm3, %v1527_v23, %v1531_v25 }
 0xe74   :  { %4032 = vmatprep.subr.bf16.mxu0 %v4689_v48  ;;  %v1535_v27 = vrot.slane %v1533_v26, 6 }
 0xe76   :  { %v1740_v28 = vpop.permute.xlu0 %1739 }
 0xe77   :  { %4034 = vmatpush3.bf16.msra.mxu0 %v5028_v45 }
 0xe78   :  { %4047 = vmatprep.subr.bf16.mxu0 %v4689_v48 }
 0xe7a   :  { %3667 = vmatmul.mubr.msk.f32.vlgmr.msra.gmra.mrb[12].mxu0 %vm194_vm0, %v1535_v27 }
 0xe7b   :  { %4049 = vmatpush3.bf16.msra.mxu0 %v4975_v51  ;;  %3696 = vmatprep.mubr.msk.f32.mxu0 %vm4690_vm4, %v4688_v18 }
 0xe7c   :  { %4050 = vmatprep.subr.bf16.mxu0 %v4689_v48 }
 0xe7f   :  { %4052 = vmatpush3.bf16.msra.mxu0 %v4985_v58 }
 0xe80   :  { %4065 = vmatprep.subr.bf16.mxu0 %v4689_v48 }
 0xe82   :  { %3697 = vmatmul.mubr.msk.f32.vlgmr.msra.gmra.mrb[14].mxu0 %vm449_vm3, %v1740_v28 }
 0xe83   :  { %4067 = vmatpush3.bf16.msra.mxu0 %v5069_v29  ;;  %3734 = vmatprep.mubr.msk.f32.mxu0 %vm4690_vm4, %v4688_v18 }
 0xe84   :  { %4068 = vmatprep.subr.bf16.mxu0 %v4689_v48 }
 0xe87   :  { %4070 = vmatpush3.bf16.msra.mxu0 %v5072_v31 }
 0xe88   :  { %4071 = vmatprep.subr.bf16.mxu0 %v4689_v48 }
 0xe8b   :  { %4073 = vmatpush3.bf16.msra.mxu0 %v5079_v35 }
 0xe8c   :  { %4074 = vmatprep.subr.bf16.mxu0 %v4689_v48 }
 0xe8f   :  { %4076 = vmatpush3.bf16.msra.mxu0 %v5089_v42 }
 0xe90   :  { %4083 = vmatprep.subr.bf16.mxu0 %v4689_v48 }
 0xf3d   :  { %v1391_v30 = vpop.f32.mrb[10].mxu0 }
 0xf3e   :  { %v1392_v32 = vadd.f32 %v5133_v62, %v1391_v30  ;;  %v3638_v33 = vpop.f32.mrb[11].mxu0 }
 0xf40   :  { %4272 = vtanh.f32 %v1392_v32  ;;  %v3212_v50 = vmul.f32 -1.442695, %v1392_v32 }
 0xf4a   :  { %v4273_v34 = vpop.eup %4272 }
 0xf4b   :  { %1404 = vrot.lane.b32.xlu1 %v4273_v34, %s4691_s8 }
 0xf4d   :  { %v1604_v37 = vpop.f32.mrb[12].mxu0 }
 0xf4e   :  { %v1605_v39 = vadd.f32 %v5049_v54, %v1604_v37  ;;  %v3668_v40 = vpop.f32.mrb[13].mxu0 }
 0xf50   :  { %4274 = vtanh.f32 %v1605_v39  ;;  %v3216_v55 = vmul.f32 -1.442695, %v1605_v39 }
 0xf55   :  { %v1809_v43 = vpop.f32.mrb[14].mxu0 }
 0xf56   :  { %v1813_v44 = vadd.f32 %v1809_v43, %v5002_v16  ;;  %v3698_v46 = vpop.f32.mrb[15].mxu0 }
 0xf58   :  { %4276 = vtanh.f32 %v1813_v44  ;;  %v3220_v57 = vmul.f32 -1.442695, %v1813_v44 }
 0xf59   :  { %4278 = vpow2.f32 %v3212_v50 }
 0xf5a   :  { %v4275_v19 = vpop.eup %4274  ;;  %4280 = vpow2.f32 %v3216_v55 }
 0xf5b   :  { %1617 = vrot.lane.b32.xlu0 %v4275_v19, %s4691_s8 }
 0xf62   :  { %v4277_v49 = vpop.eup %4276 }
 0xf63   :  { %1826 = vrot.lane.b32.xlu1 %v4277_v49, %s4691_s8  ;;  %v4279_v52 = vpop.eup %4278 }
 0xf64   :  { %v1398_v56 = vadd.f32 1.0, %v4279_v52  ;;  %v4281_v60 = vpop.eup %4280 }
 0xf65   :  { %v1611_v0 = vadd.f32 1.0, %v4281_v60 }
 0xf66   :  { %4282 = vrcp.f32 %v1398_v56 }
 0xf67   :  { %4284 = vpow2.f32 %v3220_v57 }
 0xf68   :  { %4286 = vrcp.f32 %v1611_v0 }
 0xf70   :  { %v4283_v61 = vpop.eup %4282 }
 0xf71   :  { %v4285_v2 = vpop.eup %4284  ;;  %v1402_v53 = vmul.f32 %v4283_v61, %v5208_v1 }
 0xf72   :  { %v1817_v24 = vadd.f32 1.0, %v4285_v2  ;;  %v4287_v3 = vpop.eup %4286 }
 0xf73   :  { %v1615_v13 = vmul.f32 %v4287_v3, %v5213_v4 }
 0xf74   :  { %4288 = vrcp.f32 %v1817_v24 }
 0xf7e   :  { %v4289_v7 = vpop.eup %4288 }
 0xf7f   :  { %v1824_v17 = vmul.f32 %v4289_v7, %v1822_v15 }
 0xfbd   :  { %v1405_v20 = vpop.permute.xlu1 %1404 }
 0xfbe   :  { %v1407_v63 = vmul.f32 %v4283_v61, %v1405_v20 }
 0xfc0   :  { %1409 = vrot.lane.b32.xlu0 %v1407_v63, %s4692_s11 }
 0xfcd   :  { %v1618_v5 = vpop.permute.xlu0 %1617 }
 0xfce   :  { %v1620_v6 = vmul.f32 %v4287_v3, %v1618_v5 }
 0xfd0   :  { %1622 = vrot.lane.b32.xlu1 %v1620_v6, %s4692_s11 }
 0xfd5   :  { %v1827_v8 = vpop.permute.xlu1 %1826 }
 0xfd6   :  { %v1829_v9 = vmul.f32 %v4289_v7, %v1827_v8 }
 0xfd8   :  { %1831 = vrot.lane.b32.xlu0 %v1829_v9, %s4692_s11 }
0x1032   :  { %v1410_v10 = vpop.permute.xlu0 %1409 }
0x1033   :  { %v5268_v11 = vadd.f32 %v1410_v10, %v1402_v53 }
0x1035   :  { %4290 = vtanh.f32 %v5268_v11 }
0x103f   :  { %v4291_v12 = vpop.eup %4290 }
0x1040   :  { %1415 = vrot.lane.b32.xlu1 %v4291_v12, %s4691_s8 }
0x1042   :  { %v1623_v59 = vpop.permute.xlu1 %1622 }
0x1043   :  { %v5273_v14 = vadd.f32 %v1623_v59, %v1615_v13 }
0x1045   :  { %4292 = vtanh.f32 %v5273_v14 }
0x104a   :  { %v1832_v21 = vpop.permute.xlu0 %1831 }
0x104b   :  { %v5277_v1 = vadd.f32 %v1832_v21, %v1824_v17 }
0x104d   :  { %4294 = vtanh.f32 %v5277_v1 }
0x104f   :  { %v4293_v22 = vpop.eup %4292 }
0x1050   :  { %1628 = vrot.lane.b32.xlu0 %v4293_v22, %s4691_s8 }
0x1057   :  { %v4295_v23 = vpop.eup %4294 }
0x1058   :  { %1837 = vrot.lane.b32.xlu1 %v4295_v23, %s4691_s8 }
0x10b2   :  { %v1416_v4 = vpop.permute.xlu1 %1415 }
0x10b3   :  { %v1418_v25 = vmul.f32 %v4283_v61, %v1416_v4 }
0x10b5   :  { %1637 = vrot.lane.b32.xlu1 %v1418_v25, %s4691_s8 }
0x10c2   :  { %v1629_v26 = vpop.permute.xlu0 %1628 }
0x10c3   :  { %v1631_v27 = vmul.f32 %v4287_v3, %v1629_v26 }
0x10c5   :  { %1633 = vrot.lane.b32.xlu0 %v1631_v27, %s4692_s11  ;;  %1845 = vrot.lane.b32.xlu1 %v1631_v27, %s4691_s8  ;;  %v2136_v27 = vrot.slane %v5277_v1, 6 }
0x10ca   :  { %v1838_v47 = vpop.permute.xlu1 %1837 }
0x10cb   :  { %v1840_v28 = vmul.f32 %v4289_v7, %v1838_v47 }
0x10cd   :  { %1842 = vrot.lane.b32.xlu0 %v1840_v28, %s4692_s11 }
0x1127   :  { %v1638_v30 = vpop.permute.xlu1 %1637 }
0x1137   :  { %v1634_v32 = vpop.permute.xlu0 %1633  ;;  %v1846_v37 = vpop.permute.xlu1 %1845 }
0x1138   :  { %v1640_v33 = vsel %vm449_vm3, %v1634_v32, %v1638_v30 }
0x1139   :  { %3686 = vmatmul.mubr.msk.f32.vlgmr.msra.gmra.mrb[12].mxu1 %vm194_vm0, %v1640_v33 }
0x113a   :  { %4055 = vmatpush3.bf16.msra.mxu1 %v5016_v36  ;;  %3715 = vmatprep.mubr.msk.f32.mxu1 %vm4690_vm4, %v4688_v18 }
0x113b   :  { %4056 = vmatprep.subr.bf16.mxu1 %v4689_v48 }
0x113e   :  { %4058 = vmatpush3.bf16.msra.mxu1 %v5019_v38 }
0x113f   :  { %4059 = vmatprep.subr.bf16.mxu1 %v4689_v48  ;;  %v1843_v34 = vpop.permute.xlu0 %1842 }
0x1140   :  { %v1848_v39 = vsel %vm449_vm3, %v1843_v34, %v1846_v37 }
0x1142   :  { %4061 = vmatpush3.bf16.msra.mxu1 %v5023_v41 }
0x1143   :  { %4062 = vmatprep.subr.bf16.mxu1 %v4689_v48 }
0x1146   :  { %4064 = vmatpush3.bf16.msra.mxu1 %v5028_v45 }
0x1147   :  { %4077 = vmatprep.subr.bf16.mxu1 %v4689_v48 }
0x1149   :  { %3716 = vmatmul.mubr.msk.f32.vlgmr.msra.gmra.mrb[14].mxu1 %vm194_vm0, %v1848_v39 }
0x114a   :  { %4079 = vmatpush3.bf16.msra.mxu1 %v4975_v51  ;;  %3745 = vmatprep.mubr.msk.f32.mxu1 %vm4690_vm4, %v4688_v18 }
0x114b   :  { %4080 = vmatprep.subr.bf16.mxu1 %v4689_v48 }
0x114e   :  { %4082 = vmatpush3.bf16.msra.mxu1 %v4985_v58 }
0x114f   :  { %4095 = vmatprep.subr.bf16.mxu1 %v4689_v48 }
0x1151   :  { %3746 = vmatmul.mubr.msk.f32.vlgmr.msra.gmra.mrb[16].mxu1 %vm449_vm3, %v1843_v34 }
0x1152   :  { %4097 = vmatpush3.bf16.msra.mxu1 %v5069_v29  ;;  %3783 = vmatprep.mubr.msk.f32.mxu1 %vm4690_vm4, %v4688_v18 }
0x1153   :  { %4098 = vmatprep.subr.bf16.mxu1 %v4689_v48 }
0x1156   :  { %4100 = vmatpush3.bf16.msra.mxu1 %v5072_v31 }
0x1157   :  { %4101 = vmatprep.subr.bf16.mxu1 %v4689_v48 }
0x115a   :  { %4103 = vmatpush3.bf16.msra.mxu1 %v5079_v35 }
0x115b   :  { %4104 = vmatprep.subr.bf16.mxu1 %v4689_v48 }
0x115e   :  { %4106 = vmatpush3.bf16.msra.mxu1 %v5089_v42 }
0x115f   :  { %4113 = vmatprep.subr.bf16.mxu1 %v4689_v48 }
0x120c   :  { %v1710_v40 = vpop.f32.mrb[12].mxu1 }
0x120d   :  { %v1711_v43 = vadd.f32 %v5133_v62, %v1710_v40  ;;  %v3687_v44 = vpop.f32.mrb[13].mxu1 }
0x120f   :  { %4296 = vtanh.f32 %v1711_v43  ;;  %v3218_v20 = vmul.f32 -1.442695, %v1711_v43 }
0x1219   :  { %v4297_v46 = vpop.eup %4296 }
0x121a   :  { %1723 = vrot.lane.b32.xlu0 %v4297_v46, %s4691_s8 }
0x121c   :  { %v1918_v19 = vpop.f32.mrb[14].mxu1 }
0x121d   :  { %v1919_v49 = vadd.f32 %v5049_v54, %v1918_v19  ;;  %v3717_v50 = vpop.f32.mrb[15].mxu1 }
0x121f   :  { %4298 = vtanh.f32 %v1919_v49  ;;  %v3222_v0 = vmul.f32 -1.442695, %v1919_v49 }
0x1224   :  { %v2120_v52 = vpop.f32.mrb[16].mxu1 }
0x1225   :  { %v2125_v55 = vrot.slane %v2120_v52, 6  ;;  %v3747_v56 = vpop.f32.mrb[17].mxu1 }
0x1227   :  { %v2127_v57 = vadd.f32 %v2125_v55, %v5002_v16 }
0x1229   :  { %v4299_v60 = vpop.eup %4298  ;;  %4300 = vtanh.f32 %v2127_v57  ;;  %v3226_v54 = vmul.f32 -1.442695, %v2127_v57 }
0x122a   :  { %1931 = vrot.lane.b32.xlu1 %v4299_v60, %s4691_s8  ;;  %4302 = vpow2.f32 %v3218_v20 }
0x122b   :  { %4304 = vpow2.f32 %v3222_v0  ;;  %v5379_v0 = vld [vmem:[#allocation11] ss:$0 sm:$0xff] }
0x1233   :  { %v4301_v61 = vpop.eup %4300 }
0x1234   :  { %2140 = vrot.lane.b32.xlu0 %v4301_v61, %s4691_s8  ;;  %v4303_v63 = vpop.eup %4302 }
0x1235   :  { %v1717_v2 = vadd.f32 1.0, %v4303_v63  ;;  %v4305_v24 = vpop.eup %4304 }
0x1236   :  { %v1925_v7 = vadd.f32 1.0, %v4305_v24 }
0x1237   :  { %4306 = vrcp.f32 %v1717_v2 }
0x1238   :  { %4308 = vpow2.f32 %v3226_v54 }
0x1239   :  { %4310 = vrcp.f32 %v1925_v7 }
0x1241   :  { %v4307_v3 = vpop.eup %4306 }
0x1242   :  { %v4309_v8 = vpop.eup %4308  ;;  %v1721_v17 = vmul.f32 %v4307_v3, %v5268_v11 }
0x1243   :  { %v2131_v9 = vadd.f32 1.0, %v4309_v8  ;;  %v4311_v53 = vpop.eup %4310 }
0x1244   :  { %v1929_v4 = vmul.f32 %v4311_v53, %v5273_v14 }
0x1245   :  { %4312 = vrcp.f32 %v2131_v9 }
0x124f   :  { %v4313_v13 = vpop.eup %4312 }
0x1250   :  { %v2138_v47 = vmul.f32 %v4313_v13, %v2136_v27 }
0x128c   :  { %v1724_v5 = vpop.permute.xlu0 %1723 }
0x128d   :  { %v1726_v6 = vmul.f32 %v4307_v3, %v1724_v5 }
0x128f   :  { %1728 = vrot.lane.b32.xlu1 %v1726_v6, %s4692_s11 }
0x129c   :  { %v1932_v10 = vpop.permute.xlu1 %1931 }
0x129d   :  { %v1934_v12 = vmul.f32 %v4311_v53, %v1932_v10 }
0x129f   :  { %1936 = vrot.lane.b32.xlu0 %v1934_v12, %s4692_s11 }
0x12a6   :  { %v2141_v59 = vpop.permute.xlu0 %2140 }
0x12a7   :  { %v2143_v15 = vmul.f32 %v4313_v13, %v2141_v59 }
0x12a9   :  { %2145 = vrot.lane.b32.xlu1 %v2143_v15, %s4692_s11 }
0x1301   :  { %v1729_v21 = vpop.permute.xlu1 %1728 }
0x1302   :  { %v5327_v22 = vadd.f32 %v1729_v21, %v1721_v17 }
0x1304   :  { %4314 = vtanh.f32 %v5327_v22 }
0x130e   :  { %v4315_v23 = vpop.eup %4314 }
0x130f   :  { %1734 = vrot.lane.b32.xlu0 %v4315_v23, %s4691_s8 }
0x1311   :  { %v1937_v25 = vpop.permute.xlu0 %1936 }
0x1312   :  { %v5332_v26 = vadd.f32 %v1937_v25, %v1929_v4 }
0x1314   :  { %4316 = vtanh.f32 %v5332_v26 }
0x131b   :  { %v2146_v28 = vpop.permute.xlu1 %2145 }
0x131c   :  { %v5336_v11 = vadd.f32 %v2146_v28, %v2138_v47 }
0x131e   :  { %v4317_v30 = vpop.eup %4316  ;;  %4318 = vtanh.f32 %v5336_v11 }
0x131f   :  { %1942 = vrot.lane.b32.xlu1 %v4317_v30, %s4691_s8 }
0x1328   :  { %v4319_v32 = vpop.eup %4318 }
0x1329   :  { %2151 = vrot.lane.b32.xlu0 %v4319_v32, %s4691_s8 }
0x1381   :  { %v1735_v14 = vpop.permute.xlu0 %1734 }
0x1382   :  { %v1737_v33 = vmul.f32 %v4307_v3, %v1735_v14 }
0x1384   :  { %1951 = vrot.lane.b32.xlu0 %v1737_v33, %s4691_s8 }
0x1391   :  { %v1943_v34 = vpop.permute.xlu1 %1942 }
0x1392   :  { %v1945_v37 = vmul.f32 %v4311_v53, %v1943_v34 }
0x1394   :  { %v2159_v39 = vrot.slane %v1945_v37, 6  ;;  %1947 = vrot.lane.b32.xlu1 %v1945_v37, %s4692_s11 }
0x1396   :  { %2160 = vrot.lane.b32.xlu0 %v2159_v39, %s4691_s8 }
0x139b   :  { %v2152_v1 = vpop.permute.xlu0 %2151 }
0x139c   :  { %v2154_v40 = vmul.f32 %v4313_v13, %v2152_v1 }
0x139e   :  { %2156 = vrot.lane.b32.xlu1 %v2154_v40, %s4692_s11  ;;  %v2368_v43 = vrot.slane %v2154_v40, 2 }
0x13a2   :  { %2369 = vrot.lane.b32.xlu1 %v2368_v43, %s4692_s11  ;;  %v2455_v43 = vrot.slane %v5336_v11, 6 }
0x13f6   :  { %v1952_v44 = vpop.permute.xlu0 %1951 }
0x1406   :  { %v1948_v46 = vpop.permute.xlu1 %1947 }
0x1407   :  { %v1954_v19 = vsel %vm449_vm3, %v1948_v46, %v1952_v44 }
0x1408   :  { %3735 = vmatmul.mubr.msk.f32.vlgmr.msra.gmra.mrb[16].mxu0 %vm194_vm0, %v1954_v19  ;;  %v2161_v50 = vpop.permute.xlu0 %2160 }
0x1409   :  { %4085 = vmatpush3.bf16.msra.mxu0 %v5016_v36  ;;  %3764 = vmatprep.mubr.msk.f32.mxu0 %vm4690_vm4, %v4688_v18 }
0x140a   :  { %4086 = vmatprep.subr.bf16.mxu0 %v4689_v48 }
0x140d   :  { %4088 = vmatpush3.bf16.msra.mxu0 %v5019_v38 }
0x140e   :  { %4089 = vmatprep.subr.bf16.mxu0 %v4689_v48 }
0x1410   :  { %v2157_v49 = vpop.permute.xlu1 %2156 }
0x1411   :  { %4091 = vmatpush3.bf16.msra.mxu0 %v5023_v41  ;;  %v2163_v52 = vsel %vm449_vm3, %v2157_v49, %v2161_v50 }
0x1412   :  { %4092 = vmatprep.subr.bf16.mxu0 %v4689_v48  ;;  %v2165_v55 = vrot.slane %v2163_v52, 2 }
0x1414   :  { %v2370_v56 = vpop.permute.xlu1 %2369 }
0x1415   :  { %4094 = vmatpush3.bf16.msra.mxu0 %v5028_v45 }
0x1416   :  { %4107 = vmatprep.subr.bf16.mxu0 %v4689_v48 }
0x1418   :  { %3765 = vmatmul.mubr.msk.f32.vlgmr.msra.gmra.mrb[18].mxu0 %vm194_vm0, %v2165_v55 }
0x1419   :  { %4109 = vmatpush3.bf16.msra.mxu0 %v4975_v51  ;;  %3794 = vmatprep.mubr.msk.f32.mxu0 %vm4690_vm4, %v4688_v18 }
0x141a   :  { %4110 = vmatprep.subr.bf16.mxu0 %v4689_v48 }
0x141d   :  { %4112 = vmatpush3.bf16.msra.mxu0 %v4985_v58 }
0x141e   :  { %4125 = vmatprep.subr.bf16.mxu0 %v4689_v48 }
0x1420   :  { %3795 = vmatmul.mubr.msk.f32.vlgmr.msra.gmra.mrb[20].mxu0 %vm449_vm3, %v2370_v56 }
0x1421   :  { %4127 = vmatpush3.bf16.msra.mxu0 %v5069_v29  ;;  %3832 = vmatprep.mubr.msk.f32.mxu0 %vm4690_vm4, %v4688_v18 }
0x1422   :  { %4128 = vmatprep.subr.bf16.mxu0 %v4689_v48 }
0x1425   :  { %4130 = vmatpush3.bf16.msra.mxu0 %v5072_v31 }
0x1426   :  { %4131 = vmatprep.subr.bf16.mxu0 %v4689_v48 }
0x1429   :  { %4133 = vmatpush3.bf16.msra.mxu0 %v5079_v35 }
0x142a   :  { %4134 = vmatprep.subr.bf16.mxu0 %v4689_v48 }
0x142d   :  { %4136 = vmatpush3.bf16.msra.mxu0 %v5089_v42 }
0x142e   :  { %4143 = vmatprep.subr.bf16.mxu0 %v4689_v48 }
0x14db   :  { %v2024_v57 = vpop.f32.mrb[16].mxu0 }
0x14dc   :  { %v2025_v60 = vadd.f32 %v5133_v62, %v2024_v57  ;;  %v3736_v61 = vpop.f32.mrb[17].mxu0 }
0x14de   :  { %4320 = vtanh.f32 %v2025_v60  ;;  %v3224_v8 = vmul.f32 -1.442695, %v2025_v60 }
0x14e8   :  { %v4321_v20 = vpop.eup %4320 }
0x14e9   :  { %2037 = vrot.lane.b32.xlu0 %v4321_v20, %s4691_s8 }
0x14eb   :  { %v2234_v63 = vpop.f32.mrb[18].mxu0 }
0x14ec   :  { %v2235_v2 = vadd.f32 %v5379_v0, %v2234_v63  ;;  %v3766_v54 = vpop.f32.mrb[19].mxu0 }
0x14ee   :  { %4322 = vtanh.f32 %v2235_v2  ;;  %v3228_v53 = vmul.f32 -1.442695, %v2235_v2 }
0x14f3   :  { %v2439_v24 = vpop.f32.mrb[20].mxu0 }
0x14f4   :  { %v2444_v3 = vrot.slane %v2439_v24, 4  ;;  %v3796_v5 = vpop.f32.mrb[21].mxu0 }
0x14f6   :  { %v2446_v6 = vadd.f32 %v2444_v3, %v5002_v16 }
0x14f8   :  { %v4323_v7 = vpop.eup %4322  ;;  %4324 = vtanh.f32 %v2446_v6  ;;  %v3232_v12 = vmul.f32 -1.442695, %v2446_v6 }
0x14f9   :  { %2247 = vrot.lane.b32.xlu1 %v4323_v7, %s4691_s8  ;;  %4326 = vpow2.f32 %v3224_v8 }
0x14fa   :  { %4328 = vpow2.f32 %v3228_v53 }
0x1502   :  { %v4325_v62 = vpop.eup %4324 }
0x1503   :  { %2459 = vrot.lane.b32.xlu0 %v4325_v62, %s4691_s8  ;;  %v4327_v9 = vpop.eup %4326 }
0x1504   :  { %v2031_v10 = vadd.f32 1.0, %v4327_v9  ;;  %v4329_v13 = vpop.eup %4328 }
0x1505   :  { %v2241_v21 = vadd.f32 1.0, %v4329_v13 }
0x1506   :  { %4330 = vrcp.f32 %v2031_v10 }
0x1507   :  { %4332 = vpow2.f32 %v3232_v12 }
0x1508   :  { %4334 = vrcp.f32 %v2241_v21 }
0x1510   :  { %v4331_v59 = vpop.eup %4330 }
0x1511   :  { %v4333_v23 = vpop.eup %4332  ;;  %v2035_v14 = vmul.f32 %v4331_v59, %v5327_v22 }
0x1512   :  { %v2450_v4 = vadd.f32 1.0, %v4333_v23  ;;  %v4335_v25 = vpop.eup %4334 }
0x1513   :  { %v2245_v39 = vmul.f32 %v4335_v25, %v5332_v26 }
0x1514   :  { %4336 = vrcp.f32 %v2450_v4 }
0x151e   :  { %v4337_v28 = vpop.eup %4336 }
0x151f   :  { %v2457_v44 = vmul.f32 %v4337_v28, %v2455_v43 }
0x155b   :  { %v2038_v15 = vpop.permute.xlu0 %2037 }
0x155c   :  { %v2040_v17 = vmul.f32 %v4331_v59, %v2038_v15 }
0x155e   :  { %2042 = vrot.lane.b32.xlu1 %v2040_v17, %s4692_s11 }
0x156b   :  { %v2248_v27 = vpop.permute.xlu1 %2247 }
0x156c   :  { %v2250_v47 = vmul.f32 %v4335_v25, %v2248_v27 }
0x156e   :  { %2252 = vrot.lane.b32.xlu0 %v2250_v47, %s4692_s11 }
0x1575   :  { %v2460_v30 = vpop.permute.xlu0 %2459 }
0x1576   :  { %v2462_v32 = vmul.f32 %v4337_v28, %v2460_v30 }
0x1578   :  { %2464 = vrot.lane.b32.xlu1 %v2462_v32, %s4692_s11 }
0x15d0   :  { %v2043_v33 = vpop.permute.xlu1 %2042 }
0x15d1   :  { %v5389_v34 = vadd.f32 %v2043_v33, %v2035_v14 }
0x15d3   :  { %4338 = vtanh.f32 %v5389_v34 }
0x15dd   :  { %v4339_v37 = vpop.eup %4338 }
0x15de   :  { %2048 = vrot.lane.b32.xlu0 %v4339_v37, %s4691_s8 }
0x15e0   :  { %v2253_v1 = vpop.permute.xlu0 %2252 }
0x15e1   :  { %v5394_v40 = vadd.f32 %v2253_v1, %v2245_v39 }
0x15e3   :  { %4340 = vtanh.f32 %v5394_v40 }
0x15ea   :  { %v2465_v46 = vpop.permute.xlu1 %2464 }
0x15eb   :  { %v5398_v22 = vadd.f32 %v2465_v46, %v2457_v44 }
0x15ed   :  { %v4341_v19 = vpop.eup %4340  ;;  %4342 = vtanh.f32 %v5398_v22 }
0x15ee   :  { %2258 = vrot.lane.b32.xlu1 %v4341_v19, %s4691_s8 }
0x15f7   :  { %v4343_v49 = vpop.eup %4342 }
0x15f8   :  { %2470 = vrot.lane.b32.xlu0 %v4343_v49, %s4691_s8 }
0x1650   :  { %v2049_v26 = vpop.permute.xlu0 %2048 }
0x1651   :  { %v2051_v50 = vmul.f32 %v4331_v59, %v2049_v26 }
0x1653   :  { %2267 = vrot.lane.b32.xlu0 %v2051_v50, %s4691_s8  ;;  %v2774_v50 = vrot.slane %v5398_v22, 6 }
0x1660   :  { %v2259_v52 = vpop.permute.xlu1 %2258 }
0x1661   :  { %v2261_v55 = vmul.f32 %v4335_v25, %v2259_v52 }
0x1663   :  { %v2478_v56 = vrot.slane %v2261_v55, 4  ;;  %2263 = vrot.lane.b32.xlu1 %v2261_v55, %s4692_s11 }
0x1665   :  { %2479 = vrot.lane.b32.xlu0 %v2478_v56, %s4691_s8 }
0x166a   :  { %v2471_v11 = vpop.permute.xlu0 %2470 }
0x166b   :  { %v2473_v57 = vmul.f32 %v4337_v28, %v2471_v11 }
0x166d   :  { %2475 = vrot.lane.b32.xlu1 %v2473_v57, %s4692_s11  ;;  %v2687_v60 = vrot.slane %v2473_v57, 4 }
0x1671   :  { %2688 = vrot.lane.b32.xlu1 %v2687_v60, %s4692_s11 }
0x16c5   :  { %v2268_v61 = vpop.permute.xlu0 %2267 }
0x16d5   :  { %v2264_v20 = vpop.permute.xlu1 %2263 }
0x16d6   :  { %v2270_v63 = vsel %vm449_vm3, %v2264_v20, %v2268_v61 }
0x16d7   :  { %3784 = vmatmul.mubr.msk.f32.vlgmr.msra.gmra.mrb[18].mxu1 %vm194_vm0, %v2270_v63  ;;  %v2480_v54 = vpop.permute.xlu0 %2479 }
0x16d8   :  { %4115 = vmatpush3.bf16.msra.mxu1 %v5016_v36  ;;  %3813 = vmatprep.mubr.msk.f32.mxu1 %vm4690_vm4, %v4688_v18 }
0x16d9   :  { %4116 = vmatprep.subr.bf16.mxu1 %v4689_v48 }
0x16dc   :  { %4118 = vmatpush3.bf16.msra.mxu1 %v5019_v38 }
0x16dd   :  { %4119 = vmatprep.subr.bf16.mxu1 %v4689_v48 }
0x16df   :  { %v2476_v2 = vpop.permute.xlu1 %2475 }
0x16e0   :  { %4121 = vmatpush3.bf16.msra.mxu1 %v5023_v41  ;;  %v2482_v24 = vsel %vm449_vm3, %v2476_v2, %v2480_v54 }
0x16e1   :  { %4122 = vmatprep.subr.bf16.mxu1 %v4689_v48  ;;  %v2484_v3 = vrot.slane %v2482_v24, 4 }
0x16e3   :  { %v2689_v5 = vpop.permute.xlu1 %2688 }
0x16e4   :  { %4124 = vmatpush3.bf16.msra.mxu1 %v5028_v45 }
0x16e5   :  { %4137 = vmatprep.subr.bf16.mxu1 %v4689_v48 }
0x16e7   :  { %3814 = vmatmul.mubr.msk.f32.vlgmr.msra.gmra.mrb[20].mxu1 %vm194_vm0, %v2484_v3 }
0x16e8   :  { %4139 = vmatpush3.bf16.msra.mxu1 %v4975_v51  ;;  %3843 = vmatprep.mubr.msk.f32.mxu1 %vm4690_vm4, %v4688_v18 }
0x16e9   :  { %4140 = vmatprep.subr.bf16.mxu1 %v4689_v48 }
0x16ec   :  { %4142 = vmatpush3.bf16.msra.mxu1 %v4985_v58  ;;  %v5438_v58 = vld [vmem:[#allocation14] ss:$0 sm:$0xff] }
0x16ed   :  { %4155 = vmatprep.subr.bf16.mxu1 %v4689_v48 }
0x16ef   :  { %3844 = vmatmul.mubr.msk.f32.vlgmr.msra.gmra.mrb[22].mxu1 %vm449_vm3, %v2689_v5 }
0x16f0   :  { %4157 = vmatpush3.bf16.msra.mxu1 %v5069_v29  ;;  %3881 = vmatprep.mubr.msk.f32.mxu1 %vm4690_vm4, %v4688_v18 }
0x16f1   :  { %4158 = vmatprep.subr.bf16.mxu1 %v4689_v48 }
0x16f4   :  { %4160 = vmatpush3.bf16.msra.mxu1 %v5072_v31 }
0x16f5   :  { %4161 = vmatprep.subr.bf16.mxu1 %v4689_v48 }
0x16f8   :  { %4163 = vmatpush3.bf16.msra.mxu1 %v5079_v35 }
0x16f9   :  { %4164 = vmatprep.subr.bf16.mxu1 %v4689_v48 }
0x16fc   :  { %4166 = vmatpush3.bf16.msra.mxu1 %v5089_v42 }
0x17aa   :  { %v2340_v51 = vpop.f32.mrb[18].mxu1 }
0x17ab   :  { %v2341_v29 = vadd.f32 %v5438_v58, %v2340_v51  ;;  %v3785_v6 = vpop.f32.mrb[19].mxu1 }
0x17ad   :  { %4344 = vtanh.f32 %v2341_v29  ;;  %v3230_v13 = vmul.f32 -1.442695, %v2341_v29 }
0x17b7   :  { %v4345_v7 = vpop.eup %4344 }
0x17b8   :  { %2353 = vrot.lane.b32.xlu0 %v4345_v7, %s4691_s8 }
0x17ba   :  { %v2553_v62 = vpop.f32.mrb[20].mxu1 }
0x17bb   :  { %v2554_v31 = vadd.f32 %v5379_v0, %v2553_v62  ;;  %v3815_v8 = vpop.f32.mrb[21].mxu1 }
0x17bd   :  { %4346 = vtanh.f32 %v2554_v31  ;;  %v3234_v15 = vmul.f32 -1.442695, %v2554_v31 }
0x17c2   :  { %v2758_v35 = vpop.f32.mrb[22].mxu1 }
0x17c3   :  { %v2763_v9 = vrot.slane %v2758_v35, 2  ;;  %v3845_v53 = vpop.f32.mrb[23].mxu1 }
0x17c5   :  { %v2765_v42 = vadd.f32 %v2763_v9, %v5002_v16 }
0x17c7   :  { %v4347_v10 = vpop.eup %4346  ;;  %4348 = vtanh.f32 %v2765_v42  ;;  %v3238_v21 = vmul.f32 -1.442695, %v2765_v42 }
0x17c8   :  { %2566 = vrot.lane.b32.xlu1 %v4347_v10, %s4691_s8  ;;  %4350 = vpow2.f32 %v3230_v13 }
0x17c9   :  { %4352 = vpow2.f32 %v3234_v15 }
0x17d1   :  { %v4349_v12 = vpop.eup %4348 }
0x17d2   :  { %2778 = vrot.lane.b32.xlu0 %v4349_v12, %s4691_s8  ;;  %v4351_v59 = vpop.eup %4350 }
0x17d3   :  { %v2347_v17 = vadd.f32 1.0, %v4351_v59  ;;  %v4353_v23 = vpop.eup %4352 }
0x17d4   :  { %v2560_v27 = vadd.f32 1.0, %v4353_v23 }
0x17d5   :  { %4354 = vrcp.f32 %v2347_v17 }
0x17d6   :  { %4356 = vpow2.f32 %v3238_v21 }
0x17d7   :  { %4358 = vrcp.f32 %v2560_v27 }
0x17df   :  { %v4355_v4 = vpop.eup %4354 }
0x17e0   :  { %v4357_v47 = vpop.eup %4356  ;;  %v2351_v1 = vmul.f32 %v4355_v4, %v5389_v34 }
0x17e1   :  { %v2769_v28 = vadd.f32 1.0, %v4357_v47  ;;  %v4359_v30 = vpop.eup %4358 }
0x17e2   :  { %v2564_v19 = vmul.f32 %v4359_v30, %v5394_v40 }
0x17e3   :  { %4360 = vrcp.f32 %v2769_v28 }
0x17ed   :  { %v4361_v33 = vpop.eup %4360 }
0x17ee   :  { %v2776_v52 = vmul.f32 %v4361_v33, %v2774_v50 }
0x182a   :  { %v2354_v25 = vpop.permute.xlu0 %2353 }
0x182b   :  { %v2356_v16 = vmul.f32 %v4355_v4, %v2354_v25 }
0x182d   :  { %2358 = vrot.lane.b32.xlu1 %v2356_v16, %s4692_s11 }
0x183a   :  { %v2567_v32 = vpop.permute.xlu1 %2566 }
0x183b   :  { %v2569_v14 = vmul.f32 %v4359_v30, %v2567_v32 }
0x183d   :  { %2571 = vrot.lane.b32.xlu0 %v2569_v14, %s4692_s11 }
0x1844   :  { %v2779_v37 = vpop.permute.xlu0 %2778 }
0x1845   :  { %v2781_v39 = vmul.f32 %v4361_v33, %v2779_v37 }
0x1847   :  { %2783 = vrot.lane.b32.xlu1 %v2781_v39, %s4692_s11 }
0x189f   :  { %v2359_v43 = vpop.permute.xlu1 %2358 }
0x18a0   :  { %v5450_v44 = vadd.f32 %v2359_v43, %v2351_v1 }
0x18a2   :  { %4362 = vtanh.f32 %v5450_v44 }
0x18ac   :  { %v4363_v46 = vpop.eup %4362 }
0x18ad   :  { %2364 = vrot.lane.b32.xlu0 %v4363_v46, %s4691_s8 }
0x18af   :  { %v2572_v49 = vpop.permute.xlu0 %2571 }
0x18b0   :  { %v5455_v26 = vadd.f32 %v2572_v49, %v2564_v19 }
0x18b2   :  { %4364 = vtanh.f32 %v5455_v26 }
0x18b9   :  { %v2784_v55 = vpop.permute.xlu1 %2783 }
0x18ba   :  { %v5459_v34 = vadd.f32 %v2784_v55, %v2776_v52 }
0x18bc   :  { %v4365_v56 = vpop.eup %4364  ;;  %4366 = vtanh.f32 %v5459_v34 }
0x18bd   :  { %2577 = vrot.lane.b32.xlu1 %v4365_v56, %s4691_s8 }
0x18c6   :  { %v4367_v11 = vpop.eup %4366 }
0x18c7   :  { %2789 = vrot.lane.b32.xlu0 %v4367_v11, %s4691_s8 }
0x191f   :  { %v2365_v40 = vpop.permute.xlu0 %2364 }
0x1920   :  { %v2367_v57 = vmul.f32 %v4355_v4, %v2365_v40 }
0x1922   :  { %2586 = vrot.lane.b32.xlu0 %v2367_v57, %s4691_s8  ;;  %v3035_v57 = vld [vmem:[%s5584_s14 + $0x8] sm:$0xff] }
0x192f   :  { %v2578_v60 = vpop.permute.xlu1 %2577 }
0x1930   :  { %v2580_v61 = vmul.f32 %v4359_v30, %v2578_v60  ;;  %v3036_v60 = vld [vmem:[%s5584_s14 + $0x10] sm:$0xff] }
0x1932   :  { %v2797_v20 = vrot.slane %v2580_v61, 2  ;;  %2582 = vrot.lane.b32.xlu1 %v2580_v61, %s4692_s11 }
0x1934   :  { %2798 = vrot.lane.b32.xlu0 %v2797_v20, %s4691_s8  ;;  %v3037_v20 = vld [vmem:[%s5584_s14 + $0x18] sm:$0xff] }
0x1939   :  { %v2790_v22 = vpop.permute.xlu0 %2789 }
0x193a   :  { %v2792_v63 = vmul.f32 %v4361_v33, %v2790_v22  ;;  %v4171_v22 = vpack.c.bf16 %v3037_v20, %v3036_v60 }
0x193c   :  { %2794 = vrot.lane.b32.xlu1 %v2792_v63, %s4692_s11 }
0x1994   :  { %v2587_v2 = vpop.permute.xlu0 %2586 }
0x19a4   :  { %v2583_v54 = vpop.permute.xlu1 %2582 }
0x19a5   :  { %v2589_v24 = vsel %vm449_vm3, %v2583_v54, %v2587_v2 }
0x19a6   :  { %3833 = vmatmul.mubr.msk.f32.vlgmr.msra.gmra.mrb[22].mxu0 %vm194_vm0, %v2589_v24  ;;  %v2799_v5 = vpop.permute.xlu0 %2798 }
0x19a7   :  { %4145 = vmatpush3.bf16.msra.mxu0 %v5016_v36  ;;  %3862 = vmatprep.mubr.msk.f32.mxu0 %vm4690_vm4, %v4688_v18 }
0x19a8   :  { %4146 = vmatprep.subr.bf16.mxu0 %v4689_v48 }
0x19ab   :  { %4148 = vmatpush3.bf16.msra.mxu0 %v5019_v38 }
0x19ac   :  { %4149 = vmatprep.subr.bf16.mxu0 %v4689_v48 }
0x19ae   :  { %v2795_v3 = vpop.permute.xlu1 %2794 }
0x19af   :  { %3007 = vst.msk [vmem:[#allocation18 - $0x6] sm:$0xc0] %vm3006_vm5, %v2795_v3  ;;  %4151 = vmatpush3.bf16.msra.mxu0 %v5023_v41  ;;  %v2801_v36 = vsel %vm449_vm3, %v2795_v3, %v2799_v5  ;;  %v3243_v3 = vld [vmem:[#allocation16] ss:$0 sm:$0xff] }
0x19b0   :  { %4152 = vmatprep.subr.bf16.mxu0 %v4689_v48  ;;  %v2803_v51 = vrot.slane %v2801_v36, 6 }
0x19b3   :  { %4154 = vmatpush3.bf16.msra.mxu0 %v5028_v45 }
0x19b4   :  { %4167 = vmatprep.subr.bf16.mxu0 %v4689_v48 }
0x19b6   :  { %3863 = vmatmul.mubr.msk.f32.vlgmr.msra.gmra.mrb[24].mxu0 %vm194_vm0, %v2803_v51 }
0x19b7   :  { %3892 = vmatprep.mubr.msk.f32.mxu0 %vm4690_vm4, %v4688_v18 }
0x1a79   :  { %v2659_v38 = vpop.f32.mrb[22].mxu0 }
0x1a7a   :  { %v2660_v29 = vadd.f32 %v5438_v58, %v2659_v38  ;;  %v3834_v6 = vpop.f32.mrb[23].mxu0 }
0x1a7c   :  { %4368 = vtanh.f32 %v2660_v29  ;;  %v3236_v8 = vmul.f32 -1.442695, %v2660_v29 }
0x1a86   :  { %v4369_v41 = vpop.eup %4368 }
0x1a87   :  { %2672 = vrot.lane.b32.xlu1 %v4369_v41, %s4691_s8 }
0x1a89   :  { %v2872_v7 = vpop.f32.mrb[24].mxu0 }
0x1a8a   :  { %v2873_v62 = vadd.f32 %v5379_v0, %v2872_v7  ;;  %v3864_v45 = vpop.f32.mrb[25].mxu0 }
0x1a8c   :  { %4370 = vtanh.f32 %v2873_v62  ;;  %v3240_v18 = vmul.f32 -1.442695, %v2873_v62 }
0x1a8d   :  { %4372 = vpow2.f32 %v3236_v8 }
0x1a8e   :  { %4374 = vpow2.f32 %v3240_v18 }
0x1a96   :  { %v4371_v31 = vpop.eup %4370 }
0x1a97   :  { %2885 = vrot.lane.b32.xlu0 %v4371_v31, %s4691_s8  ;;  %v4373_v35 = vpop.eup %4372 }
0x1a98   :  { %v2666_v9 = vadd.f32 1.0, %v4373_v35  ;;  %v4375_v53 = vpop.eup %4374 }
0x1a99   :  { %v2879_v13 = vadd.f32 1.0, %v4375_v53 }
0x1a9a   :  { %4376 = vrcp.f32 %v2666_v9 }
0x1a9b   :  { %4378 = vrcp.f32 %v2879_v13 }
0x1aa4   :  { %v4377_v42 = vpop.eup %4376 }
0x1aa5   :  { %v4379_v0 = vpop.eup %4378  ;;  %v2670_v17 = vmul.f32 %v4377_v42, %v5450_v44 }
0x1aa6   :  { %v2883_v25 = vmul.f32 %v4379_v0, %v5455_v26 }
0x1af9   :  { %v2673_v10 = vpop.permute.xlu1 %2672 }
0x1afa   :  { %v2675_v12 = vmul.f32 %v4377_v42, %v2673_v10 }
0x1afc   :  { %2677 = vrot.lane.b32.xlu1 %v2675_v12, %s4692_s11 }
0x1b09   :  { %v2886_v59 = vpop.permute.xlu0 %2885 }
0x1b0a   :  { %v2888_v15 = vmul.f32 %v4379_v0, %v2886_v59 }
0x1b0c   :  { %2890 = vrot.lane.b32.xlu0 %v2888_v15, %s4692_s11 }
0x1b6e   :  { %v2678_v21 = vpop.permute.xlu1 %2677 }
0x1b6f   :  { %v2680_v23 = vadd.f32 %v2678_v21, %v2670_v17 }
0x1b71   :  { %4380 = vtanh.f32 %v2680_v23 }
0x1b7b   :  { %v4381_v4 = vpop.eup %4380 }
0x1b7c   :  { %2683 = vrot.lane.b32.xlu1 %v4381_v4, %s4691_s8 }
0x1b7e   :  { %v2891_v16 = vpop.permute.xlu0 %2890 }
0x1b7f   :  { %v2893_v27 = vadd.f32 %v2891_v16, %v2883_v25 }
0x1b81   :  { %4382 = vtanh.f32 %v2893_v27 }
0x1b8b   :  { %v4383_v47 = vpop.eup %4382 }
0x1b8c   :  { %2896 = vrot.lane.b32.xlu0 %v4383_v47, %s4691_s8 }
0x1bee   :  { %v2684_v28 = vpop.permute.xlu1 %2683 }
0x1bef   :  { %v2686_v30 = vmul.f32 %v4377_v42, %v2684_v28 }
0x1bf1   :  { %2905 = vrot.lane.b32.xlu0 %v2686_v30, %s4691_s8 }
0x1bfe   :  { %v2897_v32 = vpop.permute.xlu0 %2896 }
0x1bff   :  { %v2899_v14 = vmul.f32 %v4379_v0, %v2897_v32 }
0x1c01   :  { %2901 = vrot.lane.b32.xlu1 %v2899_v14, %s4692_s11 }
0x1c63   :  { %v2906_v33 = vpop.permute.xlu0 %2905 }
0x1c73   :  { %v2902_v37 = vpop.permute.xlu1 %2901 }
0x1c74   :  { %v2908_v39 = vsel %vm449_vm3, %v2902_v37, %v2906_v33  ;;  %3015 = vst.msk [vmem:[#allocation18 + $0x2] sm:$0x3] %vm3014_vm6, %v2902_v37 }
0x1c75   :  { %3882 = vmatmul.mubr.msk.f32.vlgmr.msra.gmra.mrb[24].mxu1 %vm194_vm0, %v2908_v39 }
0x1d48   :  { %v2978_v1 = vpop.f32.mrb[24].mxu1 }
0x1d49   :  { %v2979_v43 = vadd.f32 %v5438_v58, %v2978_v1  ;;  %v3883_v44 = vpop.f32.mrb[25].mxu1  ;;  %v3034_v58 = vld [vmem:[%s5584_s14] sm:$0xff]  ;;  %s4693_s14 = smov 96  }
0x1d4a   :  { %v4168_v61 = vpack.c.bf16 %v3035_v57, %v3034_v58 }
0x1d4b   :  { %4384 = vtanh.f32 %v2979_v43  ;;  %v3242_v19 = vmul.f32 -1.442695, %v2979_v43 }
0x1d4c   :  { %4169 = vmatpush3.bf16.msra.mxu0 %v4168_v61 }
0x1d4d   :  { %4386 = vpow2.f32 %v3242_v19  ;;  %4170 = vmatprep.subr.bf16.mxu0 %v4689_v48 }
0x1d50   :  { %4172 = vmatpush3.bf16.msra.mxu0 %v4171_v22 }
0x1d55   :  { %v4385_v46 = vpop.eup %4384 }
0x1d56   :  { %2991 = vrot.lane.b32.xlu1 %v4385_v46, %s4691_s8 }
0x1d57   :  { %v4387_v49 = vpop.eup %4386 }
0x1d58   :  { %v2985_v26 = vadd.f32 1.0, %v4387_v49 }
0x1d5a   :  { %4388 = vrcp.f32 %v2985_v26 }
0x1d64   :  { %v4389_v50 = vpop.eup %4388 }
0x1d65   :  { %v2989_v56 = vmul.f32 %v4389_v50, %v2680_v23 }
0x1dc8   :  { %v2992_v52 = vpop.permute.xlu1 %2991 }
0x1dc9   :  { %v2994_v55 = vmul.f32 %v4389_v50, %v2992_v52 }
0x1dcb   :  { %2996 = vrot.lane.b32.xlu0 %v2994_v55, %s4692_s11 }
0x1e3d   :  { %v2997_v11 = vpop.permute.xlu0 %2996 }
0x1e3e   :  { %v2999_v40 = vadd.f32 %v2997_v11, %v2989_v56 }
0x1e40   :  { %4390 = vtanh.f32 %v2999_v40 }
0x1e4a   :  { %v4391_v63 = vpop.eup %4390 }
0x1e4b   :  { %3002 = vrot.lane.b32.xlu1 %v4391_v63, %s4691_s8 }
0x1ebd   :  { %v3003_v2 = vpop.permute.xlu1 %3002 }
0x1ebe   :  { %v3005_v54 = vmul.f32 %v4389_v50, %v3003_v2 }
0x1ec0   :  { %3023 = vrot.lane.b32.xlu0 %v3005_v54, %s4692_s11 }
0x1f32   :  { %v3024_v24 = vpop.permute.xlu0 %3023 }
0x1f33   :  { %3027 = vst.msk [vmem:[#allocation18 + $0x4] sm:$0x3] %vm3014_vm6, %v3024_v24  ;;  %3893 = vmatmul.mubr.msk.f32.vlgmr.msra.gmra.mrb[26].mxu0 %vm449_vm3, %v3024_v24 }
0x2006   :  { %v3113_v5 = vpop.f32.mrb[26].mxu0 }
0x2007   :  { %v3114_v36 = vadd.f32 %v3243_v3, %v3113_v5  ;;  %v3894_v51 = vpop.f32.mrb[27].mxu0 }
0x2009   :  { %v3118_v48 = vsel %vm3117_vm7, %v3114_v36, -inf }
0x200a   :  { %3119 = vmax.xlane.f32.xlu1 %v3118_v48 }
0x201b   :  { %3017 = vrot.lane.b32.xlu1 %v2893_v27, %s4693_s14 }
0x201f   :  { %3029 = vrot.lane.b32.xlu1 %v2999_v40, %s4693_s14 }
0x2097   :  { %v3120_v38 = vpop.xlane.xlu1 %3119 }
0x2098   :  { %v3121_v29 = vsub.f32 %v3114_v36, %v3120_v38 }
0x209a   :  { %v3122_v6 = vmul.f32 1.442695, %v3121_v29 }
0x209b   :  { %v3018_v41 = vpop.permute.xlu1 %3017 }
0x209c   :  { %4392 = vpow2.f32 %v3122_v6  ;;  %3021 = vst.msk [vmem:[#allocation20 + $0x2] sm:$0x3] %vm3014_vm6, %v3018_v41 }
0x209f   :  { %v3030_v7 = vpop.permute.xlu1 %3029 }
0x20a0   :  { %3033 = vst.msk [vmem:[#allocation20 + $0x4] sm:$0x3] %vm3014_vm6, %v3030_v7 }
0x20a6   :  { %v4393_v62 = vpop.eup %4392 }
0x20a7   :  { %v3124_v45 = vsel %vm3117_vm7, %v4393_v62, 0.0 }
0x20a8   :  { %3125 = vadd.xlane.f32.xlu0 %v3124_v45 }
0x20a9   :  { %4607 = shalt.err (!%p4604_p6)
}
0x20aa   :  { %s4608_s29 = scalar_lea.hbm %s5587_s17, 96 }
0x20ab   :  { %p4609_p7 = scmp.ne.s32.totalorder %s5587_s17, %s4608_s29  ;;  %p4612_p8 = scmp.lt.u32.totalorder %s4608_s29, %s5587_s17 }
0x20ad   :  { %p4614_p9 = pnand %p4612_p8, %p4609_p7 }
0x20af   :  { %4617 = shalt.err (!%p4614_p9)
}
0x20b0   :  { %s4695_s24 = smov 2   ;;  %s4696_s20 = smov [#allocation20]  }
0x20b1   :  { %3151 = dma.vmem_to_hbm [thread:$0]  %s3146_s27, 96, %s5587_s17, [#allocation19], %s4692_s11, %s4692_s11, %s4695_s24  }
0x20b2   :  { %s3157_s9 = sshll.u32 %s4696_s20, 4  ;;  %s3158_s9 = int_to_ptr.vmem [resolvable:$true] %s3157_s9 }
0x20b3   :  { %s4618_s12 = scalar_lea.vmem %s3158_s9, 96  ;;  %p4623_p11 = scmp.lt.s32.totalorder %s3158_s9, %s3158_s9 }
0x20b4   :  { %p4619_p10 = scmp.ne.s32.totalorder %s3158_s9, %s4618_s12  ;;  %p4624_p12 = scmp.lt.s32.totalorder %s4618_s12, %s4618_s12 }
0x20b6   :  { %p4625_p13 = por %p4624_p12, %p4623_p11 }
0x20b8   :  { %p4626_p0 = pnand %p4625_p13, %p4619_p10 }
0x20be   :  { %3009 = vrot.lane.b32.xlu0 %v5459_v34, %s4693_s14 }
0x2135   :  { %v3126_v31 = vpop.xlane.xlu0 %3125 }
0x2136   :  { %4394 = vrcp.f32 %v3126_v31 }
0x2139   :  { %v3010_v8 = vpop.permute.xlu0 %3009 }
0x213a   :  { %3012 = vst.msk [vmem:[#allocation20 - $0x6] sm:$0xc0] %vm3006_vm5, %v3010_v8 }
0x213b   :  { %4629 = shalt.err (!%p4626_p0)
}
0x213c   :  { %s4630_s3 = scalar_lea.hbm %s5588_s18, 96 }
0x213d   :  { %p4631_p1 = scmp.ne.s32.totalorder %s5588_s18, %s4630_s3  ;;  %p4634_p2 = scmp.lt.u32.totalorder %s4630_s3, %s5588_s18 }
0x213f   :  { %p4636_p3 = pnand %p4634_p2, %p4631_p1 }
0x2141   :  { %4639 = shalt.err (!%p4636_p3)
}
0x2142   :  { %3163 = dma.vmem_to_hbm [thread:$0]  %s3158_s9, 96, %s5588_s18, [#allocation19], %s4692_s11, %s4692_s11, %s4695_s24   ;;  %v4395_v34 = vpop.eup %4394 }
0x2143   :  { %s4697_s28 = smov [#allocation17]   ;;  %v3128_v35 = vmul.f32 %v4395_v34, %v4393_v62 }
0x2144   :  { %s3136_s23 = sshll.u32 %s4697_s28, 4  ;;  %s3137_s23 = int_to_ptr.vmem [resolvable:$true] %s3136_s23 }
0x2145   :  { %3129 = vst.msk [vmem:[#allocation17] sm:$0x3] %vm3117_vm7, %v3128_v35  ;;  %s4640_s14 = scalar_lea.vmem %s3137_s23, 32  ;;  %p4645_p5 = scmp.lt.s32.totalorder %s3137_s23, %s3137_s23 }
0x2146   :  { %p4641_p4 = scmp.ne.s32.totalorder %s3137_s23, %s4640_s14  ;;  %p4646_p6 = scmp.lt.s32.totalorder %s4640_s14, %s4640_s14 }
0x2148   :  { %p4647_p7 = por %p4646_p6, %p4645_p5 }
0x214a   :  { %p4648_p8 = pnand %p4647_p7, %p4641_p4 }
0x214c   :  { %4651 = shalt.err (!%p4648_p8)
}
0x214d   :  { %s4652_s26 = scalar_lea.hbm %s5586_s16, 32 }
0x214e   :  { %p4653_p9 = scmp.ne.s32.totalorder %s5586_s16, %s4652_s26  ;;  %p4656_p10 = scmp.lt.u32.totalorder %s4652_s26, %s5586_s16 }
0x2150   :  { %p4658_p11 = pnand %p4656_p10, %p4653_p9 }
0x2152   :  { %4661 = shalt.err (!%p4658_p11)
}
0x2153   :  { %3139 = dma.vmem_to_hbm [thread:$0]  %s3137_s23, 32, %s5586_s16, [#allocation4]  }
0x2154   :  { %4672 = dma.done.wait [#allocation4], 32  }
0x2155   :  { %4673 = vsyncadd [#allocation4], 4294967264 }
0x2156   :  { %4674 = dma.done.wait [#allocation19], 192  }
0x2157   :  { %4675 = vsyncadd [#allocation19], 4294967104 }
0x2158   :  { %3173 = vsyncpa [#allocation3], 1 }
0x2159   :  { %3174 = vsyncpa [#allocation6], 1 }
0x215a   :  { %3175 = vsyncpa [#allocation9], 1 }
0x215b   :  { %3176 = vsyncpa [#allocation12], 1 }
0x215c   :  { %3177 = vsyncpa [#allocation15], 1 }
0x215d   :  { %3178 = vsyncpa [#allocation4], 1 }
0x215e   :  { %3179 = vsyncpa [#allocation19], 1 }

</bundles_post_ra>
